<compile_context>
chip_gen: v7x
topology: tpu7x:2x2x1
jax: 0.10.0
libtpu: 0.0.40
codegen_flags: <defaults>
</compile_context>

<pallas_src>
import functools

import jax
import jax.numpy as jnp
from jax import lax
from jax.experimental import pallas as pl
from jax.experimental.pallas import tpu as pltpu


def _round_up(x, m):
    return ((x + m - 1) // m) * m


# ------------------------------ fused layer kernel ---------------------------

def _gru_fused_layer_kernel(x_ref, wih_ref, whh_ref, bx_ref, bhn_ref,
                            out_ref, h_ref, gates_ref, *, tb, bpad, hp):
    """One block of tb timesteps of one GRU layer (input proj fused).

    x_ref:     (tb*bpad, Fin)   input rows for this block (time-major, flat)
    wih_ref:   (Fin, 3Hp) bf16  packed input->hidden weights, cols [r | z | n]
    whh_ref:   (Hp, 3Hp)  bf16  packed hidden->hidden weights
    bx_ref:    (1, 3Hp)   f32   b_ih with b_hr/b_hz folded into r/z columns
    bhn_ref:   (1, Hp)    f32   hidden bias of the n gate (stays inside r*(.))
    out_ref:   (tb*bpad, Hp)    hidden states for this block
    h_ref:     (bpad, Hp)  f32  VMEM scratch carrying state across grid steps
    gates_ref: (tb*bpad, 3Hp) f32 VMEM scratch with the block's input proj
    """
    blk = pl.program_id(0)

    @pl.when(blk == 0)
    def _():
        h_ref[...] = jnp.zeros_like(h_ref)

    # Block-wide, time-parallel input projection (bf16 MXU operands, f32 acc).
    gates_ref[...] = (
        jnp.dot(x_ref[...].astype(jnp.bfloat16), wih_ref[...],
                preferred_element_type=jnp.float32)
        + bx_ref[...]
    )

    # Hoisted out of the serial loop (JAX does not CSE broadcast_in_dim).
    whh = whh_ref[...]                                   # (Hp, 3Hp) bf16
    bhn = jnp.broadcast_to(bhn_ref[...], (bpad, hp))     # (bpad, Hp) f32

    def step(t, h_prev):
        off = pl.multiple_of(t * bpad, bpad)
        gx = gates_ref[pl.ds(off, bpad), :]              # (bpad, 3Hp) f32
        hh = jnp.dot(h_prev.astype(jnp.bfloat16), whh,
                     preferred_element_type=jnp.float32)  # single fused matmul
        # Only the r/z columns of (gx + hh) are ever used -> skip the n third.
        s = gx[:, :2 * hp] + hh[:, :2 * hp]
        r = jax.nn.sigmoid(s[:, :hp])
        z = jax.nn.sigmoid(s[:, hp:])
        n = jnp.tanh(gx[:, 2 * hp:] + r * (hh[:, 2 * hp:] + bhn))
        h_new = (1.0 - z) * n + z * h_prev
        out_ref[pl.ds(off, bpad), :] = h_new.astype(out_ref.dtype)
        return h_new

    unroll = 8 if tb >= 8 else tb
    h_ref[...] = lax.fori_loop(0, tb, step, h_ref[...], unroll=unroll)


def _gru_layer(x_flat, wih, whh, b_x, b_hn, *, tb, bpad, hp, nblk, vmem_limit):
    """x_flat (T_pad*bpad, Fin) -> hidden sequence (T_pad*bpad, Hp)."""
    M, fin = x_flat.shape
    h3 = 3 * hp
    kernel = functools.partial(_gru_fused_layer_kernel, tb=tb, bpad=bpad, hp=hp)
    return pl.pallas_call(
        kernel,
        out_shape=jax.ShapeDtypeStruct((M, hp), jnp.float32),
        grid_spec=pltpu.PrefetchScalarGridSpec(
            num_scalar_prefetch=0,
            grid=(nblk,),
            in_specs=[
                pl.BlockSpec((tb * bpad, fin), lambda i: (i, 0)),
                pl.BlockSpec((fin, h3), lambda i: (0, 0)),
                pl.BlockSpec((hp, h3), lambda i: (0, 0)),
                pl.BlockSpec((1, h3), lambda i: (0, 0)),
                pl.BlockSpec((1, hp), lambda i: (0, 0)),
            ],
            out_specs=pl.BlockSpec((tb * bpad, hp), lambda i: (i, 0)),
            scratch_shapes=[
                pltpu.VMEM((bpad, hp), jnp.float32),          # carried h state
                pltpu.VMEM((tb * bpad, h3), jnp.float32),     # block gates
            ],
        ),
        compiler_params=pltpu.CompilerParams(
            dimension_semantics=("arbitrary",),   # time recurrence is sequential
            vmem_limit_bytes=vmem_limit,
        ),
    )(x_flat, wih, whh, b_x, b_hn)


# ------------------------------ params / packing ----------------------------

def init_gru_params(key, input_size, hidden_size, num_layers):
    """PyTorch nn.GRU-style shapes, uniform(-1/sqrt(H), 1/sqrt(H))."""
    params = []
    bound = 1.0 / jnp.sqrt(jnp.float32(hidden_size))
    for layer in range(num_layers):
        in_f = input_size if layer == 0 else hidden_size
        key, k1, k2, k3, k4 = jax.random.split(key, 5)
        w_ih = jax.random.uniform(k1, (3 * hidden_size, in_f), jnp.float32, -bound, bound)
        w_hh = jax.random.uniform(k2, (3 * hidden_size, hidden_size), jnp.float32, -bound, bound)
        b_ih = jax.random.uniform(k3, (3 * hidden_size,), jnp.float32, -bound, bound)
        b_hh = jax.random.uniform(k4, (3 * hidden_size,), jnp.float32, -bound, bound)
        params.append((w_ih, w_hh, b_ih, b_hh))
    return params


def pack_gru_params(params, hidden_size):
    """One-time conversion from PyTorch layout to the kernel's fused layout.

    H is zero-padded up to Hp = round_up(H, 128) in BOTH rows and columns so
    padded hidden lanes stay exactly zero through the recurrence.  Weights are
    stored bf16 (MXU operands); biases stay f32.
    Returns tuple of (wih (Finp,3Hp) bf16, whh (Hp,3Hp) bf16,
                      b_x (1,3Hp) f32, b_hn (1,Hp) f32).
    """
    H = hidden_size
    Hp = _round_up(H, 128)
    packed = []
    for layer, (w_ih, w_hh, b_ih, b_hh) in enumerate(params):
        fin = w_ih.shape[1]
        fin_p = Hp if layer > 0 else fin     # layer>0 input is the padded h

        wih = jnp.zeros((fin_p, 3 * Hp), jnp.float32)
        wt = jnp.transpose(w_ih)             # (fin, 3H), gate order [r | z | n]
        for g in range(3):
            wih = wih.at[:fin, g * Hp:g * Hp + H].set(wt[:, g * H:(g + 1) * H])

        whh = jnp.zeros((Hp, 3 * Hp), jnp.float32)
        wt = jnp.transpose(w_hh)             # (H, 3H)
        for g in range(3):
            whh = whh.at[:H, g * Hp:g * Hp + H].set(wt[:, g * H:(g + 1) * H])

        b_x = jnp.zeros((1, 3 * Hp), jnp.float32)
        b_x = b_x.at[0, 0:H].set(b_ih[:H] + b_hh[:H])                      # r
        b_x = b_x.at[0, Hp:Hp + H].set(b_ih[H:2 * H] + b_hh[H:2 * H])      # z
        b_x = b_x.at[0, 2 * Hp:2 * Hp + H].set(b_ih[2 * H:])               # n
        b_hn = jnp.zeros((1, Hp), jnp.float32).at[0, :H].set(b_hh[2 * H:])

        packed.append((wih.astype(jnp.bfloat16), whh.astype(jnp.bfloat16),
                       b_x, b_hn))
    return tuple(packed)


# --------------------------------- forward ----------------------------------

def _choose_tb(T, bpad, hp, fin_max, budget=24 * 1024 * 1024):
    """Time-block size from a VMEM budget (v7x-safe), preferring divisors of T."""
    def bytes_needed(tb):
        return (2 * tb * bpad * fin_max * 4      # x block (double-buffered)
                + 2 * tb * bpad * hp * 4         # out block (double-buffered)
                + tb * bpad * 3 * hp * 4         # gates scratch
                + 2 * (fin_max + hp) * 3 * hp * 2  # bf16 weights
                + bpad * hp * 4 + 8 * 4 * hp)
    tb = min(T, 128)
    while tb > 8 and bytes_needed(tb) > budget:
        tb = max(8, tb // 2)
    # Avoid wasted serial steps on a padded tail if a nearby divisor exists.
    for cand in range(tb, max(tb // 2, 1) - 1, -1):
        if T % cand == 0:
            return cand
    return tb


@functools.partial(jax.jit, static_argnums=2)
def gru_model_forward(x_bti, packed_params, hidden_size):
    """Matches GRUModel.forward: x (B, T, input_size) -> out (B, T, hidden)."""
    H = hidden_size
    Hp = packed_params[0][1].shape[0]          # whh rows = padded hidden size
    B, T, F = x_bti.shape
    Bp = _round_up(B, 8)
    fin_max = max(F, Hp)

    tb = _choose_tb(T, Bp, Hp, fin_max)
    T_pad = _round_up(T, tb)
    nblk = T_pad // tb

    needed = (2 * tb * Bp * fin_max * 4 + 2 * tb * Bp * Hp * 4
              + tb * Bp * 3 * Hp * 4 + 2 * (fin_max + Hp) * 3 * Hp * 2
              + Bp * Hp * 4 + 32 * Hp)
    vmem_limit = int(min(48 * 1024 * 1024, max(32 * 1024 * 1024, 2 * needed)))

    x = jnp.transpose(x_bti, (1, 0, 2)).astype(jnp.float32)       # (T, B, F)
    x = jnp.pad(x, ((0, T_pad - T), (0, Bp - B), (0, 0)))          # zero pad
    h_flat = x.reshape(T_pad * Bp, F)                              # time-major flat

    for (wih, whh, b_x, b_hn) in packed_params:
        h_flat = _gru_layer(h_flat, wih, whh, b_x, b_hn,
                            tb=tb, bpad=Bp, hp=Hp, nblk=nblk,
                            vmem_limit=vmem_limit)

    out = h_flat.reshape(T_pad, Bp, Hp)[:T, :B, :H]
    return jnp.transpose(out, (1, 0, 2))                           # (B, T, H)


# -------------------------------- reference ---------------------------------

def gru_model_reference(x_bti, params, hidden_size):
    """Pure-JAX f32 reference (same math as torch.nn.GRU forward)."""
    B = x_bti.shape[0]
    seq = jnp.transpose(x_bti, (1, 0, 2)).astype(jnp.float32)      # (T, B, F)
    for (w_ih, w_hh, b_ih, b_hh) in params:
        H = hidden_size
        w_ir, w_iz, w_in = w_ih[:H], w_ih[H:2 * H], w_ih[2 * H:]
        w_hr, w_hz, w_hn = w_hh[:H], w_hh[H:2 * H], w_hh[2 * H:]
        b_ir, b_iz, b_in = b_ih[:H], b_ih[H:2 * H], b_ih[2 * H:]
        b_hr, b_hz, b_hn = b_hh[:H], b_hh[H:2 * H], b_hh[2 * H:]

        def step(h_prev, x_t):
            r = jax.nn.sigmoid(x_t @ w_ir.T + b_ir + h_prev @ w_hr.T + b_hr)
            z = jax.nn.sigmoid(x_t @ w_iz.T + b_iz + h_prev @ w_hz.T + b_hz)
            n = jnp.tanh(x_t @ w_in.T + b_in + r * (h_prev @ w_hn.T + b_hn))
            h_new = (1.0 - z) * n + z * h_prev
            return h_new, h_new

        h0 = jnp.zeros((B, H), jnp.float32)
        _, seq = jax.lax.scan(step, h0, seq)
    return jnp.transpose(seq, (1, 0, 2))


if __name__ == "__main__":
    # Small shapes consistent with the module's forward:
    batch, seq_len, input_size = 2, 8, 16
    hidden_size, num_layers, num_classes = 32, 2, 10   # num_classes unused (fc dead)

    key = jax.random.PRNGKey(0)
    key, xk = jax.random.split(key)
    x = jax.random.normal(xk, (batch, seq_len, input_size), jnp.float32)

    params = init_gru_params(key, input_size, hidden_size, num_layers)
    packed = pack_gru_params(params, hidden_size)       # pre-pack once, outside jit

    out = gru_model_forward(x, packed, hidden_size)
    out = jax.block_until_ready(out)
    assert out.shape == (batch, seq_len, hidden_size), out.shape

    ref = gru_model_reference(x, params, hidden_size)
    err = float(jnp.max(jnp.abs(out - ref)))
    # bf16 MXU operands -> loosened tolerance vs the f32 reference.
    assert jnp.allclose(out, ref, atol=5e-2, rtol=5e-2), err

    print("KERNEL_OK")
</pallas_src>

<mosaic_0001>
module attributes {stable_mosaic.version = 11 : i64} {
  func.func @_gru_fused_layer_kernel(%arg0: i32, %arg1: memref<64x16xf32, #tpu.memory_space<vmem>>, %arg2: memref<16x384xbf16, #tpu.memory_space<vmem>>, %arg3: memref<128x384xbf16, #tpu.memory_space<vmem>>, %arg4: memref<1x384xf32, #tpu.memory_space<vmem>>, %arg5: memref<1x128xf32, #tpu.memory_space<vmem>>, %arg6: memref<64x128xf32, #tpu.memory_space<vmem>>, %arg7: memref<8x128xf32, #tpu.memory_space<vmem>>, %arg8: memref<64x384xf32, #tpu.memory_space<vmem>>) attributes {dimension_semantics = [#tpu.dimension_semantics<arbitrary>], iteration_bounds = array<i64: 1>, scalar_prefetch = 0 : i64, scratch_operands = 2 : i64, tpu.core_type = #tpu.core_type<tc>, window_params = [{transform_indices = @transform_0, window_bounds = array<i64: 64, 16>}, {pipeline_mode = #tpu.pipeline_mode<synchronous>, transform_indices = @transform_1, window_bounds = array<i64: 16, 384>}, {pipeline_mode = #tpu.pipeline_mode<synchronous>, transform_indices = @transform_2, window_bounds = array<i64: 128, 384>}, {pipeline_mode = #tpu.pipeline_mode<synchronous>, transform_indices = @transform_3, window_bounds = array<i64: 1, 384>}, {pipeline_mode = #tpu.pipeline_mode<synchronous>, transform_indices = @transform_4, window_bounds = array<i64: 1, 128>}, {transform_indices = @transform_5, window_bounds = array<i64: 64, 128>}]} {
    %c0_i32 = arith.constant 0 : i32
    %0 = arith.cmpi eq, %arg0, %c0_i32 : i32
    %1 = arith.extui %0 : i1 to i32
    %c0_i32_0 = arith.constant 0 : i32
    %2 = arith.cmpi ne, %1, %c0_i32_0 : i32
    scf.if %2 {
      %cst_73 = arith.constant 0.000000e+00 : f32
      %289 = vector.broadcast %cst_73 : f32 to vector<8x128xf32>
      %c0_74 = arith.constant 0 : index
      %c0_75 = arith.constant 0 : index
      %290 = vector.load %arg7[%c0_74, %c0_75] : memref<8x128xf32, #tpu.memory_space<vmem>>, vector<8x128xf32>
      tpu.vector_store %arg7[%c0_74, %c0_75], %289 {strides = array<i32>} : memref<8x128xf32, #tpu.memory_space<vmem>>, vector<8x128xf32>,
    } else {
    }
    %c0 = arith.constant 0 : index
    %c0_1 = arith.constant 0 : index
    %3 = vector.load %arg1[%c0, %c0_1] : memref<64x16xf32, #tpu.memory_space<vmem>>, vector<64x16xf32>
    %4 = arith.truncf %3 : vector<64x16xf32> to vector<64x16xbf16>
    %c0_2 = arith.constant 0 : index
    %c0_3 = arith.constant 0 : index
    %5 = vector.load %arg2[%c0_2, %c0_3] : memref<16x384xbf16, #tpu.memory_space<vmem>>, vector<16x384xbf16>
    %cst = arith.constant dense<0.000000e+00> : vector<64x384xf32>
    %6 = tpu.matmul %4, %5, %cst {dimension_numbers = #tpu.dot_dimension_numbers<[1], [0], [0], [1], [0, 0, 1, 1], [], []>} : vector<64x16xbf16>, vector<16x384xbf16>, vector<64x384xf32> -> vector<64x384xf32>
    %c0_4 = arith.constant 0 : index
    %c0_5 = arith.constant 0 : index
    %7 = vector.load %arg4[%c0_4, %c0_5] : memref<1x384xf32, #tpu.memory_space<vmem>>, vector<1x384xf32>
    %8 = vector.broadcast %7 : vector<1x384xf32> to vector<64x384xf32>
    %9 = arith.addf %6, %8 : vector<64x384xf32>
    %c0_6 = arith.constant 0 : index
    %c0_7 = arith.constant 0 : index
    %10 = vector.load %arg8[%c0_6, %c0_7] : memref<64x384xf32, #tpu.memory_space<vmem>>, vector<64x384xf32>
    tpu.vector_store %arg8[%c0_6, %c0_7], %9 {strides = array<i32>} : memref<64x384xf32, #tpu.memory_space<vmem>>, vector<64x384xf32>,
    %c0_8 = arith.constant 0 : index
    %c0_9 = arith.constant 0 : index
    %11 = vector.load %arg3[%c0_8, %c0_9] : memref<128x384xbf16, #tpu.memory_space<vmem>>, vector<128x384xbf16>
    %c0_10 = arith.constant 0 : index
    %c0_11 = arith.constant 0 : index
    %12 = vector.load %arg5[%c0_10, %c0_11] : memref<1x128xf32, #tpu.memory_space<vmem>>, vector<1x128xf32>
    %13 = vector.shape_cast %12 : vector<1x128xf32> to vector<1x128xf32>
    %14 = vector.broadcast %13 : vector<1x128xf32> to vector<8x128xf32>
    %c0_12 = arith.constant 0 : index
    %c0_13 = arith.constant 0 : index
    %15 = vector.load %arg7[%c0_12, %c0_13] : memref<8x128xf32, #tpu.memory_space<vmem>>, vector<8x128xf32>
    %c0_i32_14 = arith.constant 0 : i32
    %c8_i32 = arith.constant 8 : i32
    %16 = arith.muli %c0_i32_14, %c8_i32 : i32
    %17 = tpu.assume_multiple %16, 8 : i32
    %18 = arith.index_cast %17 : i32 to index
    %c0_15 = arith.constant 0 : index
    %19 = vector.load %arg8[%18, %c0_15] : memref<64x384xf32, #tpu.memory_space<vmem>>, vector<8x384xf32>
    %20 = arith.truncf %15 : vector<8x128xf32> to vector<8x128xbf16>
    %cst_16 = arith.constant dense<0.000000e+00> : vector<8x384xf32>
    %21 = tpu.matmul %20, %11, %cst_16 {dimension_numbers = #tpu.dot_dimension_numbers<[1], [0], [0], [1], [0, 0, 1, 1], [], []>} : vector<8x128xbf16>, vector<128x384xbf16>, vector<8x384xf32> -> vector<8x384xf32>
    %22 = vector.extract_strided_slice %19 {offsets = [0, 0], sizes = [8, 256], strides = [1, 1]} : vector<8x384xf32> to vector<8x256xf32>
    %23 = vector.extract_strided_slice %21 {offsets = [0, 0], sizes = [8, 256], strides = [1, 1]} : vector<8x384xf32> to vector<8x256xf32>
    %24 = arith.addf %22, %23 : vector<8x256xf32>
    %25 = vector.extract_strided_slice %24 {offsets = [0, 0], sizes = [8, 128], strides = [1, 1]} : vector<8x256xf32> to vector<8x128xf32>
    %26 = arith.negf %25 : vector<8x128xf32>
    %27 = math.exp %26 : vector<8x128xf32>
    %cst_17 = arith.constant 1.000000e+00 : f32
    %28 = vector.broadcast %cst_17 : f32 to vector<8x128xf32>
    %29 = arith.addf %28, %27 : vector<8x128xf32>
    %30 = arith.divf %28, %29 : vector<8x128xf32>
    %31 = vector.extract_strided_slice %24 {offsets = [0, 128], sizes = [8, 128], strides = [1, 1]} : vector<8x256xf32> to vector<8x128xf32>
    %32 = arith.negf %31 : vector<8x128xf32>
    %33 = math.exp %32 : vector<8x128xf32>
    %cst_18 = arith.constant 1.000000e+00 : f32
    %34 = vector.broadcast %cst_18 : f32 to vector<8x128xf32>
    %35 = arith.addf %34, %33 : vector<8x128xf32>
    %36 = arith.divf %34, %35 : vector<8x128xf32>
    %37 = vector.extract_strided_slice %19 {offsets = [0, 256], sizes = [8, 128], strides = [1, 1]} : vector<8x384xf32> to vector<8x128xf32>
    %38 = vector.extract_strided_slice %21 {offsets = [0, 256], sizes = [8, 128], strides = [1, 1]} : vector<8x384xf32> to vector<8x128xf32>
    %39 = arith.addf %38, %14 : vector<8x128xf32>
    %40 = arith.mulf %30, %39 : vector<8x128xf32>
    %41 = arith.addf %37, %40 : vector<8x128xf32>
    %42 = math.tanh %41 : vector<8x128xf32>
    %cst_19 = arith.constant 1.000000e+00 : f32
    %43 = vector.broadcast %cst_19 : f32 to vector<8x128xf32>
    %44 = arith.subf %43, %36 : vector<8x128xf32>
    %45 = arith.mulf %44, %42 : vector<8x128xf32>
    %46 = arith.mulf %36, %15 : vector<8x128xf32>
    %47 = arith.addf %45, %46 : vector<8x128xf32>
    %48 = arith.index_cast %17 : i32 to index
    %c0_20 = arith.constant 0 : index
    %49 = vector.load %arg6[%48, %c0_20] : memref<64x128xf32, #tpu.memory_space<vmem>>, vector<8x128xf32>
    tpu.vector_store %arg6[%48, %c0_20], %47 {strides = array<i32>} : memref<64x128xf32, #tpu.memory_space<vmem>>, vector<8x128xf32>,
    %c1_i32 = arith.constant 1 : i32
    %c8_i32_21 = arith.constant 8 : i32
    %50 = arith.muli %c1_i32, %c8_i32_21 : i32
    %51 = tpu.assume_multiple %50, 8 : i32
    %52 = arith.index_cast %51 : i32 to index
    %c0_22 = arith.constant 0 : index
    %53 = vector.load %arg8[%52, %c0_22] : memref<64x384xf32, #tpu.memory_space<vmem>>, vector<8x384xf32>
    %54 = arith.truncf %47 : vector<8x128xf32> to vector<8x128xbf16>
    %cst_23 = arith.constant dense<0.000000e+00> : vector<8x384xf32>
    %55 = tpu.matmul %54, %11, %cst_23 {dimension_numbers = #tpu.dot_dimension_numbers<[1], [0], [0], [1], [0, 0, 1, 1], [], []>} : vector<8x128xbf16>, vector<128x384xbf16>, vector<8x384xf32> -> vector<8x384xf32>
    %56 = vector.extract_strided_slice %53 {offsets = [0, 0], sizes = [8, 256], strides = [1, 1]} : vector<8x384xf32> to vector<8x256xf32>
    %57 = vector.extract_strided_slice %55 {offsets = [0, 0], sizes = [8, 256], strides = [1, 1]} : vector<8x384xf32> to vector<8x256xf32>
    %58 = arith.addf %56, %57 : vector<8x256xf32>
    %59 = vector.extract_strided_slice %58 {offsets = [0, 0], sizes = [8, 128], strides = [1, 1]} : vector<8x256xf32> to vector<8x128xf32>
    %60 = arith.negf %59 : vector<8x128xf32>
    %61 = math.exp %60 : vector<8x128xf32>
    %cst_24 = arith.constant 1.000000e+00 : f32
    %62 = vector.broadcast %cst_24 : f32 to vector<8x128xf32>
    %63 = arith.addf %62, %61 : vector<8x128xf32>
    %64 = arith.divf %62, %63 : vector<8x128xf32>
    %65 = vector.extract_strided_slice %58 {offsets = [0, 128], sizes = [8, 128], strides = [1, 1]} : vector<8x256xf32> to vector<8x128xf32>
    %66 = arith.negf %65 : vector<8x128xf32>
    %67 = math.exp %66 : vector<8x128xf32>
    %cst_25 = arith.constant 1.000000e+00 : f32
    %68 = vector.broadcast %cst_25 : f32 to vector<8x128xf32>
    %69 = arith.addf %68, %67 : vector<8x128xf32>
    %70 = arith.divf %68, %69 : vector<8x128xf32>
    %71 = vector.extract_strided_slice %53 {offsets = [0, 256], sizes = [8, 128], strides = [1, 1]} : vector<8x384xf32> to vector<8x128xf32>
    %72 = vector.extract_strided_slice %55 {offsets = [0, 256], sizes = [8, 128], strides = [1, 1]} : vector<8x384xf32> to vector<8x128xf32>
    %73 = arith.addf %72, %14 : vector<8x128xf32>
    %74 = arith.mulf %64, %73 : vector<8x128xf32>
    %75 = arith.addf %71, %74 : vector<8x128xf32>
    %76 = math.tanh %75 : vector<8x128xf32>
    %cst_26 = arith.constant 1.000000e+00 : f32
    %77 = vector.broadcast %cst_26 : f32 to vector<8x128xf32>
    %78 = arith.subf %77, %70 : vector<8x128xf32>
    %79 = arith.mulf %78, %76 : vector<8x128xf32>
    %80 = arith.mulf %70, %47 : vector<8x128xf32>
    %81 = arith.addf %79, %80 : vector<8x128xf32>
    %82 = arith.index_cast %51 : i32 to index
    %c0_27 = arith.constant 0 : index
    %83 = vector.load %arg6[%82, %c0_27] : memref<64x128xf32, #tpu.memory_space<vmem>>, vector<8x128xf32>
    tpu.vector_store %arg6[%82, %c0_27], %81 {strides = array<i32>} : memref<64x128xf32, #tpu.memory_space<vmem>>, vector<8x128xf32>,
    %c2_i32 = arith.constant 2 : i32
    %c8_i32_28 = arith.constant 8 : i32
    %84 = arith.muli %c2_i32, %c8_i32_28 : i32
    %85 = tpu.assume_multiple %84, 8 : i32
    %86 = arith.index_cast %85 : i32 to index
    %c0_29 = arith.constant 0 : index
    %87 = vector.load %arg8[%86, %c0_29] : memref<64x384xf32, #tpu.memory_space<vmem>>, vector<8x384xf32>
    %88 = arith.truncf %81 : vector<8x128xf32> to vector<8x128xbf16>
    %cst_30 = arith.constant dense<0.000000e+00> : vector<8x384xf32>
    %89 = tpu.matmul %88, %11, %cst_30 {dimension_numbers = #tpu.dot_dimension_numbers<[1], [0], [0], [1], [0, 0, 1, 1], [], []>} : vector<8x128xbf16>, vector<128x384xbf16>, vector<8x384xf32> -> vector<8x384xf32>
    %90 = vector.extract_strided_slice %87 {offsets = [0, 0], sizes = [8, 256], strides = [1, 1]} : vector<8x384xf32> to vector<8x256xf32>
    %91 = vector.extract_strided_slice %89 {offsets = [0, 0], sizes = [8, 256], strides = [1, 1]} : vector<8x384xf32> to vector<8x256xf32>
    %92 = arith.addf %90, %91 : vector<8x256xf32>
    %93 = vector.extract_strided_slice %92 {offsets = [0, 0], sizes = [8, 128], strides = [1, 1]} : vector<8x256xf32> to vector<8x128xf32>
    %94 = arith.negf %93 : vector<8x128xf32>
    %95 = math.exp %94 : vector<8x128xf32>
    %cst_31 = arith.constant 1.000000e+00 : f32
    %96 = vector.broadcast %cst_31 : f32 to vector<8x128xf32>
    %97 = arith.addf %96, %95 : vector<8x128xf32>
    %98 = arith.divf %96, %97 : vector<8x128xf32>
    %99 = vector.extract_strided_slice %92 {offsets = [0, 128], sizes = [8, 128], strides = [1, 1]} : vector<8x256xf32> to vector<8x128xf32>
    %100 = arith.negf %99 : vector<8x128xf32>
    %101 = math.exp %100 : vector<8x128xf32>
    %cst_32 = arith.constant 1.000000e+00 : f32
    %102 = vector.broadcast %cst_32 : f32 to vector<8x128xf32>
    %103 = arith.addf %102, %101 : vector<8x128xf32>
    %104 = arith.divf %102, %103 : vector<8x128xf32>
    %105 = vector.extract_strided_slice %87 {offsets = [0, 256], sizes = [8, 128], strides = [1, 1]} : vector<8x384xf32> to vector<8x128xf32>
    %106 = vector.extract_strided_slice %89 {offsets = [0, 256], sizes = [8, 128], strides = [1, 1]} : vector<8x384xf32> to vector<8x128xf32>
    %107 = arith.addf %106, %14 : vector<8x128xf32>
    %108 = arith.mulf %98, %107 : vector<8x128xf32>
    %109 = arith.addf %105, %108 : vector<8x128xf32>
    %110 = math.tanh %109 : vector<8x128xf32>
    %cst_33 = arith.constant 1.000000e+00 : f32
    %111 = vector.broadcast %cst_33 : f32 to vector<8x128xf32>
    %112 = arith.subf %111, %104 : vector<8x128xf32>
    %113 = arith.mulf %112, %110 : vector<8x128xf32>
    %114 = arith.mulf %104, %81 : vector<8x128xf32>
    %115 = arith.addf %113, %114 : vector<8x128xf32>
    %116 = arith.index_cast %85 : i32 to index
    %c0_34 = arith.constant 0 : index
    %117 = vector.load %arg6[%116, %c0_34] : memref<64x128xf32, #tpu.memory_space<vmem>>, vector<8x128xf32>
    tpu.vector_store %arg6[%116, %c0_34], %115 {strides = array<i32>} : memref<64x128xf32, #tpu.memory_space<vmem>>, vector<8x128xf32>,
    %c3_i32 = arith.constant 3 : i32
    %c8_i32_35 = arith.constant 8 : i32
    %118 = arith.muli %c3_i32, %c8_i32_35 : i32
    %119 = tpu.assume_multiple %118, 8 : i32
    %120 = arith.index_cast %119 : i32 to index
    %c0_36 = arith.constant 0 : index
    %121 = vector.load %arg8[%120, %c0_36] : memref<64x384xf32, #tpu.memory_space<vmem>>, vector<8x384xf32>
    %122 = arith.truncf %115 : vector<8x128xf32> to vector<8x128xbf16>
    %cst_37 = arith.constant dense<0.000000e+00> : vector<8x384xf32>
    %123 = tpu.matmul %122, %11, %cst_37 {dimension_numbers = #tpu.dot_dimension_numbers<[1], [0], [0], [1], [0, 0, 1, 1], [], []>} : vector<8x128xbf16>, vector<128x384xbf16>, vector<8x384xf32> -> vector<8x384xf32>
    %124 = vector.extract_strided_slice %121 {offsets = [0, 0], sizes = [8, 256], strides = [1, 1]} : vector<8x384xf32> to vector<8x256xf32>
    %125 = vector.extract_strided_slice %123 {offsets = [0, 0], sizes = [8, 256], strides = [1, 1]} : vector<8x384xf32> to vector<8x256xf32>
    %126 = arith.addf %124, %125 : vector<8x256xf32>
    %127 = vector.extract_strided_slice %126 {offsets = [0, 0], sizes = [8, 128], strides = [1, 1]} : vector<8x256xf32> to vector<8x128xf32>
    %128 = arith.negf %127 : vector<8x128xf32>
    %129 = math.exp %128 : vector<8x128xf32>
    %cst_38 = arith.constant 1.000000e+00 : f32
    %130 = vector.broadcast %cst_38 : f32 to vector<8x128xf32>
    %131 = arith.addf %130, %129 : vector<8x128xf32>
    %132 = arith.divf %130, %131 : vector<8x128xf32>
    %133 = vector.extract_strided_slice %126 {offsets = [0, 128], sizes = [8, 128], strides = [1, 1]} : vector<8x256xf32> to vector<8x128xf32>
    %134 = arith.negf %133 : vector<8x128xf32>
    %135 = math.exp %134 : vector<8x128xf32>
    %cst_39 = arith.constant 1.000000e+00 : f32
    %136 = vector.broadcast %cst_39 : f32 to vector<8x128xf32>
    %137 = arith.addf %136, %135 : vector<8x128xf32>
    %138 = arith.divf %136, %137 : vector<8x128xf32>
    %139 = vector.extract_strided_slice %121 {offsets = [0, 256], sizes = [8, 128], strides = [1, 1]} : vector<8x384xf32> to vector<8x128xf32>
    %140 = vector.extract_strided_slice %123 {offsets = [0, 256], sizes = [8, 128], strides = [1, 1]} : vector<8x384xf32> to vector<8x128xf32>
    %141 = arith.addf %140, %14 : vector<8x128xf32>
    %142 = arith.mulf %132, %141 : vector<8x128xf32>
    %143 = arith.addf %139, %142 : vector<8x128xf32>
    %144 = math.tanh %143 : vector<8x128xf32>
    %cst_40 = arith.constant 1.000000e+00 : f32
    %145 = vector.broadcast %cst_40 : f32 to vector<8x128xf32>
    %146 = arith.subf %145, %138 : vector<8x128xf32>
    %147 = arith.mulf %146, %144 : vector<8x128xf32>
    %148 = arith.mulf %138, %115 : vector<8x128xf32>
    %149 = arith.addf %147, %148 : vector<8x128xf32>
    %150 = arith.index_cast %119 : i32 to index
    %c0_41 = arith.constant 0 : index
    %151 = vector.load %arg6[%150, %c0_41] : memref<64x128xf32, #tpu.memory_space<vmem>>, vector<8x128xf32>
    tpu.vector_store %arg6[%150, %c0_41], %149 {strides = array<i32>} : memref<64x128xf32, #tpu.memory_space<vmem>>, vector<8x128xf32>,
    %c4_i32 = arith.constant 4 : i32
    %c8_i32_42 = arith.constant 8 : i32
    %152 = arith.muli %c4_i32, %c8_i32_42 : i32
    %153 = tpu.assume_multiple %152, 8 : i32
    %154 = arith.index_cast %153 : i32 to index
    %c0_43 = arith.constant 0 : index
    %155 = vector.load %arg8[%154, %c0_43] : memref<64x384xf32, #tpu.memory_space<vmem>>, vector<8x384xf32>
    %156 = arith.truncf %149 : vector<8x128xf32> to vector<8x128xbf16>
    %cst_44 = arith.constant dense<0.000000e+00> : vector<8x384xf32>
    %157 = tpu.matmul %156, %11, %cst_44 {dimension_numbers = #tpu.dot_dimension_numbers<[1], [0], [0], [1], [0, 0, 1, 1], [], []>} : vector<8x128xbf16>, vector<128x384xbf16>, vector<8x384xf32> -> vector<8x384xf32>
    %158 = vector.extract_strided_slice %155 {offsets = [0, 0], sizes = [8, 256], strides = [1, 1]} : vector<8x384xf32> to vector<8x256xf32>
    %159 = vector.extract_strided_slice %157 {offsets = [0, 0], sizes = [8, 256], strides = [1, 1]} : vector<8x384xf32> to vector<8x256xf32>
    %160 = arith.addf %158, %159 : vector<8x256xf32>
    %161 = vector.extract_strided_slice %160 {offsets = [0, 0], sizes = [8, 128], strides = [1, 1]} : vector<8x256xf32> to vector<8x128xf32>
    %162 = arith.negf %161 : vector<8x128xf32>
    %163 = math.exp %162 : vector<8x128xf32>
    %cst_45 = arith.constant 1.000000e+00 : f32
    %164 = vector.broadcast %cst_45 : f32 to vector<8x128xf32>
    %165 = arith.addf %164, %163 : vector<8x128xf32>
    %166 = arith.divf %164, %165 : vector<8x128xf32>
    %167 = vector.extract_strided_slice %160 {offsets = [0, 128], sizes = [8, 128], strides = [1, 1]} : vector<8x256xf32> to vector<8x128xf32>
    %168 = arith.negf %167 : vector<8x128xf32>
    %169 = math.exp %168 : vector<8x128xf32>
    %cst_46 = arith.constant 1.000000e+00 : f32
    %170 = vector.broadcast %cst_46 : f32 to vector<8x128xf32>
    %171 = arith.addf %170, %169 : vector<8x128xf32>
    %172 = arith.divf %170, %171 : vector<8x128xf32>
    %173 = vector.extract_strided_slice %155 {offsets = [0, 256], sizes = [8, 128], strides = [1, 1]} : vector<8x384xf32> to vector<8x128xf32>
    %174 = vector.extract_strided_slice %157 {offsets = [0, 256], sizes = [8, 128], strides = [1, 1]} : vector<8x384xf32> to vector<8x128xf32>
    %175 = arith.addf %174, %14 : vector<8x128xf32>
    %176 = arith.mulf %166, %175 : vector<8x128xf32>
    %177 = arith.addf %173, %176 : vector<8x128xf32>
    %178 = math.tanh %177 : vector<8x128xf32>
    %cst_47 = arith.constant 1.000000e+00 : f32
    %179 = vector.broadcast %cst_47 : f32 to vector<8x128xf32>
    %180 = arith.subf %179, %172 : vector<8x128xf32>
    %181 = arith.mulf %180, %178 : vector<8x128xf32>
    %182 = arith.mulf %172, %149 : vector<8x128xf32>
    %183 = arith.addf %181, %182 : vector<8x128xf32>
    %184 = arith.index_cast %153 : i32 to index
    %c0_48 = arith.constant 0 : index
    %185 = vector.load %arg6[%184, %c0_48] : memref<64x128xf32, #tpu.memory_space<vmem>>, vector<8x128xf32>
    tpu.vector_store %arg6[%184, %c0_48], %183 {strides = array<i32>} : memref<64x128xf32, #tpu.memory_space<vmem>>, vector<8x128xf32>,
    %c5_i32 = arith.constant 5 : i32
    %c8_i32_49 = arith.constant 8 : i32
    %186 = arith.muli %c5_i32, %c8_i32_49 : i32
    %187 = tpu.assume_multiple %186, 8 : i32
    %188 = arith.index_cast %187 : i32 to index
    %c0_50 = arith.constant 0 : index
    %189 = vector.load %arg8[%188, %c0_50] : memref<64x384xf32, #tpu.memory_space<vmem>>, vector<8x384xf32>
    %190 = arith.truncf %183 : vector<8x128xf32> to vector<8x128xbf16>
    %cst_51 = arith.constant dense<0.000000e+00> : vector<8x384xf32>
    %191 = tpu.matmul %190, %11, %cst_51 {dimension_numbers = #tpu.dot_dimension_numbers<[1], [0], [0], [1], [0, 0, 1, 1], [], []>} : vector<8x128xbf16>, vector<128x384xbf16>, vector<8x384xf32> -> vector<8x384xf32>
    %192 = vector.extract_strided_slice %189 {offsets = [0, 0], sizes = [8, 256], strides = [1, 1]} : vector<8x384xf32> to vector<8x256xf32>
    %193 = vector.extract_strided_slice %191 {offsets = [0, 0], sizes = [8, 256], strides = [1, 1]} : vector<8x384xf32> to vector<8x256xf32>
    %194 = arith.addf %192, %193 : vector<8x256xf32>
    %195 = vector.extract_strided_slice %194 {offsets = [0, 0], sizes = [8, 128], strides = [1, 1]} : vector<8x256xf32> to vector<8x128xf32>
    %196 = arith.negf %195 : vector<8x128xf32>
    %197 = math.exp %196 : vector<8x128xf32>
    %cst_52 = arith.constant 1.000000e+00 : f32
    %198 = vector.broadcast %cst_52 : f32 to vector<8x128xf32>
    %199 = arith.addf %198, %197 : vector<8x128xf32>
    %200 = arith.divf %198, %199 : vector<8x128xf32>
    %201 = vector.extract_strided_slice %194 {offsets = [0, 128], sizes = [8, 128], strides = [1, 1]} : vector<8x256xf32> to vector<8x128xf32>
    %202 = arith.negf %201 : vector<8x128xf32>
    %203 = math.exp %202 : vector<8x128xf32>
    %cst_53 = arith.constant 1.000000e+00 : f32
    %204 = vector.broadcast %cst_53 : f32 to vector<8x128xf32>
    %205 = arith.addf %204, %203 : vector<8x128xf32>
    %206 = arith.divf %204, %205 : vector<8x128xf32>
    %207 = vector.extract_strided_slice %189 {offsets = [0, 256], sizes = [8, 128], strides = [1, 1]} : vector<8x384xf32> to vector<8x128xf32>
    %208 = vector.extract_strided_slice %191 {offsets = [0, 256], sizes = [8, 128], strides = [1, 1]} : vector<8x384xf32> to vector<8x128xf32>
    %209 = arith.addf %208, %14 : vector<8x128xf32>
    %210 = arith.mulf %200, %209 : vector<8x128xf32>
    %211 = arith.addf %207, %210 : vector<8x128xf32>
    %212 = math.tanh %211 : vector<8x128xf32>
    %cst_54 = arith.constant 1.000000e+00 : f32
    %213 = vector.broadcast %cst_54 : f32 to vector<8x128xf32>
    %214 = arith.subf %213, %206 : vector<8x128xf32>
    %215 = arith.mulf %214, %212 : vector<8x128xf32>
    %216 = arith.mulf %206, %183 : vector<8x128xf32>
    %217 = arith.addf %215, %216 : vector<8x128xf32>
    %218 = arith.index_cast %187 : i32 to index
    %c0_55 = arith.constant 0 : index
    %219 = vector.load %arg6[%218, %c0_55] : memref<64x128xf32, #tpu.memory_space<vmem>>, vector<8x128xf32>
    tpu.vector_store %arg6[%218, %c0_55], %217 {strides = array<i32>} : memref<64x128xf32, #tpu.memory_space<vmem>>, vector<8x128xf32>,
    %c6_i32 = arith.constant 6 : i32
    %c8_i32_56 = arith.constant 8 : i32
    %220 = arith.muli %c6_i32, %c8_i32_56 : i32
    %221 = tpu.assume_multiple %220, 8 : i32
    %222 = arith.index_cast %221 : i32 to index
    %c0_57 = arith.constant 0 : index
    %223 = vector.load %arg8[%222, %c0_57] : memref<64x384xf32, #tpu.memory_space<vmem>>, vector<8x384xf32>
    %224 = arith.truncf %217 : vector<8x128xf32> to vector<8x128xbf16>
    %cst_58 = arith.constant dense<0.000000e+00> : vector<8x384xf32>
    %225 = tpu.matmul %224, %11, %cst_58 {dimension_numbers = #tpu.dot_dimension_numbers<[1], [0], [0], [1], [0, 0, 1, 1], [], []>} : vector<8x128xbf16>, vector<128x384xbf16>, vector<8x384xf32> -> vector<8x384xf32>
    %226 = vector.extract_strided_slice %223 {offsets = [0, 0], sizes = [8, 256], strides = [1, 1]} : vector<8x384xf32> to vector<8x256xf32>
    %227 = vector.extract_strided_slice %225 {offsets = [0, 0], sizes = [8, 256], strides = [1, 1]} : vector<8x384xf32> to vector<8x256xf32>
    %228 = arith.addf %226, %227 : vector<8x256xf32>
    %229 = vector.extract_strided_slice %228 {offsets = [0, 0], sizes = [8, 128], strides = [1, 1]} : vector<8x256xf32> to vector<8x128xf32>
    %230 = arith.negf %229 : vector<8x128xf32>
    %231 = math.exp %230 : vector<8x128xf32>
    %cst_59 = arith.constant 1.000000e+00 : f32
    %232 = vector.broadcast %cst_59 : f32 to vector<8x128xf32>
    %233 = arith.addf %232, %231 : vector<8x128xf32>
    %234 = arith.divf %232, %233 : vector<8x128xf32>
    %235 = vector.extract_strided_slice %228 {offsets = [0, 128], sizes = [8, 128], strides = [1, 1]} : vector<8x256xf32> to vector<8x128xf32>
    %236 = arith.negf %235 : vector<8x128xf32>
    %237 = math.exp %236 : vector<8x128xf32>
    %cst_60 = arith.constant 1.000000e+00 : f32
    %238 = vector.broadcast %cst_60 : f32 to vector<8x128xf32>
    %239 = arith.addf %238, %237 : vector<8x128xf32>
    %240 = arith.divf %238, %239 : vector<8x128xf32>
    %241 = vector.extract_strided_slice %223 {offsets = [0, 256], sizes = [8, 128], strides = [1, 1]} : vector<8x384xf32> to vector<8x128xf32>
    %242 = vector.extract_strided_slice %225 {offsets = [0, 256], sizes = [8, 128], strides = [1, 1]} : vector<8x384xf32> to vector<8x128xf32>
    %243 = arith.addf %242, %14 : vector<8x128xf32>
    %244 = arith.mulf %234, %243 : vector<8x128xf32>
    %245 = arith.addf %241, %244 : vector<8x128xf32>
    %246 = math.tanh %245 : vector<8x128xf32>
    %cst_61 = arith.constant 1.000000e+00 : f32
    %247 = vector.broadcast %cst_61 : f32 to vector<8x128xf32>
    %248 = arith.subf %247, %240 : vector<8x128xf32>
    %249 = arith.mulf %248, %246 : vector<8x128xf32>
    %250 = arith.mulf %240, %217 : vector<8x128xf32>
    %251 = arith.addf %249, %250 : vector<8x128xf32>
    %252 = arith.index_cast %221 : i32 to index
    %c0_62 = arith.constant 0 : index
    %253 = vector.load %arg6[%252, %c0_62] : memref<64x128xf32, #tpu.memory_space<vmem>>, vector<8x128xf32>
    tpu.vector_store %arg6[%252, %c0_62], %251 {strides = array<i32>} : memref<64x128xf32, #tpu.memory_space<vmem>>, vector<8x128xf32>,
    %c7_i32 = arith.constant 7 : i32
    %c8_i32_63 = arith.constant 8 : i32
    %254 = arith.muli %c7_i32, %c8_i32_63 : i32
    %255 = tpu.assume_multiple %254, 8 : i32
    %256 = arith.index_cast %255 : i32 to index
    %c0_64 = arith.constant 0 : index
    %257 = vector.load %arg8[%256, %c0_64] : memref<64x384xf32, #tpu.memory_space<vmem>>, vector<8x384xf32>
    %258 = arith.truncf %251 : vector<8x128xf32> to vector<8x128xbf16>
    %cst_65 = arith.constant dense<0.000000e+00> : vector<8x384xf32>
    %259 = tpu.matmul %258, %11, %cst_65 {dimension_numbers = #tpu.dot_dimension_numbers<[1], [0], [0], [1], [0, 0, 1, 1], [], []>} : vector<8x128xbf16>, vector<128x384xbf16>, vector<8x384xf32> -> vector<8x384xf32>
    %260 = vector.extract_strided_slice %257 {offsets = [0, 0], sizes = [8, 256], strides = [1, 1]} : vector<8x384xf32> to vector<8x256xf32>
    %261 = vector.extract_strided_slice %259 {offsets = [0, 0], sizes = [8, 256], strides = [1, 1]} : vector<8x384xf32> to vector<8x256xf32>
    %262 = arith.addf %260, %261 : vector<8x256xf32>
    %263 = vector.extract_strided_slice %262 {offsets = [0, 0], sizes = [8, 128], strides = [1, 1]} : vector<8x256xf32> to vector<8x128xf32>
    %264 = arith.negf %263 : vector<8x128xf32>
    %265 = math.exp %264 : vector<8x128xf32>
    %cst_66 = arith.constant 1.000000e+00 : f32
    %266 = vector.broadcast %cst_66 : f32 to vector<8x128xf32>
    %267 = arith.addf %266, %265 : vector<8x128xf32>
    %268 = arith.divf %266, %267 : vector<8x128xf32>
    %269 = vector.extract_strided_slice %262 {offsets = [0, 128], sizes = [8, 128], strides = [1, 1]} : vector<8x256xf32> to vector<8x128xf32>
    %270 = arith.negf %269 : vector<8x128xf32>
    %271 = math.exp %270 : vector<8x128xf32>
    %cst_67 = arith.constant 1.000000e+00 : f32
    %272 = vector.broadcast %cst_67 : f32 to vector<8x128xf32>
    %273 = arith.addf %272, %271 : vector<8x128xf32>
    %274 = arith.divf %272, %273 : vector<8x128xf32>
    %275 = vector.extract_strided_slice %257 {offsets = [0, 256], sizes = [8, 128], strides = [1, 1]} : vector<8x384xf32> to vector<8x128xf32>
    %276 = vector.extract_strided_slice %259 {offsets = [0, 256], sizes = [8, 128], strides = [1, 1]} : vector<8x384xf32> to vector<8x128xf32>
    %277 = arith.addf %276, %14 : vector<8x128xf32>
    %278 = arith.mulf %268, %277 : vector<8x128xf32>
    %279 = arith.addf %275, %278 : vector<8x128xf32>
    %280 = math.tanh %279 : vector<8x128xf32>
    %cst_68 = arith.constant 1.000000e+00 : f32
    %281 = vector.broadcast %cst_68 : f32 to vector<8x128xf32>
    %282 = arith.subf %281, %274 : vector<8x128xf32>
    %283 = arith.mulf %282, %280 : vector<8x128xf32>
    %284 = arith.mulf %274, %251 : vector<8x128xf32>
    %285 = arith.addf %283, %284 : vector<8x128xf32>
    %286 = arith.index_cast %255 : i32 to index
    %c0_69 = arith.constant 0 : index
    %287 = vector.load %arg6[%286, %c0_69] : memref<64x128xf32, #tpu.memory_space<vmem>>, vector<8x128xf32>
    tpu.vector_store %arg6[%286, %c0_69], %285 {strides = array<i32>} : memref<64x128xf32, #tpu.memory_space<vmem>>, vector<8x128xf32>,
    %c8_i32_70 = arith.constant 8 : i32
    %c0_71 = arith.constant 0 : index
    %c0_72 = arith.constant 0 : index
    %288 = vector.load %arg7[%c0_71, %c0_72] : memref<8x128xf32, #tpu.memory_space<vmem>>, vector<8x128xf32>
    tpu.vector_store %arg7[%c0_71, %c0_72], %285 {strides = array<i32>} : memref<8x128xf32, #tpu.memory_space<vmem>>, vector<8x128xf32>,
    return
  }
  func.func @transform_0(%arg0: i32) -> (i32, i32) {
    %c0_i32 = arith.constant 0 : i32
    %c0_i32_0 = arith.constant 0 : i32
    return %arg0, %c0_i32 : i32, i32
  }
  func.func @transform_1(%arg0: i32) -> (i32, i32) {
    %c0_i32 = arith.constant 0 : i32
    %c0_i32_0 = arith.constant 0 : i32
    %c0_i32_1 = arith.constant 0 : i32
    return %c0_i32, %c0_i32_0 : i32, i32
  }
  func.func @transform_2(%arg0: i32) -> (i32, i32) {
    %c0_i32 = arith.constant 0 : i32
    %c0_i32_0 = arith.constant 0 : i32
    %c0_i32_1 = arith.constant 0 : i32
    return %c0_i32, %c0_i32_0 : i32, i32
  }
  func.func @transform_3(%arg0: i32) -> (i32, i32) {
    %c0_i32 = arith.constant 0 : i32
    %c0_i32_0 = arith.constant 0 : i32
    %c0_i32_1 = arith.constant 0 : i32
    return %c0_i32, %c0_i32_0 : i32, i32
  }
  func.func @transform_4(%arg0: i32) -> (i32, i32) {
    %c0_i32 = arith.constant 0 : i32
    %c0_i32_0 = arith.constant 0 : i32
    %c0_i32_1 = arith.constant 0 : i32
    return %c0_i32, %c0_i32_0 : i32, i32
  }
  func.func @transform_5(%arg0: i32) -> (i32, i32) {
    %c0_i32 = arith.constant 0 : i32
    %c0_i32_0 = arith.constant 0 : i32
    return %arg0, %c0_i32 : i32, i32
  }
}

module attributes {stable_mosaic.version = 11 : i64} {
  func.func @_gru_fused_layer_kernel(%arg0: i32, %arg1: memref<64x128xf32, #tpu.memory_space<vmem>>, %arg2: memref<128x384xbf16, #tpu.memory_space<vmem>>, %arg3: memref<128x384xbf16, #tpu.memory_space<vmem>>, %arg4: memref<1x384xf32, #tpu.memory_space<vmem>>, %arg5: memref<1x128xf32, #tpu.memory_space<vmem>>, %arg6: memref<64x128xf32, #tpu.memory_space<vmem>>, %arg7: memref<8x128xf32, #tpu.memory_space<vmem>>, %arg8: memref<64x384xf32, #tpu.memory_space<vmem>>) attributes {dimension_semantics = [#tpu.dimension_semantics<arbitrary>], iteration_bounds = array<i64: 1>, scalar_prefetch = 0 : i64, scratch_operands = 2 : i64, tpu.core_type = #tpu.core_type<tc>, window_params = [{transform_indices = @transform_0, window_bounds = array<i64: 64, 128>}, {pipeline_mode = #tpu.pipeline_mode<synchronous>, transform_indices = @transform_1, window_bounds = array<i64: 128, 384>}, {pipeline_mode = #tpu.pipeline_mode<synchronous>, transform_indices = @transform_2, window_bounds = array<i64: 128, 384>}, {pipeline_mode = #tpu.pipeline_mode<synchronous>, transform_indices = @transform_3, window_bounds = array<i64: 1, 384>}, {pipeline_mode = #tpu.pipeline_mode<synchronous>, transform_indices = @transform_4, window_bounds = array<i64: 1, 128>}, {transform_indices = @transform_5, window_bounds = array<i64: 64, 128>}]} {
    %c0_i32 = arith.constant 0 : i32
    %0 = arith.cmpi eq, %arg0, %c0_i32 : i32
    %1 = arith.extui %0 : i1 to i32
    %c0_i32_0 = arith.constant 0 : i32
    %2 = arith.cmpi ne, %1, %c0_i32_0 : i32
    scf.if %2 {
      %cst_73 = arith.constant 0.000000e+00 : f32
      %289 = vector.broadcast %cst_73 : f32 to vector<8x128xf32>
      %c0_74 = arith.constant 0 : index
      %c0_75 = arith.constant 0 : index
      %290 = vector.load %arg7[%c0_74, %c0_75] : memref<8x128xf32, #tpu.memory_space<vmem>>, vector<8x128xf32>
      tpu.vector_store %arg7[%c0_74, %c0_75], %289 {strides = array<i32>} : memref<8x128xf32, #tpu.memory_space<vmem>>, vector<8x128xf32>,
    } else {
    }
    %c0 = arith.constant 0 : index
    %c0_1 = arith.constant 0 : index
    %3 = vector.load %arg1[%c0, %c0_1] : memref<64x128xf32, #tpu.memory_space<vmem>>, vector<64x128xf32>
    %4 = arith.truncf %3 : vector<64x128xf32> to vector<64x128xbf16>
    %c0_2 = arith.constant 0 : index
    %c0_3 = arith.constant 0 : index
    %5 = vector.load %arg2[%c0_2, %c0_3] : memref<128x384xbf16, #tpu.memory_space<vmem>>, vector<128x384xbf16>
    %cst = arith.constant dense<0.000000e+00> : vector<64x384xf32>
    %6 = tpu.matmul %4, %5, %cst {dimension_numbers = #tpu.dot_dimension_numbers<[1], [0], [0], [1], [0, 0, 1, 1], [], []>} : vector<64x128xbf16>, vector<128x384xbf16>, vector<64x384xf32> -> vector<64x384xf32>
    %c0_4 = arith.constant 0 : index
    %c0_5 = arith.constant 0 : index
    %7 = vector.load %arg4[%c0_4, %c0_5] : memref<1x384xf32, #tpu.memory_space<vmem>>, vector<1x384xf32>
    %8 = vector.broadcast %7 : vector<1x384xf32> to vector<64x384xf32>
    %9 = arith.addf %6, %8 : vector<64x384xf32>
    %c0_6 = arith.constant 0 : index
    %c0_7 = arith.constant 0 : index
    %10 = vector.load %arg8[%c0_6, %c0_7] : memref<64x384xf32, #tpu.memory_space<vmem>>, vector<64x384xf32>
    tpu.vector_store %arg8[%c0_6, %c0_7], %9 {strides = array<i32>} : memref<64x384xf32, #tpu.memory_space<vmem>>, vector<64x384xf32>,
    %c0_8 = arith.constant 0 : index
    %c0_9 = arith.constant 0 : index
    %11 = vector.load %arg3[%c0_8, %c0_9] : memref<128x384xbf16, #tpu.memory_space<vmem>>, vector<128x384xbf16>
    %c0_10 = arith.constant 0 : index
    %c0_11 = arith.constant 0 : index
    %12 = vector.load %arg5[%c0_10, %c0_11] : memref<1x128xf32, #tpu.memory_space<vmem>>, vector<1x128xf32>
    %13 = vector.shape_cast %12 : vector<1x128xf32> to vector<1x128xf32>
    %14 = vector.broadcast %13 : vector<1x128xf32> to vector<8x128xf32>
    %c0_12 = arith.constant 0 : index
    %c0_13 = arith.constant 0 : index
    %15 = vector.load %arg7[%c0_12, %c0_13] : memref<8x128xf32, #tpu.memory_space<vmem>>, vector<8x128xf32>
    %c0_i32_14 = arith.constant 0 : i32
    %c8_i32 = arith.constant 8 : i32
    %16 = arith.muli %c0_i32_14, %c8_i32 : i32
    %17 = tpu.assume_multiple %16, 8 : i32
    %18 = arith.index_cast %17 : i32 to index
    %c0_15 = arith.constant 0 : index
    %19 = vector.load %arg8[%18, %c0_15] : memref<64x384xf32, #tpu.memory_space<vmem>>, vector<8x384xf32>
    %20 = arith.truncf %15 : vector<8x128xf32> to vector<8x128xbf16>
    %cst_16 = arith.constant dense<0.000000e+00> : vector<8x384xf32>
    %21 = tpu.matmul %20, %11, %cst_16 {dimension_numbers = #tpu.dot_dimension_numbers<[1], [0], [0], [1], [0, 0, 1, 1], [], []>} : vector<8x128xbf16>, vector<128x384xbf16>, vector<8x384xf32> -> vector<8x384xf32>
    %22 = vector.extract_strided_slice %19 {offsets = [0, 0], sizes = [8, 256], strides = [1, 1]} : vector<8x384xf32> to vector<8x256xf32>
    %23 = vector.extract_strided_slice %21 {offsets = [0, 0], sizes = [8, 256], strides = [1, 1]} : vector<8x384xf32> to vector<8x256xf32>
    %24 = arith.addf %22, %23 : vector<8x256xf32>
    %25 = vector.extract_strided_slice %24 {offsets = [0, 0], sizes = [8, 128], strides = [1, 1]} : vector<8x256xf32> to vector<8x128xf32>
    %26 = arith.negf %25 : vector<8x128xf32>
    %27 = math.exp %26 : vector<8x128xf32>
    %cst_17 = arith.constant 1.000000e+00 : f32
    %28 = vector.broadcast %cst_17 : f32 to vector<8x128xf32>
    %29 = arith.addf %28, %27 : vector<8x128xf32>
    %30 = arith.divf %28, %29 : vector<8x128xf32>
    %31 = vector.extract_strided_slice %24 {offsets = [0, 128], sizes = [8, 128], strides = [1, 1]} : vector<8x256xf32> to vector<8x128xf32>
    %32 = arith.negf %31 : vector<8x128xf32>
    %33 = math.exp %32 : vector<8x128xf32>
    %cst_18 = arith.constant 1.000000e+00 : f32
    %34 = vector.broadcast %cst_18 : f32 to vector<8x128xf32>
    %35 = arith.addf %34, %33 : vector<8x128xf32>
    %36 = arith.divf %34, %35 : vector<8x128xf32>
    %37 = vector.extract_strided_slice %19 {offsets = [0, 256], sizes = [8, 128], strides = [1, 1]} : vector<8x384xf32> to vector<8x128xf32>
    %38 = vector.extract_strided_slice %21 {offsets = [0, 256], sizes = [8, 128], strides = [1, 1]} : vector<8x384xf32> to vector<8x128xf32>
    %39 = arith.addf %38, %14 : vector<8x128xf32>
    %40 = arith.mulf %30, %39 : vector<8x128xf32>
    %41 = arith.addf %37, %40 : vector<8x128xf32>
    %42 = math.tanh %41 : vector<8x128xf32>
    %cst_19 = arith.constant 1.000000e+00 : f32
    %43 = vector.broadcast %cst_19 : f32 to vector<8x128xf32>
    %44 = arith.subf %43, %36 : vector<8x128xf32>
    %45 = arith.mulf %44, %42 : vector<8x128xf32>
    %46 = arith.mulf %36, %15 : vector<8x128xf32>
    %47 = arith.addf %45, %46 : vector<8x128xf32>
    %48 = arith.index_cast %17 : i32 to index
    %c0_20 = arith.constant 0 : index
    %49 = vector.load %arg6[%48, %c0_20] : memref<64x128xf32, #tpu.memory_space<vmem>>, vector<8x128xf32>
    tpu.vector_store %arg6[%48, %c0_20], %47 {strides = array<i32>} : memref<64x128xf32, #tpu.memory_space<vmem>>, vector<8x128xf32>,
    %c1_i32 = arith.constant 1 : i32
    %c8_i32_21 = arith.constant 8 : i32
    %50 = arith.muli %c1_i32, %c8_i32_21 : i32
    %51 = tpu.assume_multiple %50, 8 : i32
    %52 = arith.index_cast %51 : i32 to index
    %c0_22 = arith.constant 0 : index
    %53 = vector.load %arg8[%52, %c0_22] : memref<64x384xf32, #tpu.memory_space<vmem>>, vector<8x384xf32>
    %54 = arith.truncf %47 : vector<8x128xf32> to vector<8x128xbf16>
    %cst_23 = arith.constant dense<0.000000e+00> : vector<8x384xf32>
    %55 = tpu.matmul %54, %11, %cst_23 {dimension_numbers = #tpu.dot_dimension_numbers<[1], [0], [0], [1], [0, 0, 1, 1], [], []>} : vector<8x128xbf16>, vector<128x384xbf16>, vector<8x384xf32> -> vector<8x384xf32>
    %56 = vector.extract_strided_slice %53 {offsets = [0, 0], sizes = [8, 256], strides = [1, 1]} : vector<8x384xf32> to vector<8x256xf32>
    %57 = vector.extract_strided_slice %55 {offsets = [0, 0], sizes = [8, 256], strides = [1, 1]} : vector<8x384xf32> to vector<8x256xf32>
    %58 = arith.addf %56, %57 : vector<8x256xf32>
    %59 = vector.extract_strided_slice %58 {offsets = [0, 0], sizes = [8, 128], strides = [1, 1]} : vector<8x256xf32> to vector<8x128xf32>
    %60 = arith.negf %59 : vector<8x128xf32>
    %61 = math.exp %60 : vector<8x128xf32>
    %cst_24 = arith.constant 1.000000e+00 : f32
    %62 = vector.broadcast %cst_24 : f32 to vector<8x128xf32>
    %63 = arith.addf %62, %61 : vector<8x128xf32>
    %64 = arith.divf %62, %63 : vector<8x128xf32>
    %65 = vector.extract_strided_slice %58 {offsets = [0, 128], sizes = [8, 128], strides = [1, 1]} : vector<8x256xf32> to vector<8x128xf32>
    %66 = arith.negf %65 : vector<8x128xf32>
    %67 = math.exp %66 : vector<8x128xf32>
    %cst_25 = arith.constant 1.000000e+00 : f32
    %68 = vector.broadcast %cst_25 : f32 to vector<8x128xf32>
    %69 = arith.addf %68, %67 : vector<8x128xf32>
    %70 = arith.divf %68, %69 : vector<8x128xf32>
    %71 = vector.extract_strided_slice %53 {offsets = [0, 256], sizes = [8, 128], strides = [1, 1]} : vector<8x384xf32> to vector<8x128xf32>
    %72 = vector.extract_strided_slice %55 {offsets = [0, 256], sizes = [8, 128], strides = [1, 1]} : vector<8x384xf32> to vector<8x128xf32>
    %73 = arith.addf %72, %14 : vector<8x128xf32>
    %74 = arith.mulf %64, %73 : vector<8x128xf32>
    %75 = arith.addf %71, %74 : vector<8x128xf32>
    %76 = math.tanh %75 : vector<8x128xf32>
    %cst_26 = arith.constant 1.000000e+00 : f32
    %77 = vector.broadcast %cst_26 : f32 to vector<8x128xf32>
    %78 = arith.subf %77, %70 : vector<8x128xf32>
    %79 = arith.mulf %78, %76 : vector<8x128xf32>
    %80 = arith.mulf %70, %47 : vector<8x128xf32>
    %81 = arith.addf %79, %80 : vector<8x128xf32>
    %82 = arith.index_cast %51 : i32 to index
    %c0_27 = arith.constant 0 : index
    %83 = vector.load %arg6[%82, %c0_27] : memref<64x128xf32, #tpu.memory_space<vmem>>, vector<8x128xf32>
    tpu.vector_store %arg6[%82, %c0_27], %81 {strides = array<i32>} : memref<64x128xf32, #tpu.memory_space<vmem>>, vector<8x128xf32>,
    %c2_i32 = arith.constant 2 : i32
    %c8_i32_28 = arith.constant 8 : i32
    %84 = arith.muli %c2_i32, %c8_i32_28 : i32
    %85 = tpu.assume_multiple %84, 8 : i32
    %86 = arith.index_cast %85 : i32 to index
    %c0_29 = arith.constant 0 : index
    %87 = vector.load %arg8[%86, %c0_29] : memref<64x384xf32, #tpu.memory_space<vmem>>, vector<8x384xf32>
    %88 = arith.truncf %81 : vector<8x128xf32> to vector<8x128xbf16>
    %cst_30 = arith.constant dense<0.000000e+00> : vector<8x384xf32>
    %89 = tpu.matmul %88, %11, %cst_30 {dimension_numbers = #tpu.dot_dimension_numbers<[1], [0], [0], [1], [0, 0, 1, 1], [], []>} : vector<8x128xbf16>, vector<128x384xbf16>, vector<8x384xf32> -> vector<8x384xf32>
    %90 = vector.extract_strided_slice %87 {offsets = [0, 0], sizes = [8, 256], strides = [1, 1]} : vector<8x384xf32> to vector<8x256xf32>
    %91 = vector.extract_strided_slice %89 {offsets = [0, 0], sizes = [8, 256], strides = [1, 1]} : vector<8x384xf32> to vector<8x256xf32>
    %92 = arith.addf %90, %91 : vector<8x256xf32>
    %93 = vector.extract_strided_slice %92 {offsets = [0, 0], sizes = [8, 128], strides = [1, 1]} : vector<8x256xf32> to vector<8x128xf32>
    %94 = arith.negf %93 : vector<8x128xf32>
    %95 = math.exp %94 : vector<8x128xf32>
    %cst_31 = arith.constant 1.000000e+00 : f32
    %96 = vector.broadcast %cst_31 : f32 to vector<8x128xf32>
    %97 = arith.addf %96, %95 : vector<8x128xf32>
    %98 = arith.divf %96, %97 : vector<8x128xf32>
    %99 = vector.extract_strided_slice %92 {offsets = [0, 128], sizes = [8, 128], strides = [1, 1]} : vector<8x256xf32> to vector<8x128xf32>
    %100 = arith.negf %99 : vector<8x128xf32>
    %101 = math.exp %100 : vector<8x128xf32>
    %cst_32 = arith.constant 1.000000e+00 : f32
    %102 = vector.broadcast %cst_32 : f32 to vector<8x128xf32>
    %103 = arith.addf %102, %101 : vector<8x128xf32>
    %104 = arith.divf %102, %103 : vector<8x128xf32>
    %105 = vector.extract_strided_slice %87 {offsets = [0, 256], sizes = [8, 128], strides = [1, 1]} : vector<8x384xf32> to vector<8x128xf32>
    %106 = vector.extract_strided_slice %89 {offsets = [0, 256], sizes = [8, 128], strides = [1, 1]} : vector<8x384xf32> to vector<8x128xf32>
    %107 = arith.addf %106, %14 : vector<8x128xf32>
    %108 = arith.mulf %98, %107 : vector<8x128xf32>
    %109 = arith.addf %105, %108 : vector<8x128xf32>
    %110 = math.tanh %109 : vector<8x128xf32>
    %cst_33 = arith.constant 1.000000e+00 : f32
    %111 = vector.broadcast %cst_33 : f32 to vector<8x128xf32>
    %112 = arith.subf %111, %104 : vector<8x128xf32>
    %113 = arith.mulf %112, %110 : vector<8x128xf32>
    %114 = arith.mulf %104, %81 : vector<8x128xf32>
    %115 = arith.addf %113, %114 : vector<8x128xf32>
    %116 = arith.index_cast %85 : i32 to index
    %c0_34 = arith.constant 0 : index
    %117 = vector.load %arg6[%116, %c0_34] : memref<64x128xf32, #tpu.memory_space<vmem>>, vector<8x128xf32>
    tpu.vector_store %arg6[%116, %c0_34], %115 {strides = array<i32>} : memref<64x128xf32, #tpu.memory_space<vmem>>, vector<8x128xf32>,
    %c3_i32 = arith.constant 3 : i32
    %c8_i32_35 = arith.constant 8 : i32
    %118 = arith.muli %c3_i32, %c8_i32_35 : i32
    %119 = tpu.assume_multiple %118, 8 : i32
    %120 = arith.index_cast %119 : i32 to index
    %c0_36 = arith.constant 0 : index
    %121 = vector.load %arg8[%120, %c0_36] : memref<64x384xf32, #tpu.memory_space<vmem>>, vector<8x384xf32>
    %122 = arith.truncf %115 : vector<8x128xf32> to vector<8x128xbf16>
    %cst_37 = arith.constant dense<0.000000e+00> : vector<8x384xf32>
    %123 = tpu.matmul %122, %11, %cst_37 {dimension_numbers = #tpu.dot_dimension_numbers<[1], [0], [0], [1], [0, 0, 1, 1], [], []>} : vector<8x128xbf16>, vector<128x384xbf16>, vector<8x384xf32> -> vector<8x384xf32>
    %124 = vector.extract_strided_slice %121 {offsets = [0, 0], sizes = [8, 256], strides = [1, 1]} : vector<8x384xf32> to vector<8x256xf32>
    %125 = vector.extract_strided_slice %123 {offsets = [0, 0], sizes = [8, 256], strides = [1, 1]} : vector<8x384xf32> to vector<8x256xf32>
    %126 = arith.addf %124, %125 : vector<8x256xf32>
    %127 = vector.extract_strided_slice %126 {offsets = [0, 0], sizes = [8, 128], strides = [1, 1]} : vector<8x256xf32> to vector<8x128xf32>
    %128 = arith.negf %127 : vector<8x128xf32>
    %129 = math.exp %128 : vector<8x128xf32>
    %cst_38 = arith.constant 1.000000e+00 : f32
    %130 = vector.broadcast %cst_38 : f32 to vector<8x128xf32>
    %131 = arith.addf %130, %129 : vector<8x128xf32>
    %132 = arith.divf %130, %131 : vector<8x128xf32>
    %133 = vector.extract_strided_slice %126 {offsets = [0, 128], sizes = [8, 128], strides = [1, 1]} : vector<8x256xf32> to vector<8x128xf32>
    %134 = arith.negf %133 : vector<8x128xf32>
    %135 = math.exp %134 : vector<8x128xf32>
    %cst_39 = arith.constant 1.000000e+00 : f32
    %136 = vector.broadcast %cst_39 : f32 to vector<8x128xf32>
    %137 = arith.addf %136, %135 : vector<8x128xf32>
    %138 = arith.divf %136, %137 : vector<8x128xf32>
    %139 = vector.extract_strided_slice %121 {offsets = [0, 256], sizes = [8, 128], strides = [1, 1]} : vector<8x384xf32> to vector<8x128xf32>
    %140 = vector.extract_strided_slice %123 {offsets = [0, 256], sizes = [8, 128], strides = [1, 1]} : vector<8x384xf32> to vector<8x128xf32>
    %141 = arith.addf %140, %14 : vector<8x128xf32>
    %142 = arith.mulf %132, %141 : vector<8x128xf32>
    %143 = arith.addf %139, %142 : vector<8x128xf32>
    %144 = math.tanh %143 : vector<8x128xf32>
    %cst_40 = arith.constant 1.000000e+00 : f32
    %145 = vector.broadcast %cst_40 : f32 to vector<8x128xf32>
    %146 = arith.subf %145, %138 : vector<8x128xf32>
    %147 = arith.mulf %146, %144 : vector<8x128xf32>
    %148 = arith.mulf %138, %115 : vector<8x128xf32>
    %149 = arith.addf %147, %148 : vector<8x128xf32>
    %150 = arith.index_cast %119 : i32 to index
    %c0_41 = arith.constant 0 : index
    %151 = vector.load %arg6[%150, %c0_41] : memref<64x128xf32, #tpu.memory_space<vmem>>, vector<8x128xf32>
    tpu.vector_store %arg6[%150, %c0_41], %149 {strides = array<i32>} : memref<64x128xf32, #tpu.memory_space<vmem>>, vector<8x128xf32>,
    %c4_i32 = arith.constant 4 : i32
    %c8_i32_42 = arith.constant 8 : i32
    %152 = arith.muli %c4_i32, %c8_i32_42 : i32
    %153 = tpu.assume_multiple %152, 8 : i32
    %154 = arith.index_cast %153 : i32 to index
    %c0_43 = arith.constant 0 : index
    %155 = vector.load %arg8[%154, %c0_43] : memref<64x384xf32, #tpu.memory_space<vmem>>, vector<8x384xf32>
    %156 = arith.truncf %149 : vector<8x128xf32> to vector<8x128xbf16>
    %cst_44 = arith.constant dense<0.000000e+00> : vector<8x384xf32>
    %157 = tpu.matmul %156, %11, %cst_44 {dimension_numbers = #tpu.dot_dimension_numbers<[1], [0], [0], [1], [0, 0, 1, 1], [], []>} : vector<8x128xbf16>, vector<128x384xbf16>, vector<8x384xf32> -> vector<8x384xf32>
    %158 = vector.extract_strided_slice %155 {offsets = [0, 0], sizes = [8, 256], strides = [1, 1]} : vector<8x384xf32> to vector<8x256xf32>
    %159 = vector.extract_strided_slice %157 {offsets = [0, 0], sizes = [8, 256], strides = [1, 1]} : vector<8x384xf32> to vector<8x256xf32>
    %160 = arith.addf %158, %159 : vector<8x256xf32>
    %161 = vector.extract_strided_slice %160 {offsets = [0, 0], sizes = [8, 128], strides = [1, 1]} : vector<8x256xf32> to vector<8x128xf32>
    %162 = arith.negf %161 : vector<8x128xf32>
    %163 = math.exp %162 : vector<8x128xf32>
    %cst_45 = arith.constant 1.000000e+00 : f32
    %164 = vector.broadcast %cst_45 : f32 to vector<8x128xf32>
    %165 = arith.addf %164, %163 : vector<8x128xf32>
    %166 = arith.divf %164, %165 : vector<8x128xf32>
    %167 = vector.extract_strided_slice %160 {offsets = [0, 128], sizes = [8, 128], strides = [1, 1]} : vector<8x256xf32> to vector<8x128xf32>
    %168 = arith.negf %167 : vector<8x128xf32>
    %169 = math.exp %168 : vector<8x128xf32>
    %cst_46 = arith.constant 1.000000e+00 : f32
    %170 = vector.broadcast %cst_46 : f32 to vector<8x128xf32>
    %171 = arith.addf %170, %169 : vector<8x128xf32>
    %172 = arith.divf %170, %171 : vector<8x128xf32>
    %173 = vector.extract_strided_slice %155 {offsets = [0, 256], sizes = [8, 128], strides = [1, 1]} : vector<8x384xf32> to vector<8x128xf32>
    %174 = vector.extract_strided_slice %157 {offsets = [0, 256], sizes = [8, 128], strides = [1, 1]} : vector<8x384xf32> to vector<8x128xf32>
    %175 = arith.addf %174, %14 : vector<8x128xf32>
    %176 = arith.mulf %166, %175 : vector<8x128xf32>
    %177 = arith.addf %173, %176 : vector<8x128xf32>
    %178 = math.tanh %177 : vector<8x128xf32>
    %cst_47 = arith.constant 1.000000e+00 : f32
    %179 = vector.broadcast %cst_47 : f32 to vector<8x128xf32>
    %180 = arith.subf %179, %172 : vector<8x128xf32>
    %181 = arith.mulf %180, %178 : vector<8x128xf32>
    %182 = arith.mulf %172, %149 : vector<8x128xf32>
    %183 = arith.addf %181, %182 : vector<8x128xf32>
    %184 = arith.index_cast %153 : i32 to index
    %c0_48 = arith.constant 0 : index
    %185 = vector.load %arg6[%184, %c0_48] : memref<64x128xf32, #tpu.memory_space<vmem>>, vector<8x128xf32>
    tpu.vector_store %arg6[%184, %c0_48], %183 {strides = array<i32>} : memref<64x128xf32, #tpu.memory_space<vmem>>, vector<8x128xf32>,
    %c5_i32 = arith.constant 5 : i32
    %c8_i32_49 = arith.constant 8 : i32
    %186 = arith.muli %c5_i32, %c8_i32_49 : i32
    %187 = tpu.assume_multiple %186, 8 : i32
    %188 = arith.index_cast %187 : i32 to index
    %c0_50 = arith.constant 0 : index
    %189 = vector.load %arg8[%188, %c0_50] : memref<64x384xf32, #tpu.memory_space<vmem>>, vector<8x384xf32>
    %190 = arith.truncf %183 : vector<8x128xf32> to vector<8x128xbf16>
    %cst_51 = arith.constant dense<0.000000e+00> : vector<8x384xf32>
    %191 = tpu.matmul %190, %11, %cst_51 {dimension_numbers = #tpu.dot_dimension_numbers<[1], [0], [0], [1], [0, 0, 1, 1], [], []>} : vector<8x128xbf16>, vector<128x384xbf16>, vector<8x384xf32> -> vector<8x384xf32>
    %192 = vector.extract_strided_slice %189 {offsets = [0, 0], sizes = [8, 256], strides = [1, 1]} : vector<8x384xf32> to vector<8x256xf32>
    %193 = vector.extract_strided_slice %191 {offsets = [0, 0], sizes = [8, 256], strides = [1, 1]} : vector<8x384xf32> to vector<8x256xf32>
    %194 = arith.addf %192, %193 : vector<8x256xf32>
    %195 = vector.extract_strided_slice %194 {offsets = [0, 0], sizes = [8, 128], strides = [1, 1]} : vector<8x256xf32> to vector<8x128xf32>
    %196 = arith.negf %195 : vector<8x128xf32>
    %197 = math.exp %196 : vector<8x128xf32>
    %cst_52 = arith.constant 1.000000e+00 : f32
    %198 = vector.broadcast %cst_52 : f32 to vector<8x128xf32>
    %199 = arith.addf %198, %197 : vector<8x128xf32>
    %200 = arith.divf %198, %199 : vector<8x128xf32>
    %201 = vector.extract_strided_slice %194 {offsets = [0, 128], sizes = [8, 128], strides = [1, 1]} : vector<8x256xf32> to vector<8x128xf32>
    %202 = arith.negf %201 : vector<8x128xf32>
    %203 = math.exp %202 : vector<8x128xf32>
    %cst_53 = arith.constant 1.000000e+00 : f32
    %204 = vector.broadcast %cst_53 : f32 to vector<8x128xf32>
    %205 = arith.addf %204, %203 : vector<8x128xf32>
    %206 = arith.divf %204, %205 : vector<8x128xf32>
    %207 = vector.extract_strided_slice %189 {offsets = [0, 256], sizes = [8, 128], strides = [1, 1]} : vector<8x384xf32> to vector<8x128xf32>
    %208 = vector.extract_strided_slice %191 {offsets = [0, 256], sizes = [8, 128], strides = [1, 1]} : vector<8x384xf32> to vector<8x128xf32>
    %209 = arith.addf %208, %14 : vector<8x128xf32>
    %210 = arith.mulf %200, %209 : vector<8x128xf32>
    %211 = arith.addf %207, %210 : vector<8x128xf32>
    %212 = math.tanh %211 : vector<8x128xf32>
    %cst_54 = arith.constant 1.000000e+00 : f32
    %213 = vector.broadcast %cst_54 : f32 to vector<8x128xf32>
    %214 = arith.subf %213, %206 : vector<8x128xf32>
    %215 = arith.mulf %214, %212 : vector<8x128xf32>
    %216 = arith.mulf %206, %183 : vector<8x128xf32>
    %217 = arith.addf %215, %216 : vector<8x128xf32>
    %218 = arith.index_cast %187 : i32 to index
    %c0_55 = arith.constant 0 : index
    %219 = vector.load %arg6[%218, %c0_55] : memref<64x128xf32, #tpu.memory_space<vmem>>, vector<8x128xf32>
    tpu.vector_store %arg6[%218, %c0_55], %217 {strides = array<i32>} : memref<64x128xf32, #tpu.memory_space<vmem>>, vector<8x128xf32>,
    %c6_i32 = arith.constant 6 : i32
    %c8_i32_56 = arith.constant 8 : i32
    %220 = arith.muli %c6_i32, %c8_i32_56 : i32
    %221 = tpu.assume_multiple %220, 8 : i32
    %222 = arith.index_cast %221 : i32 to index
    %c0_57 = arith.constant 0 : index
    %223 = vector.load %arg8[%222, %c0_57] : memref<64x384xf32, #tpu.memory_space<vmem>>, vector<8x384xf32>
    %224 = arith.truncf %217 : vector<8x128xf32> to vector<8x128xbf16>
    %cst_58 = arith.constant dense<0.000000e+00> : vector<8x384xf32>
    %225 = tpu.matmul %224, %11, %cst_58 {dimension_numbers = #tpu.dot_dimension_numbers<[1], [0], [0], [1], [0, 0, 1, 1], [], []>} : vector<8x128xbf16>, vector<128x384xbf16>, vector<8x384xf32> -> vector<8x384xf32>
    %226 = vector.extract_strided_slice %223 {offsets = [0, 0], sizes = [8, 256], strides = [1, 1]} : vector<8x384xf32> to vector<8x256xf32>
    %227 = vector.extract_strided_slice %225 {offsets = [0, 0], sizes = [8, 256], strides = [1, 1]} : vector<8x384xf32> to vector<8x256xf32>
    %228 = arith.addf %226, %227 : vector<8x256xf32>
    %229 = vector.extract_strided_slice %228 {offsets = [0, 0], sizes = [8, 128], strides = [1, 1]} : vector<8x256xf32> to vector<8x128xf32>
    %230 = arith.negf %229 : vector<8x128xf32>
    %231 = math.exp %230 : vector<8x128xf32>
    %cst_59 = arith.constant 1.000000e+00 : f32
    %232 = vector.broadcast %cst_59 : f32 to vector<8x128xf32>
    %233 = arith.addf %232, %231 : vector<8x128xf32>
    %234 = arith.divf %232, %233 : vector<8x128xf32>
    %235 = vector.extract_strided_slice %228 {offsets = [0, 128], sizes = [8, 128], strides = [1, 1]} : vector<8x256xf32> to vector<8x128xf32>
    %236 = arith.negf %235 : vector<8x128xf32>
    %237 = math.exp %236 : vector<8x128xf32>
    %cst_60 = arith.constant 1.000000e+00 : f32
    %238 = vector.broadcast %cst_60 : f32 to vector<8x128xf32>
    %239 = arith.addf %238, %237 : vector<8x128xf32>
    %240 = arith.divf %238, %239 : vector<8x128xf32>
    %241 = vector.extract_strided_slice %223 {offsets = [0, 256], sizes = [8, 128], strides = [1, 1]} : vector<8x384xf32> to vector<8x128xf32>
    %242 = vector.extract_strided_slice %225 {offsets = [0, 256], sizes = [8, 128], strides = [1, 1]} : vector<8x384xf32> to vector<8x128xf32>
    %243 = arith.addf %242, %14 : vector<8x128xf32>
    %244 = arith.mulf %234, %243 : vector<8x128xf32>
    %245 = arith.addf %241, %244 : vector<8x128xf32>
    %246 = math.tanh %245 : vector<8x128xf32>
    %cst_61 = arith.constant 1.000000e+00 : f32
    %247 = vector.broadcast %cst_61 : f32 to vector<8x128xf32>
    %248 = arith.subf %247, %240 : vector<8x128xf32>
    %249 = arith.mulf %248, %246 : vector<8x128xf32>
    %250 = arith.mulf %240, %217 : vector<8x128xf32>
    %251 = arith.addf %249, %250 : vector<8x128xf32>
    %252 = arith.index_cast %221 : i32 to index
    %c0_62 = arith.constant 0 : index
    %253 = vector.load %arg6[%252, %c0_62] : memref<64x128xf32, #tpu.memory_space<vmem>>, vector<8x128xf32>
    tpu.vector_store %arg6[%252, %c0_62], %251 {strides = array<i32>} : memref<64x128xf32, #tpu.memory_space<vmem>>, vector<8x128xf32>,
    %c7_i32 = arith.constant 7 : i32
    %c8_i32_63 = arith.constant 8 : i32
    %254 = arith.muli %c7_i32, %c8_i32_63 : i32
    %255 = tpu.assume_multiple %254, 8 : i32
    %256 = arith.index_cast %255 : i32 to index
    %c0_64 = arith.constant 0 : index
    %257 = vector.load %arg8[%256, %c0_64] : memref<64x384xf32, #tpu.memory_space<vmem>>, vector<8x384xf32>
    %258 = arith.truncf %251 : vector<8x128xf32> to vector<8x128xbf16>
    %cst_65 = arith.constant dense<0.000000e+00> : vector<8x384xf32>
    %259 = tpu.matmul %258, %11, %cst_65 {dimension_numbers = #tpu.dot_dimension_numbers<[1], [0], [0], [1], [0, 0, 1, 1], [], []>} : vector<8x128xbf16>, vector<128x384xbf16>, vector<8x384xf32> -> vector<8x384xf32>
    %260 = vector.extract_strided_slice %257 {offsets = [0, 0], sizes = [8, 256], strides = [1, 1]} : vector<8x384xf32> to vector<8x256xf32>
    %261 = vector.extract_strided_slice %259 {offsets = [0, 0], sizes = [8, 256], strides = [1, 1]} : vector<8x384xf32> to vector<8x256xf32>
    %262 = arith.addf %260, %261 : vector<8x256xf32>
    %263 = vector.extract_strided_slice %262 {offsets = [0, 0], sizes = [8, 128], strides = [1, 1]} : vector<8x256xf32> to vector<8x128xf32>
    %264 = arith.negf %263 : vector<8x128xf32>
    %265 = math.exp %264 : vector<8x128xf32>
    %cst_66 = arith.constant 1.000000e+00 : f32
    %266 = vector.broadcast %cst_66 : f32 to vector<8x128xf32>
    %267 = arith.addf %266, %265 : vector<8x128xf32>
    %268 = arith.divf %266, %267 : vector<8x128xf32>
    %269 = vector.extract_strided_slice %262 {offsets = [0, 128], sizes = [8, 128], strides = [1, 1]} : vector<8x256xf32> to vector<8x128xf32>
    %270 = arith.negf %269 : vector<8x128xf32>
    %271 = math.exp %270 : vector<8x128xf32>
    %cst_67 = arith.constant 1.000000e+00 : f32
    %272 = vector.broadcast %cst_67 : f32 to vector<8x128xf32>
    %273 = arith.addf %272, %271 : vector<8x128xf32>
    %274 = arith.divf %272, %273 : vector<8x128xf32>
    %275 = vector.extract_strided_slice %257 {offsets = [0, 256], sizes = [8, 128], strides = [1, 1]} : vector<8x384xf32> to vector<8x128xf32>
    %276 = vector.extract_strided_slice %259 {offsets = [0, 256], sizes = [8, 128], strides = [1, 1]} : vector<8x384xf32> to vector<8x128xf32>
    %277 = arith.addf %276, %14 : vector<8x128xf32>
    %278 = arith.mulf %268, %277 : vector<8x128xf32>
    %279 = arith.addf %275, %278 : vector<8x128xf32>
    %280 = math.tanh %279 : vector<8x128xf32>
    %cst_68 = arith.constant 1.000000e+00 : f32
    %281 = vector.broadcast %cst_68 : f32 to vector<8x128xf32>
    %282 = arith.subf %281, %274 : vector<8x128xf32>
    %283 = arith.mulf %282, %280 : vector<8x128xf32>
    %284 = arith.mulf %274, %251 : vector<8x128xf32>
    %285 = arith.addf %283, %284 : vector<8x128xf32>
    %286 = arith.index_cast %255 : i32 to index
    %c0_69 = arith.constant 0 : index
    %287 = vector.load %arg6[%286, %c0_69] : memref<64x128xf32, #tpu.memory_space<vmem>>, vector<8x128xf32>
    tpu.vector_store %arg6[%286, %c0_69], %285 {strides = array<i32>} : memref<64x128xf32, #tpu.memory_space<vmem>>, vector<8x128xf32>,
    %c8_i32_70 = arith.constant 8 : i32
    %c0_71 = arith.constant 0 : index
    %c0_72 = arith.constant 0 : index
    %288 = vector.load %arg7[%c0_71, %c0_72] : memref<8x128xf32, #tpu.memory_space<vmem>>, vector<8x128xf32>
    tpu.vector_store %arg7[%c0_71, %c0_72], %285 {strides = array<i32>} : memref<8x128xf32, #tpu.memory_space<vmem>>, vector<8x128xf32>,
    return
  }
  func.func @transform_0(%arg0: i32) -> (i32, i32) {
    %c0_i32 = arith.constant 0 : i32
    %c0_i32_0 = arith.constant 0 : i32
    return %arg0, %c0_i32 : i32, i32
  }
  func.func @transform_1(%arg0: i32) -> (i32, i32) {
    %c0_i32 = arith.constant 0 : i32
    %c0_i32_0 = arith.constant 0 : i32
    %c0_i32_1 = arith.constant 0 : i32
    return %c0_i32, %c0_i32_0 : i32, i32
  }
  func.func @transform_2(%arg0: i32) -> (i32, i32) {
    %c0_i32 = arith.constant 0 : i32
    %c0_i32_0 = arith.constant 0 : i32
    %c0_i32_1 = arith.constant 0 : i32
    return %c0_i32, %c0_i32_0 : i32, i32
  }
  func.func @transform_3(%arg0: i32) -> (i32, i32) {
    %c0_i32 = arith.constant 0 : i32
    %c0_i32_0 = arith.constant 0 : i32
    %c0_i32_1 = arith.constant 0 : i32
    return %c0_i32, %c0_i32_0 : i32, i32
  }
  func.func @transform_4(%arg0: i32) -> (i32, i32) {
    %c0_i32 = arith.constant 0 : i32
    %c0_i32_0 = arith.constant 0 : i32
    %c0_i32_1 = arith.constant 0 : i32
    return %c0_i32, %c0_i32_0 : i32, i32
  }
  func.func @transform_5(%arg0: i32) -> (i32, i32) {
    %c0_i32 = arith.constant 0 : i32
    %c0_i32_0 = arith.constant 0 : i32
    return %arg0, %c0_i32 : i32, i32
  }
}

</mosaic_0001>

<bundles_post_ra>
// kernel: gru_model_forward.3
= control target key start
LH: loop header
LB: loop body
LE: loop exit
PB: predicated region body
PF: predicated region fallthrough
CT: control target
= control target key end

     0   :  { %v2698_v1 = vmov 0   ;;  %v2700_v40 = vmov 0.0   ;;  %vm1964_vm0 = vmmov 0   ;;  %v1965_v61 = vmov 0.0|0.0   ;;  %s2692_s1 = inlined_call_operand.vmem [shape: bf16[128,384], index: 1, kind: input, shape index: {}]   ;;  %s2693_s0 = inlined_call_operand.vmem [shape: f32[64,128], index: 0, kind: input, shape index: {}]   ;;  %s2694_s2 = inlined_call_operand.vmem [shape: bf16[128,384], index: 2, kind: input, shape index: {}]   ;;  %s2695_s3 = inlined_call_operand.vmem [shape: f32[1,384], index: 3, kind: input, shape index: {}]   ;;  %s2696_s4 = inlined_call_operand.vmem [shape: f32[1,128], index: 4, kind: input, shape index: {}]   ;;  %s2697_s5 = inlined_call_operand.vmem [shape: f32[64,128], index: 5, kind: output, shape index: {}]  }
   0x1   :  { %v1796_v0 = vld [vmem:[%s2692_s1 + $0x4] ss:$12 sps:$4 sm:$0xff]   ;;  %247 = vmatprep.mubr.bf16.mxu0 %v2698_v1  ;;  %v1798_v2 = vld [vmem:[%s2692_s1] ss:$12 sps:$4 sm:$0xff]   ;;  %v1799_v3 = vld [vmem:[%s2692_s1 + $0x1c] ss:$12 sps:$4 sm:$0xff]   ;;  %v72_v63 = vlaneseq }
   0x2   :  { %215 = vmatprep.subr.bf16.mxu0 %v1796_v0  ;;  %v1801_v4 = vld [vmem:[%s2692_s1 + $0x18] ss:$12 sps:$4 sm:$0xff]   ;;  %v1802_v5 = vld [vmem:[%s2692_s1 + $0x34] ss:$12 sps:$4 sm:$0xff]   ;;  %v1804_v6 = vld [vmem:[%s2692_s1 + $0x30] ss:$12 sps:$4 sm:$0xff]  }
   0x3   :  { %216 = vmatpush1.bf16.msra.mxu0 %v1798_v2  ;;  %v1805_v7 = vld [vmem:[%s2692_s1 + $0x4c] ss:$12 sps:$4 sm:$0xff]   ;;  %v1816_v8 = vld [vmem:[%s2692_s1 + $0x8] ss:$12 sps:$4 sm:$0xff]   ;;  %v1808_v10 = vld [vmem:[%s2692_s1 + $0x64] ss:$12 sps:$4 sm:$0xff]  }
   0x4   :  { %217 = vmatprep.subr.bf16.mxu0 %v1799_v3  ;;  %v1807_v9 = vld [vmem:[%s2692_s1 + $0x48] ss:$12 sps:$4 sm:$0xff]   ;;  %1608 = vmatprep.subr.bf16.mxu1 %v1816_v8  ;;  %v1820_v11 = vld [vmem:[%s2692_s1 + $0x20] ss:$12 sps:$4 sm:$0xff]   ;;  %v1822_v14 = vld [vmem:[%s2692_s1 + $0x38] ss:$12 sps:$4 sm:$0xff]  }
   0x5   :  { %1609 = vmatpush3.bf16.msra.mxu1 %v1816_v8  ;;  %v26_v12 = vld [vmem:[%s2693_s0] sm:$0xff]  ;;  %v27_v13 = vld [vmem:[%s2693_s0 + $0x8] sm:$0xff]  ;;  %v1826_v18 = vld [vmem:[%s2692_s1 + $0x50] ss:$12 sps:$4 sm:$0xff]   ;;  %v73_v0 = vshrl.u32 %v72_v63, 7 }
   0x6   :  { %1610 = vmatprep.subr.bf16.mxu1 %v1820_v11  ;;  %v1810_v15 = vld [vmem:[%s2692_s1 + $0x60] ss:$12 sps:$4 sm:$0xff]   ;;  %v34_v16 = vpack.c.bf16 %v27_v13, %v26_v12  ;;  %v1811_v17 = vld [vmem:[%s2692_s1 + $0x7c] ss:$12 sps:$4 sm:$0xff]   ;;  %v1813_v19 = vld [vmem:[%s2692_s1 + $0x78] ss:$12 sps:$4 sm:$0xff]  }
   0x7   :  { %218 = vmatpush1.bf16.msra.mxu0 %v1801_v4  ;;  %v1814_v20 = vld [vmem:[%s2692_s1 + $0x94] ss:$12 sps:$4 sm:$0xff]   ;;  %v1817_v22 = vld [vmem:[%s2692_s1 + $0x90] ss:$12 sps:$4 sm:$0xff]   ;;  %v1818_v23 = vld [vmem:[%s2692_s1 + $0xac] ss:$12 sps:$4 sm:$0xff]  }
   0x8   :  { %219 = vmatprep.subr.bf16.mxu0 %v1802_v5  ;;  %1624 = vmatprep.mubr.bf16.mxu1 %v34_v16  ;;  %v1830_v21 = vld [vmem:[%s2692_s1 + $0x68] ss:$12 sps:$4 sm:$0xff]   ;;  %v1834_v24 = vld [vmem:[%s2692_s1 + $0x80] ss:$12 sps:$4 sm:$0xff]   ;;  %v2072_v26 = vld [vmem:[%s2694_s2 + $0x4] ss:$12 sps:$4 sm:$0xff]  }
   0x9   :  { %1611 = vmatpush3.bf16.msra.mxu1 %v1820_v11  ;;  %v1821_v25 = vld [vmem:[%s2692_s1 + $0xa8] ss:$12 sps:$4 sm:$0xff]   ;;  %v1838_v27 = vld [vmem:[%s2692_s1 + $0x98] ss:$12 sps:$4 sm:$0xff]   ;;  %v2080_v28 = vld [vmem:[%s2694_s2] ss:$12 sps:$4 sm:$0xff]  }
   0xa   :  { %1612 = vmatprep.subr.bf16.mxu1 %v1822_v14  ;;  %v2086_v29 = vld [vmem:[%s2694_s2 + $0x1c] ss:$12 sps:$4 sm:$0xff]   ;;  %v2091_v30 = vld [vmem:[%s2694_s2 + $0x18] ss:$12 sps:$4 sm:$0xff]   ;;  %v28_v32 = vld [vmem:[%s2693_s0 + $0x10] sm:$0xff]  ;;  %v74_v2 = vsub.s32 0, %v73_v0 }
   0xb   :  { %220 = vmatpush1.bf16.msra.mxu0 %v1804_v6  ;;  %v1842_v31 = vld [vmem:[%s2692_s1 + $0xb0] ss:$12 sps:$4 sm:$0xff]   ;;  %v2108_v34 = vld [vmem:[%s2694_s2 + $0x34] ss:$12 sps:$4 sm:$0xff]   ;;  %v2120_v37 = vld [vmem:[%s2694_s2 + $0x4c] ss:$12 sps:$4 sm:$0xff]  }
   0xc   :  { %221 = vmatprep.subr.bf16.mxu0 %v1805_v7  ;;  %v29_v33 = vld [vmem:[%s2693_s0 + $0x18] sm:$0xff]  ;;  %v30_v38 = vld [vmem:[%s2693_s0 + $0x20] sm:$0xff]  ;;  %v31_v39 = vld [vmem:[%s2693_s0 + $0x28] sm:$0xff]  ;;  %v78_v4 = vsub.s32 1, %v73_v0  ;;  %v82_v12 = vsub.s32 2, %v73_v0 }
   0xd   :  { %1613 = vmatpush3.bf16.msra.mxu1 %v1822_v14  ;;  %v35_v35 = vpack.c.bf16 %v29_v33, %v28_v32  ;;  %v2114_v36 = vld [vmem:[%s2694_s2 + $0x30] ss:$12 sps:$4 sm:$0xff]   ;;  %v2132_v41 = vld [vmem:[%s2694_s2 + $0x8] ss:$12 sps:$4 sm:$0xff]   ;;  %v36_v43 = vpack.c.bf16 %v31_v39, %v30_v38  ;;  %v2151_v45 = vld [vmem:[%s2694_s2 + $0x20] ss:$12 sps:$4 sm:$0xff]  }
   0xe   :  { %1614 = vmatprep.subr.bf16.mxu1 %v1826_v18  ;;  %v2138_v42 = vld [vmem:[%s2694_s2 + $0x48] ss:$12 sps:$4 sm:$0xff]   ;;  %v2145_v44 = vld [vmem:[%s2694_s2 + $0x64] ss:$12 sps:$4 sm:$0xff]   ;;  %v2158_v46 = vld [vmem:[%s2694_s2 + $0x60] ss:$12 sps:$4 sm:$0xff]  }
   0xf   :  { %222 = vmatpush1.bf16.msra.mxu0 %v1807_v9  ;;  %v32_v47 = vld [vmem:[%s2693_s0 + $0x30] sm:$0xff]  ;;  %v33_v48 = vld [vmem:[%s2693_s0 + $0x38] sm:$0xff]  ;;  %v2232_v59 = vld [vmem:[%s2694_s2 + $0x80] ss:$12 sps:$4 sm:$0xff]  }
  0x10   :  { %223 = vmatprep.subr.bf16.mxu0 %v1808_v10  ;;  %v2170_v49 = vld [vmem:[%s2694_s2 + $0x7c] ss:$12 sps:$4 sm:$0xff]   ;;  %v2176_v50 = vld [vmem:[%s2694_s2 + $0x38] ss:$12 sps:$4 sm:$0xff]   ;;  %v37_v51 = vpack.c.bf16 %v33_v48, %v32_v47  ;;  %v2190_v53 = vld [vmem:[%s2694_s2 + $0x94] ss:$12 sps:$4 sm:$0xff]  }
  0x11   :  { %1615 = vmatpush3.bf16.msra.mxu1 %v1826_v18  ;;  %v2183_v52 = vld [vmem:[%s2694_s2 + $0x78] ss:$12 sps:$4 sm:$0xff]   ;;  %v2196_v54 = vld [vmem:[%s2694_s2 + $0x50] ss:$12 sps:$4 sm:$0xff]   ;;  %v2217_v57 = vld [vmem:[%s2694_s2 + $0x68] ss:$12 sps:$4 sm:$0xff]  }
  0x12   :  { %1616 = vmatprep.subr.bf16.mxu1 %v1830_v21  ;;  %v2205_v55 = vld [vmem:[%s2694_s2 + $0x90] ss:$12 sps:$4 sm:$0xff]   ;;  %v2211_v56 = vld [vmem:[%s2694_s2 + $0xac] ss:$12 sps:$4 sm:$0xff]   ;;  %v2224_v58 = vld [vmem:[%s2694_s2 + $0xa8] ss:$12 sps:$4 sm:$0xff]  }
  0x13   :  { %224 = vmatpush1.bf16.msra.mxu0 %v1810_v15  ;;  %v2241_v60 = vld [vmem:[%s2694_s2 + $0x98] ss:$12 sps:$4 sm:$0xff]   ;;  %v2251_v62 = vld [vmem:[%s2694_s2 + $0xb0] ss:$12 sps:$4 sm:$0xff]   ;;  %v70_v3 = vld [vmem:[%s2695_s3] sm:$0x7] }
  0x14   :  { %225 = vmatprep.subr.bf16.mxu0 %v1811_v17  ;;  %v75_v6 = vrot.slane %v70_v3, %v74_v2  ;;  %v79_v8 = vrot.slane %v70_v3, %v78_v4  ;;  %v2295_v14 = vrot.slane %v70_v3, %v82_v12 }
  0x15   :  { %1617 = vmatpush3.bf16.msra.mxu1 %v1830_v21 }
  0x16   :  { %1618 = vmatprep.subr.bf16.mxu1 %v1834_v24 }
  0x17   :  { %226 = vmatpush1.bf16.msra.mxu0 %v1813_v19 }
  0x18   :  { %227 = vmatprep.subr.bf16.mxu0 %v1814_v20 }
  0x19   :  { %1619 = vmatpush3.bf16.msra.mxu1 %v1834_v24 }
  0x1a   :  { %1620 = vmatprep.subr.bf16.mxu1 %v1838_v27 }
  0x1b   :  { %228 = vmatpush1.bf16.msra.mxu0 %v1817_v22 }
  0x1c   :  { %229 = vmatprep.subr.bf16.mxu0 %v1818_v23 }
  0x1d   :  { %1621 = vmatpush3.bf16.msra.mxu1 %v1838_v27 }
  0x1e   :  { %1622 = vmatprep.subr.bf16.mxu1 %v1842_v31 }
  0x1f   :  { %230 = vmatpush1.bf16.msra.mxu0 %v1821_v25 }
  0x20   :  { %552 = vmatprep.subr.bf16.mxu0 %v2072_v26 }
  0x21   :  { %1623 = vmatpush3.bf16.msra.mxu1 %v1842_v31 }
  0x22   :  { %248 = vmatmul.mubr.bf16.vlgmr.msra.gmra.mrb[0].mxu0 %v34_v16  ;;  %1632 = vmatprep.subr.bf16.mxu1 %v2700_v40 }
  0x23   :  { %553 = vmatpush1.bf16.msra.mxu0 %v2080_v28  ;;  %257 = vmatprep.mubr.bf16.mxu0 %v2698_v1 }
  0x24   :  { %554 = vmatprep.subr.bf16.mxu0 %v2086_v29  ;;  %1625 = vmatmul.mubr.bf16.vlgmr.msra.gmra.mrb[0].mxu1 %v35_v35 }
  0x25   :  { %1633 = vmatpush3.bf16.msra.mxu1 %v2132_v41  ;;  %1628 = vmatprep.mubr.bf16.mxu1 %v36_v43 }
  0x26   :  { %1634 = vmatprep.subr.bf16.mxu1 %v2700_v40 }
  0x27   :  { %555 = vmatpush1.bf16.msra.mxu0 %v2091_v30 }
  0x28   :  { %556 = vmatprep.subr.bf16.mxu0 %v2108_v34 }
  0x29   :  { %1635 = vmatpush3.bf16.msra.mxu1 %v2151_v45 }
  0x2a   :  { %258 = vmatmul.mubr.bf16.gmra.mrb[4].mxu0 %v35_v35  ;;  %1636 = vmatprep.subr.bf16.mxu1 %v2700_v40 }
  0x2b   :  { %557 = vmatpush1.bf16.msra.mxu0 %v2114_v36  ;;  %267 = vmatprep.mubr.bf16.mxu0 %v2698_v1 }
  0x2c   :  { %558 = vmatprep.subr.bf16.mxu0 %v2120_v37  ;;  %1629 = vmatmul.mubr.bf16.gmra.mrb[4].mxu1 %v37_v51 }
  0x2d   :  { %1637 = vmatpush3.bf16.msra.mxu1 %v2176_v50  ;;  %1648 = vmatprep.mubr.msk.bf16.mxu1 %vm1964_vm0, %v2700_v40 }
  0x2e   :  { %1638 = vmatprep.subr.bf16.mxu1 %v2700_v40 }
  0x2f   :  { %559 = vmatpush1.bf16.msra.mxu0 %v2138_v42 }
  0x30   :  { %560 = vmatprep.subr.bf16.mxu0 %v2145_v44 }
  0x31   :  { %1639 = vmatpush3.bf16.msra.mxu1 %v2196_v54 }
  0x32   :  { %268 = vmatmul.mubr.bf16.gmra.mrb[8].mxu0 %v36_v43  ;;  %1640 = vmatprep.subr.bf16.mxu1 %v2700_v40 }
  0x33   :  { %561 = vmatpush1.bf16.msra.mxu0 %v2158_v46  ;;  %277 = vmatprep.mubr.bf16.mxu0 %v2698_v1 }
  0x34   :  { %562 = vmatprep.subr.bf16.mxu0 %v2170_v49 }
  0x35   :  { %1641 = vmatpush3.bf16.msra.mxu1 %v2217_v57 }
  0x36   :  { %1642 = vmatprep.subr.bf16.mxu1 %v2700_v40 }
  0x37   :  { %563 = vmatpush1.bf16.msra.mxu0 %v2183_v52 }
  0x38   :  { %564 = vmatprep.subr.bf16.mxu0 %v2190_v53 }
  0x39   :  { %1643 = vmatpush3.bf16.msra.mxu1 %v2232_v59 }
  0x3a   :  { %278 = vmatmul.mubr.bf16.gmra.mrb[12].mxu0 %v37_v51  ;;  %1644 = vmatprep.subr.bf16.mxu1 %v2700_v40 }
  0x3b   :  { %565 = vmatpush1.bf16.msra.mxu0 %v2205_v55  ;;  %584 = vmatprep.mubr.bf16.mxu0 %v2698_v1 }
  0x3c   :  { %566 = vmatprep.subr.bf16.mxu0 %v2211_v56 }
  0x3d   :  { %1645 = vmatpush3.bf16.msra.mxu1 %v2241_v60 }
  0x3e   :  { %1646 = vmatprep.subr.bf16.mxu1 %v2700_v40 }
  0x3f   :  { %567 = vmatpush1.bf16.msra.mxu0 %v2224_v58 }
  0x40   :  { %663 = vmatprep.subr.bf16.mxu0 %v2072_v26 }
  0x41   :  { %1647 = vmatpush3.bf16.msra.mxu1 %v2251_v62 }
  0x42   :  { %585 = vmatmul.mubr.bf16.vlgmr.msra.gmra.mrb[16].mxu0 %v1965_v61  ;;  %1652 = vmatprep.subr.bf16.mxu1 %v2700_v40 }
  0x43   :  { %664 = vmatpush1.bf16.msra.mxu0 %v2080_v28  ;;  %695 = vmatprep.mubr.bf16.mxu0 %v2698_v1 }
  0x44   :  { %665 = vmatprep.subr.bf16.mxu0 %v2086_v29  ;;  %1649 = vmatmul.mubr.bf16.vlgmr.msra.gmra.mrb[8].mxu1 %v1965_v61 }
  0x45   :  { %1653 = vmatpush3.bf16.msra.mxu1 %v2132_v41  ;;  %1668 = vmatprep.mubr.msk.bf16.mxu1 %vm1964_vm0, %v2700_v40 }
  0x46   :  { %1654 = vmatprep.subr.bf16.mxu1 %v2700_v40 }
  0x47   :  { %666 = vmatpush1.bf16.msra.mxu0 %v2091_v30 }
  0x48   :  { %667 = vmatprep.subr.bf16.mxu0 %v2108_v34 }
  0x49   :  { %1655 = vmatpush3.bf16.msra.mxu1 %v2151_v45 }
  0x4a   :  { %1656 = vmatprep.subr.bf16.mxu1 %v2700_v40 }
  0x4b   :  { %668 = vmatpush1.bf16.msra.mxu0 %v2114_v36 }
  0x4c   :  { %669 = vmatprep.subr.bf16.mxu0 %v2120_v37 }
  0x4d   :  { %1657 = vmatpush3.bf16.msra.mxu1 %v2176_v50 }
  0x4e   :  { %1658 = vmatprep.subr.bf16.mxu1 %v2700_v40 }
  0x4f   :  { %670 = vmatpush1.bf16.msra.mxu0 %v2138_v42 }
  0x50   :  { %671 = vmatprep.subr.bf16.mxu0 %v2145_v44 }
  0x51   :  { %1659 = vmatpush3.bf16.msra.mxu1 %v2196_v54 }
  0x52   :  { %1660 = vmatprep.subr.bf16.mxu1 %v2700_v40 }
  0x53   :  { %672 = vmatpush1.bf16.msra.mxu0 %v2158_v46 }
  0x54   :  { %673 = vmatprep.subr.bf16.mxu0 %v2170_v49 }
  0x55   :  { %1661 = vmatpush3.bf16.msra.mxu1 %v2217_v57 }
  0x56   :  { %1662 = vmatprep.subr.bf16.mxu1 %v2700_v40 }
  0x57   :  { %674 = vmatpush1.bf16.msra.mxu0 %v2183_v52 }
  0x58   :  { %675 = vmatprep.subr.bf16.mxu0 %v2190_v53 }
  0x59   :  { %1663 = vmatpush3.bf16.msra.mxu1 %v2232_v59 }
  0x5a   :  { %1664 = vmatprep.subr.bf16.mxu1 %v2700_v40 }
  0x5b   :  { %676 = vmatpush1.bf16.msra.mxu0 %v2205_v55 }
  0x5c   :  { %677 = vmatprep.subr.bf16.mxu0 %v2211_v56 }
  0x5d   :  { %1665 = vmatpush3.bf16.msra.mxu1 %v2241_v60 }
  0x5e   :  { %1666 = vmatprep.subr.bf16.mxu1 %v2700_v40 }
  0x5f   :  { %678 = vmatpush1.bf16.msra.mxu0 %v2224_v58 }
  0x60   :  { %775 = vmatprep.subr.bf16.mxu0 %v2072_v26 }
  0x61   :  { %1667 = vmatpush3.bf16.msra.mxu1 %v2251_v62 }
  0x62   :  { %1672 = vmatprep.subr.bf16.mxu1 %v2700_v40 }
  0xf5   :  { %v249_v5 = vpop.f32.mrb[0].mxu0 }
  0xf6   :  { %v251_v7 = vpop.f32.mrb[1].mxu0 }
  0xf7   :  { %v253_v9 = vpop.f32.mrb[2].mxu0  ;;  %v1626_v20 = vpop.f32.mrb[0].mxu1 }
  0xf8   :  { %v2291_v10 = vadd.f32 %v253_v9, %v75_v6  ;;  %v255_v11 = vpop.f32.mrb[3].mxu0  ;;  %v2304_v23 = vadd.f32 %v1626_v20, %v2295_v14  ;;  %v322_v24 = vpop.f32.mrb[1].mxu1 }
  0xf9   :  { %v2293_v13 = vadd.f32 %v255_v11, %v79_v8  ;;  %v1627_v27 = vpop.f32.mrb[2].mxu1 }
  0xfa   :  { %v2309_v31 = vadd.f32 %v1627_v27, %v2295_v14  ;;  %v325_v32 = vpop.f32.mrb[3].mxu1 }
  0xfb   :  { %v2312_v33 = vadd.f32 %v325_v32, %v2295_v14 }
  0xfd   :  { %v259_v15 = vpop.f32.mrb[4].mxu0 }
  0xfe   :  { %v2297_v16 = vadd.f32 %v259_v15, %v75_v6  ;;  %v261_v17 = vpop.f32.mrb[5].mxu0 }
  0xff   :  { %v2299_v18 = vadd.f32 %v261_v17, %v79_v8  ;;  %v263_v19 = vpop.f32.mrb[6].mxu0  ;;  %v1630_v48 = vpop.f32.mrb[4].mxu1 }
 0x100   :  { %v2301_v21 = vadd.f32 %v263_v19, %v75_v6  ;;  %v265_v22 = vpop.f32.mrb[7].mxu0  ;;  %v2321_v63 = vadd.f32 %v1630_v48, %v2295_v14  ;;  %v338_v0 = vpop.f32.mrb[5].mxu1 }
 0x101   :  { %v2306_v25 = vadd.f32 %v265_v22, %v79_v8  ;;  %v2326_v3 = vadd.f32 %v338_v0, %v2295_v14  ;;  %v1631_v4 = vpop.f32.mrb[6].mxu1 }
 0x102   :  { %2702 = vst [vmem:[#allocation4_spill] sm:$0xff] %v2321_v63  ;;  %v2329_v9 = vadd.f32 %v1631_v4, %v2295_v14  ;;  %v341_v11 = vpop.f32.mrb[7].mxu1 }
 0x103   :  { %v2332_v12 = vadd.f32 %v341_v11, %v2295_v14 }
 0x104   :  { %2703 = vst [vmem:[#allocation5_spill] sm:$0xff] %v2329_v9 }
 0x105   :  { %v269_v35 = vpop.f32.mrb[8].mxu0 }
 0x106   :  { %v2314_v38 = vadd.f32 %v269_v35, %v75_v6  ;;  %v271_v39 = vpop.f32.mrb[9].mxu0 }
 0x107   :  { %v2316_v43 = vadd.f32 %v271_v39, %v79_v8  ;;  %v273_v47 = vpop.f32.mrb[10].mxu0  ;;  %v250_v39 = vadd.f32 %v249_v5, %v75_v6  ;;  %v2345_v5 = vld [vmem:[%s2696_s4] ss:$0 sm:$0xff] }
 0x108   :  { %v2318_v51 = vadd.f32 %v273_v47, %v75_v6  ;;  %v275_v61 = vpop.f32.mrb[11].mxu0  ;;  %v252_v47 = vadd.f32 %v251_v7, %v79_v8 }
 0x109   :  { %v2323_v2 = vadd.f32 %v275_v61, %v79_v8 }
 0x10d   :  { %v279_v15 = vpop.f32.mrb[12].mxu0 }
 0x10e   :  { %v2334_v17 = vadd.f32 %v279_v15, %v75_v6  ;;  %v281_v19 = vpop.f32.mrb[13].mxu0 }
 0x10f   :  { %v2336_v20 = vadd.f32 %v281_v19, %v79_v8  ;;  %v283_v22 = vpop.f32.mrb[14].mxu0 }
 0x110   :  { %v2338_v27 = vadd.f32 %v283_v22, %v75_v6  ;;  %v285_v32 = vpop.f32.mrb[15].mxu0 }
 0x111   :  { %2704 = vst [vmem:[#allocation6_spill] sm:$0xff] %v2336_v20  ;;  %v2340_v35 = vadd.f32 %v285_v32, %v79_v8 }
 0x112   :  { %2705 = vst [vmem:[#allocation7_spill] sm:$0xff] %v2338_v27 }
 0x115   :  { %v586_v48 = vpop.f32.mrb[16].mxu0 }
 0x116   :  { %v633_v61 = vadd.f32 %v586_v48, %v250_v39  ;;  %v588_v0 = vpop.f32.mrb[17].mxu0 }
 0x117   :  { %v634_v4 = vadd.f32 %v588_v0, %v252_v47  ;;  %v590_v11 = vpop.f32.mrb[18].mxu0  ;;  %v627_v9 = vpop.f32.mrb[8].mxu1 }
 0x118   :  { %v1501_v1 = vmul.f32 -1.442695, %v633_v61  ;;  %v591_v40 = vpop.f32.mrb[19].mxu0  ;;  %v1650_v19 = vpop.f32.mrb[9].mxu1  ;;  %v647_v7 = vadd.f32 %v2345_v5, %v627_v9 }
 0x119   :  { %v1502_v15 = vmul.f32 -1.442695, %v634_v4  ;;  %v630_v63 = vpop.f32.mrb[10].mxu1 }
 0x11a   :  { %1860 = vpow2.f32 %v1501_v1  ;;  %v1651_v22 = vpop.f32.mrb[11].mxu1  ;;  %v323_v1 = vadd.f32 %v322_v24, %v2295_v14  ;;  %v2706_v14 = vmov 0.0   ;;  %v2707_v24 = vmov 0  }
 0x11b   :  { %1862 = vpow2.f32 %v1502_v15 }
 0x124   :  { %v1861_v27 = vpop.eup %1860 }
 0x125   :  { %v638_v20 = vadd.f32 1.0, %v1861_v27  ;;  %v1863_v32 = vpop.eup %1862 }
 0x126   :  { %v644_v6 = vadd.f32 1.0, %v1863_v32 }
 0x127   :  { %1864 = vrcp.f32 %v638_v20 }
 0x128   :  { %1866 = vrcp.f32 %v644_v6 }
 0x131   :  { %v1865_v40 = vpop.eup %1864 }
 0x132   :  { %v648_v8 = vmul.f32 %v1865_v40, %v647_v7  ;;  %v1867_v63 = vpop.eup %1866 }
 0x133   :  { %v651_v47 = vsub.f32 1.0, %v1867_v63  ;;  %v653_v48 = vmul.f32 0.0, %v1867_v63 }
 0x134   :  { %v649_v39 = vadd.f32 %v648_v8, %v323_v1 }
 0x136   :  { %1868 = vtanh.f32 %v649_v39 }
 0x140   :  { %v1869_v27 = vpop.eup %1868 }
 0x141   :  { %v652_v20 = vmul.f32 %v1869_v27, %v651_v47 }
 0x143   :  { %v2349_v61 = vadd.f32 %v653_v48, %v652_v20 }
 0x145   :  { %655 = vst [vmem:[%s2697_s5] sm:$0xff] %v2349_v61  ;;  %v662_v9 = vpack.c.bf16 %v2349_v61, %v2349_v61 }
 0x147   :  { %696 = vmatmul.mubr.bf16.vlgmr.msra.gmra.mrb[20].mxu0 %v662_v9  ;;  %1669 = vmatmul.mubr.bf16.vlgmr.msra.gmra.mrb[12].mxu1 %v662_v9 }
 0x148   :  { %776 = vmatpush1.bf16.msra.mxu0 %v2080_v28  ;;  %1673 = vmatpush3.bf16.msra.mxu1 %v2132_v41 }
 0x149   :  { %777 = vmatprep.subr.bf16.mxu0 %v2086_v29  ;;  %1674 = vmatprep.subr.bf16.mxu1 %v2706_v14 }
 0x14a   :  { %807 = vmatprep.mubr.bf16.mxu0 %v2707_v24  ;;  %1688 = vmatprep.mubr.msk.bf16.mxu1 %vm1964_vm0, %v2706_v14 }
 0x14c   :  { %778 = vmatpush1.bf16.msra.mxu0 %v2091_v30  ;;  %1675 = vmatpush3.bf16.msra.mxu1 %v2151_v45 }
 0x14d   :  { %779 = vmatprep.subr.bf16.mxu0 %v2108_v34  ;;  %1676 = vmatprep.subr.bf16.mxu1 %v2706_v14 }
 0x150   :  { %780 = vmatpush1.bf16.msra.mxu0 %v2114_v36  ;;  %1677 = vmatpush3.bf16.msra.mxu1 %v2176_v50 }
 0x151   :  { %781 = vmatprep.subr.bf16.mxu0 %v2120_v37  ;;  %1678 = vmatprep.subr.bf16.mxu1 %v2706_v14 }
 0x154   :  { %782 = vmatpush1.bf16.msra.mxu0 %v2138_v42  ;;  %1679 = vmatpush3.bf16.msra.mxu1 %v2196_v54 }
 0x155   :  { %783 = vmatprep.subr.bf16.mxu0 %v2145_v44  ;;  %1680 = vmatprep.subr.bf16.mxu1 %v2706_v14 }
 0x158   :  { %784 = vmatpush1.bf16.msra.mxu0 %v2158_v46  ;;  %1681 = vmatpush3.bf16.msra.mxu1 %v2217_v57 }
 0x159   :  { %785 = vmatprep.subr.bf16.mxu0 %v2170_v49  ;;  %1682 = vmatprep.subr.bf16.mxu1 %v2706_v14 }
 0x15c   :  { %786 = vmatpush1.bf16.msra.mxu0 %v2183_v52  ;;  %1683 = vmatpush3.bf16.msra.mxu1 %v2232_v59 }
 0x15d   :  { %787 = vmatprep.subr.bf16.mxu0 %v2190_v53  ;;  %1684 = vmatprep.subr.bf16.mxu1 %v2706_v14 }
 0x160   :  { %788 = vmatpush1.bf16.msra.mxu0 %v2205_v55  ;;  %1685 = vmatpush3.bf16.msra.mxu1 %v2241_v60 }
 0x161   :  { %789 = vmatprep.subr.bf16.mxu0 %v2211_v56  ;;  %1686 = vmatprep.subr.bf16.mxu1 %v2706_v14 }
 0x164   :  { %790 = vmatpush1.bf16.msra.mxu0 %v2224_v58  ;;  %1687 = vmatpush3.bf16.msra.mxu1 %v2251_v62 }
 0x165   :  { %887 = vmatprep.subr.bf16.mxu0 %v2072_v26  ;;  %1692 = vmatprep.subr.bf16.mxu1 %v2706_v14 }
 0x21a   :  { %v697_v0 = vpop.f32.mrb[20].mxu0  ;;  %v738_v4 = vpop.f32.mrb[12].mxu1 }
 0x21b   :  { %v744_v11 = vadd.f32 %v697_v0, %v2291_v10  ;;  %v699_v15 = vpop.f32.mrb[21].mxu0  ;;  %v1670_v19 = vpop.f32.mrb[13].mxu1  ;;  %v758_v20 = vadd.f32 %v2345_v5, %v738_v4 }
 0x21c   :  { %v745_v22 = vadd.f32 %v699_v15, %v2293_v13  ;;  %v701_v32 = vpop.f32.mrb[22].mxu0  ;;  %v741_v6 = vpop.f32.mrb[14].mxu1 }
 0x21d   :  { %v1503_v7 = vmul.f32 -1.442695, %v744_v11  ;;  %v702_v40 = vpop.f32.mrb[23].mxu0  ;;  %v1671_v1 = vpop.f32.mrb[15].mxu1 }
 0x21e   :  { %v1504_v8 = vmul.f32 -1.442695, %v745_v22 }
 0x21f   :  { %1870 = vpow2.f32 %v1503_v7 }
 0x220   :  { %1872 = vpow2.f32 %v1504_v8 }
 0x229   :  { %v1871_v39 = vpop.eup %1870 }
 0x22a   :  { %v749_v63 = vadd.f32 1.0, %v1871_v39  ;;  %v1873_v47 = vpop.eup %1872 }
 0x22b   :  { %v755_v27 = vadd.f32 1.0, %v1873_v47 }
 0x22c   :  { %1874 = vrcp.f32 %v749_v63 }
 0x22d   :  { %1876 = vrcp.f32 %v755_v27 }
 0x236   :  { %v1875_v10 = vpop.eup %1874 }
 0x237   :  { %v759_v48 = vmul.f32 %v1875_v10, %v758_v20  ;;  %v1877_v9 = vpop.eup %1876 }
 0x238   :  { %v762_v0 = vsub.f32 1.0, %v1877_v9  ;;  %v764_v19 = vmul.f32 %v1877_v9, %v2349_v61 }
 0x239   :  { %v760_v13 = vadd.f32 %v759_v48, %v2312_v33 }
 0x23b   :  { %1878 = vtanh.f32 %v760_v13 }
 0x245   :  { %v1879_v11 = vpop.eup %1878 }
 0x246   :  { %v763_v15 = vmul.f32 %v1879_v11, %v762_v0 }
 0x248   :  { %v2397_v22 = vadd.f32 %v764_v19, %v763_v15 }
 0x24a   :  { %1505 = vst [vmem:[%s2697_s5 + $0x8] sm:$0xff] %v2397_v22  ;;  %v774_v4 = vpack.c.bf16 %v2397_v22, %v2397_v22 }
 0x24c   :  { %808 = vmatmul.mubr.bf16.vlgmr.msra.gmra.mrb[24].mxu0 %v774_v4  ;;  %1689 = vmatmul.mubr.bf16.vlgmr.msra.gmra.mrb[16].mxu1 %v774_v4 }
 0x24d   :  { %888 = vmatpush1.bf16.msra.mxu0 %v2080_v28  ;;  %1693 = vmatpush3.bf16.msra.mxu1 %v2132_v41 }
 0x24e   :  { %889 = vmatprep.subr.bf16.mxu0 %v2086_v29  ;;  %1694 = vmatprep.subr.bf16.mxu1 %v2706_v14 }
 0x24f   :  { %919 = vmatprep.mubr.bf16.mxu0 %v2707_v24  ;;  %1708 = vmatprep.mubr.msk.bf16.mxu1 %vm1964_vm0, %v2706_v14 }
 0x251   :  { %890 = vmatpush1.bf16.msra.mxu0 %v2091_v30  ;;  %1695 = vmatpush3.bf16.msra.mxu1 %v2151_v45 }
 0x252   :  { %891 = vmatprep.subr.bf16.mxu0 %v2108_v34  ;;  %1696 = vmatprep.subr.bf16.mxu1 %v2706_v14 }
 0x255   :  { %892 = vmatpush1.bf16.msra.mxu0 %v2114_v36  ;;  %1697 = vmatpush3.bf16.msra.mxu1 %v2176_v50 }
 0x256   :  { %893 = vmatprep.subr.bf16.mxu0 %v2120_v37  ;;  %1698 = vmatprep.subr.bf16.mxu1 %v2706_v14 }
 0x259   :  { %894 = vmatpush1.bf16.msra.mxu0 %v2138_v42  ;;  %1699 = vmatpush3.bf16.msra.mxu1 %v2196_v54 }
 0x25a   :  { %895 = vmatprep.subr.bf16.mxu0 %v2145_v44  ;;  %1700 = vmatprep.subr.bf16.mxu1 %v2706_v14 }
 0x25d   :  { %896 = vmatpush1.bf16.msra.mxu0 %v2158_v46  ;;  %1701 = vmatpush3.bf16.msra.mxu1 %v2217_v57 }
 0x25e   :  { %897 = vmatprep.subr.bf16.mxu0 %v2170_v49  ;;  %1702 = vmatprep.subr.bf16.mxu1 %v2706_v14 }
 0x261   :  { %898 = vmatpush1.bf16.msra.mxu0 %v2183_v52  ;;  %1703 = vmatpush3.bf16.msra.mxu1 %v2232_v59 }
 0x262   :  { %899 = vmatprep.subr.bf16.mxu0 %v2190_v53  ;;  %1704 = vmatprep.subr.bf16.mxu1 %v2706_v14 }
 0x265   :  { %900 = vmatpush1.bf16.msra.mxu0 %v2205_v55  ;;  %1705 = vmatpush3.bf16.msra.mxu1 %v2241_v60 }
 0x266   :  { %901 = vmatprep.subr.bf16.mxu0 %v2211_v56  ;;  %1706 = vmatprep.subr.bf16.mxu1 %v2706_v14 }
 0x269   :  { %902 = vmatpush1.bf16.msra.mxu0 %v2224_v58  ;;  %1707 = vmatpush3.bf16.msra.mxu1 %v2251_v62 }
 0x26a   :  { %999 = vmatprep.subr.bf16.mxu0 %v2072_v26  ;;  %1712 = vmatprep.subr.bf16.mxu1 %v2706_v14 }
 0x31f   :  { %v809_v33 = vpop.f32.mrb[24].mxu0  ;;  %v850_v61 = vpop.f32.mrb[16].mxu1 }
 0x320   :  { %v856_v32 = vadd.f32 %v809_v33, %v2297_v16  ;;  %v811_v6 = vpop.f32.mrb[25].mxu0  ;;  %v1690_v7 = vpop.f32.mrb[17].mxu1  ;;  %v870_v9 = vadd.f32 %v2345_v5, %v850_v61 }
 0x321   :  { %v857_v40 = vadd.f32 %v811_v6, %v2299_v18  ;;  %v813_v1 = vpop.f32.mrb[26].mxu0  ;;  %v853_v8 = vpop.f32.mrb[18].mxu1 }
 0x322   :  { %v1506_v39 = vmul.f32 -1.442695, %v856_v32  ;;  %v814_v63 = vpop.f32.mrb[27].mxu0  ;;  %v1691_v47 = vpop.f32.mrb[19].mxu1 }
 0x323   :  { %v1507_v27 = vmul.f32 -1.442695, %v857_v40 }
 0x324   :  { %1880 = vpow2.f32 %v1506_v39 }
 0x325   :  { %1882 = vpow2.f32 %v1507_v27 }
 0x32e   :  { %v1881_v20 = vpop.eup %1880 }
 0x32f   :  { %v861_v10 = vadd.f32 1.0, %v1881_v20  ;;  %v1883_v48 = vpop.eup %1882 }
 0x330   :  { %v867_v13 = vadd.f32 1.0, %v1883_v48 }
 0x331   :  { %1884 = vrcp.f32 %v861_v10 }
 0x332   :  { %1886 = vrcp.f32 %v867_v13 }
 0x33b   :  { %v1885_v16 = vpop.eup %1884 }
 0x33c   :  { %v871_v0 = vmul.f32 %v1885_v16, %v870_v9  ;;  %v1887_v11 = vpop.eup %1886 }
 0x33d   :  { %v874_v15 = vsub.f32 1.0, %v1887_v11  ;;  %v876_v33 = vmul.f32 %v1887_v11, %v2397_v22 }
 0x33e   :  { %v872_v18 = vadd.f32 %v871_v0, %v2304_v23 }
 0x340   :  { %1888 = vtanh.f32 %v872_v18 }
 0x34a   :  { %v1889_v19 = vpop.eup %1888 }
 0x34b   :  { %v875_v4 = vmul.f32 %v1889_v19, %v874_v15 }
 0x34d   :  { %v2445_v32 = vadd.f32 %v876_v33, %v875_v4 }
 0x34f   :  { %1508 = vst [vmem:[%s2697_s5 + $0x10] sm:$0xff] %v2445_v32  ;;  %v886_v61 = vpack.c.bf16 %v2445_v32, %v2445_v32 }
 0x351   :  { %920 = vmatmul.mubr.bf16.vlgmr.msra.gmra.mrb[28].mxu0 %v886_v61  ;;  %1709 = vmatmul.mubr.bf16.vlgmr.msra.gmra.mrb[20].mxu1 %v886_v61 }
 0x352   :  { %1000 = vmatpush1.bf16.msra.mxu0 %v2080_v28  ;;  %1713 = vmatpush3.bf16.msra.mxu1 %v2132_v41 }
 0x353   :  { %1001 = vmatprep.subr.bf16.mxu0 %v2086_v29  ;;  %1714 = vmatprep.subr.bf16.mxu1 %v2706_v14 }
 0x354   :  { %1031 = vmatprep.mubr.bf16.mxu0 %v2707_v24  ;;  %1728 = vmatprep.mubr.msk.bf16.mxu1 %vm1964_vm0, %v2706_v14 }
 0x356   :  { %1002 = vmatpush1.bf16.msra.mxu0 %v2091_v30  ;;  %1715 = vmatpush3.bf16.msra.mxu1 %v2151_v45 }
 0x357   :  { %1003 = vmatprep.subr.bf16.mxu0 %v2108_v34  ;;  %1716 = vmatprep.subr.bf16.mxu1 %v2706_v14 }
 0x35a   :  { %1004 = vmatpush1.bf16.msra.mxu0 %v2114_v36  ;;  %1717 = vmatpush3.bf16.msra.mxu1 %v2176_v50 }
 0x35b   :  { %1005 = vmatprep.subr.bf16.mxu0 %v2120_v37  ;;  %1718 = vmatprep.subr.bf16.mxu1 %v2706_v14 }
 0x35e   :  { %1006 = vmatpush1.bf16.msra.mxu0 %v2138_v42  ;;  %1719 = vmatpush3.bf16.msra.mxu1 %v2196_v54 }
 0x35f   :  { %1007 = vmatprep.subr.bf16.mxu0 %v2145_v44  ;;  %1720 = vmatprep.subr.bf16.mxu1 %v2706_v14 }
 0x362   :  { %1008 = vmatpush1.bf16.msra.mxu0 %v2158_v46  ;;  %1721 = vmatpush3.bf16.msra.mxu1 %v2217_v57 }
 0x363   :  { %1009 = vmatprep.subr.bf16.mxu0 %v2170_v49  ;;  %1722 = vmatprep.subr.bf16.mxu1 %v2706_v14 }
 0x366   :  { %1010 = vmatpush1.bf16.msra.mxu0 %v2183_v52  ;;  %1723 = vmatpush3.bf16.msra.mxu1 %v2232_v59 }
 0x367   :  { %1011 = vmatprep.subr.bf16.mxu0 %v2190_v53  ;;  %1724 = vmatprep.subr.bf16.mxu1 %v2706_v14 }
 0x36a   :  { %1012 = vmatpush1.bf16.msra.mxu0 %v2205_v55  ;;  %1725 = vmatpush3.bf16.msra.mxu1 %v2241_v60 }
 0x36b   :  { %1013 = vmatprep.subr.bf16.mxu0 %v2211_v56  ;;  %1726 = vmatprep.subr.bf16.mxu1 %v2706_v14 }
 0x36e   :  { %1014 = vmatpush1.bf16.msra.mxu0 %v2224_v58  ;;  %1727 = vmatpush3.bf16.msra.mxu1 %v2251_v62 }
 0x36f   :  { %1111 = vmatprep.subr.bf16.mxu0 %v2072_v26  ;;  %1732 = vmatprep.subr.bf16.mxu1 %v2706_v14 }
 0x424   :  { %v921_v23 = vpop.f32.mrb[28].mxu0  ;;  %v962_v22 = vpop.f32.mrb[20].mxu1 }
 0x425   :  { %v968_v6 = vadd.f32 %v921_v23, %v2301_v21  ;;  %v923_v7 = vpop.f32.mrb[29].mxu0  ;;  %v1710_v40 = vpop.f32.mrb[21].mxu1  ;;  %v982_v16 = vadd.f32 %v2345_v5, %v962_v22 }
 0x426   :  { %v969_v1 = vadd.f32 %v923_v7, %v2306_v25  ;;  %v925_v8 = vpop.f32.mrb[30].mxu0  ;;  %v965_v39 = vpop.f32.mrb[22].mxu1 }
 0x427   :  { %v1509_v63 = vmul.f32 -1.442695, %v968_v6  ;;  %v926_v47 = vpop.f32.mrb[31].mxu0  ;;  %v1711_v27 = vpop.f32.mrb[23].mxu1 }
 0x428   :  { %v1510_v20 = vmul.f32 -1.442695, %v969_v1 }
 0x429   :  { %1890 = vpow2.f32 %v1509_v63 }
 0x42a   :  { %1892 = vpow2.f32 %v1510_v20 }
 0x433   :  { %v1891_v10 = vpop.eup %1890 }
 0x434   :  { %v973_v48 = vadd.f32 1.0, %v1891_v10  ;;  %v1893_v13 = vpop.eup %1892 }
 0x435   :  { %v979_v9 = vadd.f32 1.0, %v1893_v13 }
 0x436   :  { %1894 = vrcp.f32 %v973_v48 }
 0x437   :  { %1896 = vrcp.f32 %v979_v9 }
 0x440   :  { %v1895_v21 = vpop.eup %1894 }
 0x441   :  { %v983_v0 = vmul.f32 %v1895_v21, %v982_v16  ;;  %v1897_v18 = vpop.eup %1896 }
 0x442   :  { %v986_v11 = vsub.f32 1.0, %v1897_v18  ;;  %v988_v4 = vmul.f32 %v1897_v18, %v2445_v32 }
 0x443   :  { %v984_v25 = vadd.f32 %v983_v0, %v2309_v31 }
 0x445   :  { %1898 = vtanh.f32 %v984_v25 }
 0x44f   :  { %v1899_v15 = vpop.eup %1898 }
 0x450   :  { %v987_v19 = vmul.f32 %v1899_v15, %v986_v11 }
 0x452   :  { %v2493_v33 = vadd.f32 %v988_v4, %v987_v19 }
 0x454   :  { %1511 = vst [vmem:[%s2697_s5 + $0x18] sm:$0xff] %v2493_v33  ;;  %v998_v61 = vpack.c.bf16 %v2493_v33, %v2493_v33 }
 0x456   :  { %1032 = vmatmul.mubr.bf16.vlgmr.msra.gmra.mrb[32].mxu0 %v998_v61  ;;  %1729 = vmatmul.mubr.bf16.vlgmr.msra.gmra.mrb[24].mxu1 %v998_v61 }
 0x457   :  { %1112 = vmatpush1.bf16.msra.mxu0 %v2080_v28  ;;  %1733 = vmatpush3.bf16.msra.mxu1 %v2132_v41 }
 0x458   :  { %1113 = vmatprep.subr.bf16.mxu0 %v2086_v29  ;;  %1734 = vmatprep.subr.bf16.mxu1 %v2706_v14 }
 0x459   :  { %1143 = vmatprep.mubr.bf16.mxu0 %v2707_v24  ;;  %1748 = vmatprep.mubr.msk.bf16.mxu1 %vm1964_vm0, %v2706_v14 }
 0x45b   :  { %1114 = vmatpush1.bf16.msra.mxu0 %v2091_v30  ;;  %1735 = vmatpush3.bf16.msra.mxu1 %v2151_v45 }
 0x45c   :  { %1115 = vmatprep.subr.bf16.mxu0 %v2108_v34  ;;  %1736 = vmatprep.subr.bf16.mxu1 %v2706_v14 }
 0x45f   :  { %1116 = vmatpush1.bf16.msra.mxu0 %v2114_v36  ;;  %1737 = vmatpush3.bf16.msra.mxu1 %v2176_v50 }
 0x460   :  { %1117 = vmatprep.subr.bf16.mxu0 %v2120_v37  ;;  %1738 = vmatprep.subr.bf16.mxu1 %v2706_v14 }
 0x463   :  { %1118 = vmatpush1.bf16.msra.mxu0 %v2138_v42  ;;  %1739 = vmatpush3.bf16.msra.mxu1 %v2196_v54 }
 0x464   :  { %1119 = vmatprep.subr.bf16.mxu0 %v2145_v44  ;;  %1740 = vmatprep.subr.bf16.mxu1 %v2706_v14 }
 0x467   :  { %1120 = vmatpush1.bf16.msra.mxu0 %v2158_v46  ;;  %1741 = vmatpush3.bf16.msra.mxu1 %v2217_v57 }
 0x468   :  { %1121 = vmatprep.subr.bf16.mxu0 %v2170_v49  ;;  %1742 = vmatprep.subr.bf16.mxu1 %v2706_v14 }
 0x46b   :  { %1122 = vmatpush1.bf16.msra.mxu0 %v2183_v52  ;;  %1743 = vmatpush3.bf16.msra.mxu1 %v2232_v59 }
 0x46c   :  { %1123 = vmatprep.subr.bf16.mxu0 %v2190_v53  ;;  %1744 = vmatprep.subr.bf16.mxu1 %v2706_v14 }
 0x46f   :  { %1124 = vmatpush1.bf16.msra.mxu0 %v2205_v55  ;;  %1745 = vmatpush3.bf16.msra.mxu1 %v2241_v60 }
 0x470   :  { %1125 = vmatprep.subr.bf16.mxu0 %v2211_v56  ;;  %1746 = vmatprep.subr.bf16.mxu1 %v2706_v14 }
 0x473   :  { %1126 = vmatpush1.bf16.msra.mxu0 %v2224_v58  ;;  %1747 = vmatpush3.bf16.msra.mxu1 %v2251_v62 }
 0x474   :  { %1223 = vmatprep.subr.bf16.mxu0 %v2072_v26  ;;  %1752 = vmatprep.subr.bf16.mxu1 %v2706_v14 }
 0x529   :  { %v1033_v28 = vpop.f32.mrb[32].mxu0  ;;  %v1074_v31 = vpop.f32.mrb[24].mxu1 }
 0x52a   :  { %v1080_v32 = vadd.f32 %v1033_v28, %v2314_v38  ;;  %v1035_v23 = vpop.f32.mrb[33].mxu0  ;;  %v1730_v22 = vpop.f32.mrb[25].mxu1  ;;  %v1094_v10 = vadd.f32 %v2345_v5, %v1074_v31  ;;  %v1943_v28 = vld [vmem:[%s2694_s2 + $0x1c] ss:$12 sps:$4 sm:$0xff]   ;;  %v1944_v31 = vld [vmem:[%s2694_s2 + $0x18] ss:$12 sps:$4 sm:$0xff]  }
 0x52b   :  { %v1081_v6 = vadd.f32 %v1035_v23, %v2316_v43  ;;  %v1037_v7 = vpop.f32.mrb[34].mxu0  ;;  %v1077_v40 = vpop.f32.mrb[26].mxu1  ;;  %v1946_v23 = vld [vmem:[%s2694_s2 + $0x34] ss:$12 sps:$4 sm:$0xff]   ;;  %v1948_v22 = vld [vmem:[%s2694_s2 + $0x38] ss:$12 sps:$4 sm:$0xff]  }
 0x52c   :  { %v1512_v1 = vmul.f32 -1.442695, %v1080_v32  ;;  %v1038_v8 = vpop.f32.mrb[35].mxu0  ;;  %v1731_v39 = vpop.f32.mrb[27].mxu1  ;;  %v1945_v32 = vld [vmem:[%s2694_s2 + $0x20] ss:$12 sps:$4 sm:$0xff]  }
 0x52d   :  { %v1513_v63 = vmul.f32 -1.442695, %v1081_v6  ;;  %v1949_v6 = vld [vmem:[%s2694_s2 + $0x4c] ss:$12 sps:$4 sm:$0xff]   ;;  %v1950_v7 = vld [vmem:[%s2694_s2 + $0x48] ss:$12 sps:$4 sm:$0xff]  }
 0x52e   :  { %1900 = vpow2.f32 %v1512_v1  ;;  %v1951_v40 = vld [vmem:[%s2694_s2 + $0x50] ss:$12 sps:$4 sm:$0xff]   ;;  %v1953_v8 = vld [vmem:[%s2694_s2 + $0x60] ss:$12 sps:$4 sm:$0xff]   ;;  %v1954_v39 = vld [vmem:[%s2694_s2 + $0x68] ss:$12 sps:$4 sm:$0xff]  }
 0x52f   :  { %1902 = vpow2.f32 %v1513_v63  ;;  %v1952_v1 = vld [vmem:[%s2694_s2 + $0x64] ss:$12 sps:$4 sm:$0xff]   ;;  %v1955_v63 = vld [vmem:[%s2694_s2 + $0x7c] ss:$12 sps:$4 sm:$0xff]  }
 0x538   :  { %v1901_v47 = vpop.eup %1900 }
 0x539   :  { %v1085_v26 = vadd.f32 1.0, %v1901_v47  ;;  %v1903_v27 = vpop.eup %1902  ;;  %v1956_v47 = vld [vmem:[%s2694_s2 + $0x78] ss:$12 sps:$4 sm:$0xff]  }
 0x53a   :  { %v1091_v20 = vadd.f32 1.0, %v1903_v27  ;;  %v1958_v27 = vld [vmem:[%s2694_s2 + $0x94] ss:$12 sps:$4 sm:$0xff]  }
 0x53b   :  { %1904 = vrcp.f32 %v1085_v26  ;;  %v1957_v26 = vld [vmem:[%s2694_s2 + $0x80] ss:$12 sps:$4 sm:$0xff]  }
 0x53c   :  { %1906 = vrcp.f32 %v1091_v20  ;;  %v1959_v20 = vld [vmem:[%s2694_s2 + $0x90] ss:$12 sps:$4 sm:$0xff]  }
 0x545   :  { %v1905_v38 = vpop.eup %1904 }
 0x546   :  { %v1095_v48 = vmul.f32 %v1905_v38, %v1094_v10  ;;  %v1907_v13 = vpop.eup %1906  ;;  %v1960_v10 = vld [vmem:[%s2694_s2 + $0xac] ss:$12 sps:$4 sm:$0xff]   ;;  %v1961_v38 = vld [vmem:[%s2694_s2 + $0xa8] ss:$12 sps:$4 sm:$0xff]  }
 0x547   :  { %v1098_v9 = vsub.f32 1.0, %v1907_v13  ;;  %v1100_v0 = vmul.f32 %v1907_v13, %v2493_v33 }
 0x548   :  { %v1096_v43 = vadd.f32 %v1095_v48, %v2326_v3  ;;  %v2552_v3 = vld [vmem:[%s2694_s2] ss:$12 sps:$4 sm:$0xff]  }
 0x54a   :  { %1908 = vtanh.f32 %v1096_v43 }
 0x554   :  { %v1909_v16 = vpop.eup %1908 }
 0x555   :  { %v1099_v21 = vmul.f32 %v1909_v16, %v1098_v9  ;;  %v2708_v16 = vld [vmem:[#allocation6_spill] sm:$0xff] }
 0x557   :  { %v2541_v25 = vadd.f32 %v1100_v0, %v1099_v21 }
 0x559   :  { %1514 = vst [vmem:[%s2697_s5 + $0x20] sm:$0xff] %v2541_v25  ;;  %v1110_v18 = vpack.c.bf16 %v2541_v25, %v2541_v25 }
 0x55b   :  { %1144 = vmatmul.mubr.bf16.vlgmr.msra.gmra.mrb[36].mxu0 %v1110_v18  ;;  %1749 = vmatmul.mubr.bf16.vlgmr.msra.gmra.mrb[28].mxu1 %v1110_v18 }
 0x55c   :  { %1224 = vmatpush1.bf16.msra.mxu0 %v2552_v3  ;;  %1753 = vmatpush3.bf16.msra.mxu1 %v2132_v41 }
 0x55d   :  { %1225 = vmatprep.subr.bf16.mxu0 %v2086_v29  ;;  %1754 = vmatprep.subr.bf16.mxu1 %v2706_v14  ;;  %v1941_v29 = vld [vmem:[%s2694_s2 + $0x4] ss:$12 sps:$4 sm:$0xff]  }
 0x55e   :  { %1255 = vmatprep.mubr.bf16.mxu0 %v2707_v24  ;;  %1768 = vmatprep.mubr.msk.bf16.mxu1 %vm1964_vm0, %v2706_v14 }
 0x560   :  { %1226 = vmatpush1.bf16.msra.mxu0 %v2091_v30  ;;  %1755 = vmatpush3.bf16.msra.mxu1 %v2151_v45 }
 0x561   :  { %1227 = vmatprep.subr.bf16.mxu0 %v2108_v34  ;;  %1756 = vmatprep.subr.bf16.mxu1 %v2706_v14 }
 0x564   :  { %1228 = vmatpush1.bf16.msra.mxu0 %v2114_v36  ;;  %1757 = vmatpush3.bf16.msra.mxu1 %v2176_v50 }
 0x565   :  { %1229 = vmatprep.subr.bf16.mxu0 %v2120_v37  ;;  %1758 = vmatprep.subr.bf16.mxu1 %v2706_v14 }
 0x568   :  { %1230 = vmatpush1.bf16.msra.mxu0 %v2138_v42  ;;  %1759 = vmatpush3.bf16.msra.mxu1 %v2196_v54 }
 0x569   :  { %1231 = vmatprep.subr.bf16.mxu0 %v2145_v44  ;;  %1760 = vmatprep.subr.bf16.mxu1 %v2706_v14 }
 0x56c   :  { %1232 = vmatpush1.bf16.msra.mxu0 %v2158_v46  ;;  %1761 = vmatpush3.bf16.msra.mxu1 %v2217_v57 }
 0x56d   :  { %1233 = vmatprep.subr.bf16.mxu0 %v2170_v49  ;;  %1762 = vmatprep.subr.bf16.mxu1 %v2706_v14 }
 0x570   :  { %1234 = vmatpush1.bf16.msra.mxu0 %v2183_v52  ;;  %1763 = vmatpush3.bf16.msra.mxu1 %v2232_v59 }
 0x571   :  { %1235 = vmatprep.subr.bf16.mxu0 %v2190_v53  ;;  %1764 = vmatprep.subr.bf16.mxu1 %v2706_v14 }
 0x574   :  { %1236 = vmatpush1.bf16.msra.mxu0 %v2205_v55  ;;  %1765 = vmatpush3.bf16.msra.mxu1 %v2241_v60 }
 0x575   :  { %1237 = vmatprep.subr.bf16.mxu0 %v2211_v56  ;;  %1766 = vmatprep.subr.bf16.mxu1 %v2706_v14 }
 0x578   :  { %1238 = vmatpush1.bf16.msra.mxu0 %v2224_v58  ;;  %1767 = vmatpush3.bf16.msra.mxu1 %v2251_v62 }
 0x579   :  { %1335 = vmatprep.subr.bf16.mxu0 %v1941_v29  ;;  %1772 = vmatprep.subr.bf16.mxu1 %v2706_v14 }
 0x62e   :  { %v1145_v30 = vpop.f32.mrb[36].mxu0  ;;  %v1186_v34 = vpop.f32.mrb[28].mxu1 }
 0x62f   :  { %v1192_v36 = vadd.f32 %v1145_v30, %v2318_v51  ;;  %v1147_v37 = vpop.f32.mrb[37].mxu0  ;;  %v1750_v41 = vpop.f32.mrb[29].mxu1  ;;  %v1206_v57 = vadd.f32 %v2345_v5, %v1186_v34 }
 0x630   :  { %v1193_v42 = vadd.f32 %v1147_v37, %v2323_v2  ;;  %v1149_v44 = vpop.f32.mrb[38].mxu0  ;;  %v1189_v45 = vpop.f32.mrb[30].mxu1 }
 0x631   :  { %v1515_v46 = vmul.f32 -1.442695, %v1192_v36  ;;  %v1150_v49 = vpop.f32.mrb[39].mxu0  ;;  %v1751_v50 = vpop.f32.mrb[31].mxu1 }
 0x632   :  { %v1516_v52 = vmul.f32 -1.442695, %v1193_v42  ;;  %v2709_v42 = vld [vmem:[#allocation4_spill] sm:$0xff] }
 0x633   :  { %1910 = vpow2.f32 %v1515_v46 }
 0x634   :  { %1912 = vpow2.f32 %v1516_v52 }
 0x63d   :  { %v1911_v53 = vpop.eup %1910 }
 0x63e   :  { %v1197_v54 = vadd.f32 1.0, %v1911_v53  ;;  %v1913_v55 = vpop.eup %1912 }
 0x63f   :  { %v1203_v56 = vadd.f32 1.0, %v1913_v55 }
 0x640   :  { %1914 = vrcp.f32 %v1197_v54 }
 0x641   :  { %1916 = vrcp.f32 %v1203_v56 }
 0x64a   :  { %v1915_v58 = vpop.eup %1914 }
 0x64b   :  { %v1207_v59 = vmul.f32 %v1915_v58, %v1206_v57  ;;  %v1917_v2 = vpop.eup %1916  ;;  %v2710_v57 = vld [vmem:[#allocation7_spill] sm:$0xff] }
 0x64c   :  { %v1210_v11 = vsub.f32 1.0, %v1917_v2  ;;  %v1212_v4 = vmul.f32 %v1917_v2, %v2541_v25 }
 0x64d   :  { %v1208_v51 = vadd.f32 %v1207_v59, %v2332_v12  ;;  %v1942_v12 = vld [vmem:[%s2694_s2 + $0x8] ss:$12 sps:$4 sm:$0xff]  }
 0x64f   :  { %1918 = vtanh.f32 %v1208_v51 }
 0x659   :  { %v1919_v15 = vpop.eup %1918 }
 0x65a   :  { %v1211_v19 = vmul.f32 %v1919_v15, %v1210_v11 }
 0x65c   :  { %v2596_v33 = vadd.f32 %v1212_v4, %v1211_v19 }
 0x65e   :  { %1517 = vst [vmem:[%s2697_s5 + $0x28] sm:$0xff] %v2596_v33  ;;  %v1222_v61 = vpack.c.bf16 %v2596_v33, %v2596_v33 }
 0x660   :  { %1256 = vmatmul.mubr.bf16.vlgmr.msra.gmra.mrb[40].mxu0 %v1222_v61  ;;  %1769 = vmatmul.mubr.bf16.vlgmr.msra.gmra.mrb[32].mxu1 %v1222_v61 }
 0x661   :  { %1336 = vmatpush1.bf16.msra.mxu0 %v2552_v3  ;;  %1773 = vmatpush3.bf16.msra.mxu1 %v1942_v12 }
 0x662   :  { %1337 = vmatprep.subr.bf16.mxu0 %v1943_v28  ;;  %1774 = vmatprep.subr.bf16.mxu1 %v2706_v14 }
 0x663   :  { %1367 = vmatprep.mubr.bf16.mxu0 %v2707_v24  ;;  %1788 = vmatprep.mubr.msk.bf16.mxu1 %vm1964_vm0, %v2706_v14  ;;  %v1947_v24 = vld [vmem:[%s2694_s2 + $0x30] ss:$12 sps:$4 sm:$0xff]  }
 0x665   :  { %1338 = vmatpush1.bf16.msra.mxu0 %v1944_v31  ;;  %1775 = vmatpush3.bf16.msra.mxu1 %v1945_v32 }
 0x666   :  { %1339 = vmatprep.subr.bf16.mxu0 %v1946_v23  ;;  %1776 = vmatprep.subr.bf16.mxu1 %v2706_v14 }
 0x669   :  { %1340 = vmatpush1.bf16.msra.mxu0 %v1947_v24  ;;  %1777 = vmatpush3.bf16.msra.mxu1 %v1948_v22 }
 0x66a   :  { %1341 = vmatprep.subr.bf16.mxu0 %v1949_v6  ;;  %1778 = vmatprep.subr.bf16.mxu1 %v2706_v14  ;;  %v2711_v6 = vld [vmem:[#allocation5_spill] sm:$0xff] }
 0x66d   :  { %1342 = vmatpush1.bf16.msra.mxu0 %v1950_v7  ;;  %1779 = vmatpush3.bf16.msra.mxu1 %v1951_v40 }
 0x66e   :  { %1343 = vmatprep.subr.bf16.mxu0 %v1952_v1  ;;  %1780 = vmatprep.subr.bf16.mxu1 %v2706_v14 }
 0x671   :  { %1344 = vmatpush1.bf16.msra.mxu0 %v1953_v8  ;;  %1781 = vmatpush3.bf16.msra.mxu1 %v1954_v39 }
 0x672   :  { %1345 = vmatprep.subr.bf16.mxu0 %v1955_v63  ;;  %1782 = vmatprep.subr.bf16.mxu1 %v2706_v14 }
 0x675   :  { %1346 = vmatpush1.bf16.msra.mxu0 %v1956_v47  ;;  %1783 = vmatpush3.bf16.msra.mxu1 %v1957_v26 }
 0x676   :  { %1347 = vmatprep.subr.bf16.mxu0 %v1958_v27  ;;  %1784 = vmatprep.subr.bf16.mxu1 %v2706_v14 }
 0x679   :  { %1348 = vmatpush1.bf16.msra.mxu0 %v1959_v20  ;;  %1785 = vmatpush3.bf16.msra.mxu1 %v2241_v60 }
 0x67a   :  { %1349 = vmatprep.subr.bf16.mxu0 %v1960_v10  ;;  %1786 = vmatprep.subr.bf16.mxu1 %v2706_v14 }
 0x67d   :  { %1350 = vmatpush1.bf16.msra.mxu0 %v1961_v38  ;;  %1787 = vmatpush3.bf16.msra.mxu1 %v2251_v62 }
 0x733   :  { %v1257_v48 = vpop.f32.mrb[40].mxu0  ;;  %v1298_v43 = vpop.f32.mrb[32].mxu1 }
 0x734   :  { %v1304_v13 = vadd.f32 %v1257_v48, %v2334_v17  ;;  %v1259_v9 = vpop.f32.mrb[41].mxu0  ;;  %v1770_v60 = vpop.f32.mrb[33].mxu1  ;;  %v1318_v37 = vadd.f32 %v2345_v5, %v1298_v43 }
 0x735   :  { %v1305_v21 = vadd.f32 %v1259_v9, %v2708_v16  ;;  %v1261_v0 = vpop.f32.mrb[42].mxu0  ;;  %v1301_v25 = vpop.f32.mrb[34].mxu1 }
 0x736   :  { %v1518_v18 = vmul.f32 -1.442695, %v1304_v13  ;;  %v1262_v3 = vpop.f32.mrb[43].mxu0  ;;  %v1771_v14 = vpop.f32.mrb[35].mxu1 }
 0x737   :  { %v1519_v29 = vmul.f32 -1.442695, %v1305_v21 }
 0x738   :  { %1920 = vpow2.f32 %v1518_v18 }
 0x739   :  { %1922 = vpow2.f32 %v1519_v29 }
 0x742   :  { %v1921_v30 = vpop.eup %1920 }
 0x743   :  { %v1309_v34 = vadd.f32 1.0, %v1921_v30  ;;  %v1923_v62 = vpop.eup %1922 }
 0x744   :  { %v1315_v36 = vadd.f32 1.0, %v1923_v62 }
 0x745   :  { %1924 = vrcp.f32 %v1309_v34 }
 0x746   :  { %1926 = vrcp.f32 %v1315_v36 }
 0x74f   :  { %v1925_v17 = vpop.eup %1924 }
 0x750   :  { %v1319_v41 = vmul.f32 %v1925_v17, %v1318_v37  ;;  %v1927_v45 = vpop.eup %1926 }
 0x751   :  { %v1322_v46 = vsub.f32 1.0, %v1927_v45  ;;  %v1324_v52 = vmul.f32 %v1927_v45, %v2596_v33 }
 0x752   :  { %v1320_v44 = vadd.f32 %v1319_v41, %v2709_v42 }
 0x754   :  { %1928 = vtanh.f32 %v1320_v44 }
 0x75e   :  { %v1929_v49 = vpop.eup %1928 }
 0x75f   :  { %v1323_v50 = vmul.f32 %v1929_v49, %v1322_v46 }
 0x761   :  { %v1325_v53 = vadd.f32 %v1324_v52, %v1323_v50 }
 0x763   :  { %1520 = vst [vmem:[%s2697_s5 + $0x30] sm:$0xff] %v1325_v53  ;;  %v1334_v54 = vpack.c.bf16 %v1325_v53, %v1325_v53 }
 0x765   :  { %1368 = vmatmul.mubr.bf16.vlgmr.msra.gmra.mrb[44].mxu0 %v1334_v54  ;;  %1789 = vmatmul.mubr.bf16.vlgmr.msra.gmra.mrb[36].mxu1 %v1334_v54 }
 0x838   :  { %v1369_v55 = vpop.f32.mrb[44].mxu0  ;;  %v1410_v56 = vpop.f32.mrb[36].mxu1 }
 0x839   :  { %v1416_v58 = vadd.f32 %v1369_v55, %v2710_v57  ;;  %v1371_v59 = vpop.f32.mrb[45].mxu0  ;;  %v1790_v51 = vpop.f32.mrb[37].mxu1  ;;  %v1430_v23 = vadd.f32 %v2345_v5, %v1410_v56 }
 0x83a   :  { %v1417_v2 = vadd.f32 %v1371_v59, %v2340_v35  ;;  %v1373_v11 = vpop.f32.mrb[46].mxu0  ;;  %v1413_v15 = vpop.f32.mrb[38].mxu1 }
 0x83b   :  { %v1521_v19 = vmul.f32 -1.442695, %v1416_v58  ;;  %v1374_v4 = vpop.f32.mrb[47].mxu0  ;;  %v1791_v33 = vpop.f32.mrb[39].mxu1 }
 0x83c   :  { %v1522_v61 = vmul.f32 -1.442695, %v1417_v2 }
 0x83d   :  { %1930 = vpow2.f32 %v1521_v19 }
 0x83e   :  { %1932 = vpow2.f32 %v1522_v61 }
 0x847   :  { %v1931_v12 = vpop.eup %1930 }
 0x848   :  { %v1421_v28 = vadd.f32 1.0, %v1931_v12  ;;  %v1933_v31 = vpop.eup %1932 }
 0x849   :  { %v1427_v32 = vadd.f32 1.0, %v1933_v31 }
 0x84a   :  { %1934 = vrcp.f32 %v1421_v28 }
 0x84b   :  { %1936 = vrcp.f32 %v1427_v32 }
 0x854   :  { %v1935_v24 = vpop.eup %1934 }
 0x855   :  { %v1431_v22 = vmul.f32 %v1935_v24, %v1430_v23  ;;  %v1937_v7 = vpop.eup %1936 }
 0x856   :  { %v1434_v40 = vsub.f32 1.0, %v1937_v7  ;;  %v1436_v39 = vmul.f32 %v1937_v7, %v1325_v53 }
 0x857   :  { %v1432_v35 = vadd.f32 %v1431_v22, %v2711_v6 }
 0x859   :  { %1938 = vtanh.f32 %v1432_v35 }
 0x863   :  { %v1939_v1 = vpop.eup %1938 }
 0x864   :  { %v1435_v8 = vmul.f32 %v1939_v1, %v1434_v40 }
 0x866   :  { %v1437_v63 = vadd.f32 %v1436_v39, %v1435_v8 }
 0x868   :  { %1523 = vst [vmem:[%s2697_s5 + $0x38] sm:$0xff] %v1437_v63 }

// kernel: gru_model_forward.2
= control target key start
LH: loop header
LB: loop body
LE: loop exit
PB: predicated region body
PF: predicated region fallthrough
CT: control target
= control target key end

     0   :  { %10 = vsyncpa [#allocation5], 0  ;;  %s1814_s18 = smov [#allocation4]   ;;  %s2376_s0 = inlined_call_operand.vmem [shape: f32[64,16], index: 0, kind: input, shape index: {}]   ;;  %s2377_s1 = inlined_call_operand.vmem [shape: bf16[16,384], index: 1, kind: input, shape index: {}]   ;;  %s2378_s2 = inlined_call_operand.hbm [shape: bf16[128,384], index: 2, kind: input, shape index: {}]   ;;  %s2379_s3 = inlined_call_operand.vmem [shape: f32[1,384], index: 3, kind: input, shape index: {}]   ;;  %s2380_s4 = inlined_call_operand.vmem [shape: f32[1,128], index: 4, kind: input, shape index: {}]   ;;  %s2381_s5 = inlined_call_operand.vmem [shape: f32[64,128], index: 5, kind: output, shape index: {}]  }
   0x1   :  { %s20_s19 = sshll.u32 %s1814_s18, 4  ;;  %s1790_s22 = scalar_lea.hbm %s2378_s2, 3072  ;;  %s21_s19 = int_to_ptr.vmem [resolvable:$true] %s20_s19 }
   0x2   :  { %p1791_p0 = scmp.ne.s32.totalorder %s2378_s2, %s1790_s22  ;;  %p1794_p1 = scmp.lt.u32.totalorder %s1790_s22, %s2378_s2 }
   0x4   :  { %p1796_p2 = pnand %p1794_p1, %p1791_p0 }
   0x6   :  { %1799 = shalt.err (!%p1796_p2)
}
   0x7   :  { %s1800_s27 = scalar_lea.vmem %s21_s19, 3072  ;;  %p1805_p4 = scmp.lt.s32.totalorder %s21_s19, %s21_s19 }
   0x8   :  { %p1801_p3 = scmp.ne.s32.totalorder %s21_s19, %s1800_s27  ;;  %p1806_p5 = scmp.lt.s32.totalorder %s1800_s27, %s1800_s27 }
   0xa   :  { %p1807_p6 = por %p1806_p5, %p1805_p4 }
   0xc   :  { %p1808_p7 = pnand %p1807_p6, %p1801_p3 }
   0xe   :  { %1811 = shalt.err (!%p1808_p7)
}
   0xf   :  { %s1815_s28 = smov 192   ;;  %s1816_s29 = smov 12  }
  0x10   :  { %26 = dma.hbm_to_vmem [thread:$0]  %s2378_s2, 3072, %s21_s19, [#allocation5], %s1815_s28, %s1815_s28, %s1816_s29  }
  0x11   :  { %1812 = dma.done.wait [#allocation5], 3072  }
  0x12   :  { %1813 = vsyncadd [#allocation5], 4294964224  ;;  %v2382_v0 = vmov 0   ;;  %v1653_v1 = vld [vmem:[%s2377_s1 + $0x4] ss:$12 sps:$4 sm:$0xff]   ;;  %v41_v4 = vld [vmem:[%s2376_s0 + $0x8] sm:$0xff]  ;;  %v58_v42 = vlaneseq }
  0x13   :  { %134 = vmatprep.mubr.bf16.mxu0 %v2382_v0  ;;  %v1655_v2 = vld [vmem:[%s2377_s1] ss:$12 sps:$4 sm:$0xff]   ;;  %102 = vmatprep.subr.bf16.mxu0 %v1653_v1  ;;  %v1876_v6 = vld [vmem:[#allocation4 + $0x4] ss:$12 sps:$4 sm:$0xff]   ;;  %vm89_vm0 = vcmask 130048   ;;  %v43_v11 = vld [vmem:[%s2376_s0 + $0x18] sm:$0xff] }
  0x14   :  { %v40_v3 = vld [vmem:[%s2376_s0] sm:$0xff]  ;;  %103 = vmatpush1.bf16.msra.mxu0 %v1655_v2  ;;  %v1881_v8 = vld [vmem:[#allocation4 + $0x1c] ss:$12 sps:$4 sm:$0xff]   ;;  %v42_v10 = vld [vmem:[%s2376_s0 + $0x10] sm:$0xff]  ;;  %v2384_v20 = vmov 0.0   ;;  %vm1819_vm1 = vmmov 0  }
  0x15   :  { %v48_v5 = vpack.c.bf16 %v41_v4, %v40_v3  ;;  %v1878_v7 = vld [vmem:[#allocation4] ss:$12 sps:$4 sm:$0xff]   ;;  %439 = vmatprep.subr.bf16.mxu0 %v1876_v6  ;;  %v1885_v9 = vld [vmem:[#allocation4 + $0x18] ss:$12 sps:$4 sm:$0xff]   ;;  %v49_v13 = vpack.c.bf16 %v43_v11, %v42_v10  ;;  %v1671_v14 = vld [vmem:[%s2377_s1 + $0x8] ss:$12 sps:$4 sm:$0xff]  }
  0x16   :  { %v1896_v12 = vld [vmem:[#allocation4 + $0x34] ss:$12 sps:$4 sm:$0xff]   ;;  %v1902_v15 = vld [vmem:[#allocation4 + $0x30] ss:$12 sps:$4 sm:$0xff]   ;;  %v1905_v16 = vld [vmem:[#allocation4 + $0x4c] ss:$12 sps:$4 sm:$0xff]   ;;  %1476 = vmatprep.subr.bf16.mxu1 %v1671_v14 }
  0x17   :  { %1478 = vmatprep.mubr.msk.bf16.mxu1 %vm89_vm0, %v48_v5  ;;  %1343 = vmatmul.mubr.msk.bf16.vlgmr.msra.gmra.mrb[0].mxu0 %vm89_vm0, %v48_v5  ;;  %v44_v17 = vld [vmem:[%s2376_s0 + $0x20] sm:$0xff]  ;;  %v45_v18 = vld [vmem:[%s2376_s0 + $0x28] sm:$0xff]  ;;  %v46_v26 = vld [vmem:[%s2376_s0 + $0x30] sm:$0xff]  ;;  %v1820_v40 = vmov 0.0|0.0   ;;  %v59_v43 = vshrl.u32 %v58_v42, 7 }
  0x18   :  { %440 = vmatpush1.bf16.msra.mxu0 %v1878_v7  ;;  %144 = vmatprep.mubr.bf16.mxu0 %v2382_v0  ;;  %v1914_v19 = vld [vmem:[#allocation4 + $0x48] ss:$12 sps:$4 sm:$0xff]   ;;  %v50_v21 = vpack.c.bf16 %v45_v18, %v44_v17  ;;  %v1922_v23 = vld [vmem:[#allocation4 + $0x64] ss:$12 sps:$4 sm:$0xff]   ;;  %v1925_v24 = vld [vmem:[#allocation4 + $0x60] ss:$12 sps:$4 sm:$0xff]  }
  0x19   :  { %441 = vmatprep.subr.bf16.mxu0 %v1881_v8  ;;  %1477 = vmatpush3.bf16.msra.mxu1 %v1671_v14  ;;  %v1919_v22 = vld [vmem:[#allocation4 + $0x8] ss:$12 sps:$4 sm:$0xff]   ;;  %v1928_v25 = vld [vmem:[#allocation4 + $0x20] ss:$12 sps:$4 sm:$0xff]   ;;  %v47_v27 = vld [vmem:[%s2376_s0 + $0x38] sm:$0xff]  ;;  %v60_v44 = vsub.s32 0, %v59_v43 }
  0x1a   :  { %1486 = vmatprep.subr.bf16.mxu1 %v2384_v20  ;;  %v1940_v28 = vld [vmem:[#allocation4 + $0x7c] ss:$12 sps:$4 sm:$0xff]   ;;  %v1943_v29 = vld [vmem:[#allocation4 + $0x38] ss:$12 sps:$4 sm:$0xff]   ;;  %v51_v30 = vpack.c.bf16 %v47_v27, %v46_v26  ;;  %v1952_v32 = vld [vmem:[#allocation4 + $0x94] ss:$12 sps:$4 sm:$0xff]  }
  0x1b   :  { %v1948_v31 = vld [vmem:[#allocation4 + $0x78] ss:$12 sps:$4 sm:$0xff]   ;;  %v1956_v33 = vld [vmem:[#allocation4 + $0x50] ss:$12 sps:$4 sm:$0xff]   ;;  %v1968_v36 = vld [vmem:[#allocation4 + $0x68] ss:$12 sps:$4 sm:$0xff]  }
  0x1c   :  { %442 = vmatpush1.bf16.msra.mxu0 %v1885_v9  ;;  %1479 = vmatmul.mubr.msk.bf16.vlgmr.msra.gmra.mrb[0].mxu1 %vm89_vm0, %v49_v13  ;;  %v1962_v34 = vld [vmem:[#allocation4 + $0x90] ss:$12 sps:$4 sm:$0xff]   ;;  %v1965_v35 = vld [vmem:[#allocation4 + $0xac] ss:$12 sps:$4 sm:$0xff]   ;;  %v1973_v37 = vld [vmem:[#allocation4 + $0xa8] ss:$12 sps:$4 sm:$0xff]  }
  0x1d   :  { %443 = vmatprep.subr.bf16.mxu0 %v1896_v12  ;;  %1487 = vmatpush3.bf16.msra.mxu1 %v1919_v22  ;;  %v1978_v38 = vld [vmem:[#allocation4 + $0x80] ss:$12 sps:$4 sm:$0xff]   ;;  %v1984_v39 = vld [vmem:[#allocation4 + $0x98] ss:$12 sps:$4 sm:$0xff]   ;;  %v1991_v41 = vld [vmem:[#allocation4 + $0xb0] ss:$12 sps:$4 sm:$0xff]  }
  0x1e   :  { %1482 = vmatprep.mubr.msk.bf16.mxu1 %vm89_vm0, %v50_v21  ;;  %1488 = vmatprep.subr.bf16.mxu1 %v2384_v20  ;;  %v56_v45 = vld [vmem:[%s2379_s3] sm:$0x7]  ;;  %v64_v46 = vsub.s32 1, %v59_v43  ;;  %v68_v54 = vsub.s32 2, %v59_v43 }
  0x1f   :  { %1344 = vmatmul.mubr.msk.bf16.gmra.mrb[4].mxu0 %vm89_vm0, %v49_v13  ;;  %v61_v48 = vrot.slane %v56_v45, %v60_v44 }
  0x20   :  { %444 = vmatpush1.bf16.msra.mxu0 %v1902_v15  ;;  %154 = vmatprep.mubr.bf16.mxu0 %v2382_v0  ;;  %v65_v50 = vrot.slane %v56_v45, %v64_v46  ;;  %v2035_v56 = vrot.slane %v56_v45, %v68_v54 }
  0x21   :  { %445 = vmatprep.subr.bf16.mxu0 %v1905_v16  ;;  %1489 = vmatpush3.bf16.msra.mxu1 %v1928_v25 }
  0x22   :  { %1490 = vmatprep.subr.bf16.mxu1 %v2384_v20 }
  0x24   :  { %446 = vmatpush1.bf16.msra.mxu0 %v1914_v19  ;;  %1483 = vmatmul.mubr.msk.bf16.gmra.mrb[4].mxu1 %vm89_vm0, %v51_v30 }
  0x25   :  { %447 = vmatprep.subr.bf16.mxu0 %v1922_v23  ;;  %1491 = vmatpush3.bf16.msra.mxu1 %v1943_v29 }
  0x26   :  { %1502 = vmatprep.mubr.msk.bf16.mxu1 %vm1819_vm1, %v2384_v20  ;;  %1492 = vmatprep.subr.bf16.mxu1 %v2384_v20 }
  0x27   :  { %1345 = vmatmul.mubr.msk.bf16.gmra.mrb[8].mxu0 %vm89_vm0, %v50_v21 }
  0x28   :  { %448 = vmatpush1.bf16.msra.mxu0 %v1925_v24  ;;  %164 = vmatprep.mubr.bf16.mxu0 %v2382_v0 }
  0x29   :  { %449 = vmatprep.subr.bf16.mxu0 %v1940_v28  ;;  %1493 = vmatpush3.bf16.msra.mxu1 %v1956_v33 }
  0x2a   :  { %1494 = vmatprep.subr.bf16.mxu1 %v2384_v20 }
  0x2c   :  { %450 = vmatpush1.bf16.msra.mxu0 %v1948_v31 }
  0x2d   :  { %451 = vmatprep.subr.bf16.mxu0 %v1952_v32  ;;  %1495 = vmatpush3.bf16.msra.mxu1 %v1968_v36 }
  0x2e   :  { %1496 = vmatprep.subr.bf16.mxu1 %v2384_v20 }
  0x2f   :  { %1346 = vmatmul.mubr.msk.bf16.gmra.mrb[12].mxu0 %vm89_vm0, %v51_v30 }
  0x30   :  { %452 = vmatpush1.bf16.msra.mxu0 %v1962_v34  ;;  %471 = vmatprep.mubr.bf16.mxu0 %v2382_v0 }
  0x31   :  { %453 = vmatprep.subr.bf16.mxu0 %v1965_v35  ;;  %1497 = vmatpush3.bf16.msra.mxu1 %v1978_v38 }
  0x32   :  { %1498 = vmatprep.subr.bf16.mxu1 %v2384_v20 }
  0x34   :  { %454 = vmatpush1.bf16.msra.mxu0 %v1973_v37 }
  0x35   :  { %550 = vmatprep.subr.bf16.mxu0 %v1876_v6  ;;  %1499 = vmatpush3.bf16.msra.mxu1 %v1984_v39 }
  0x36   :  { %1500 = vmatprep.subr.bf16.mxu1 %v2384_v20 }
  0x37   :  { %472 = vmatmul.mubr.bf16.vlgmr.msra.gmra.mrb[16].mxu0 %v1820_v40 }
  0x38   :  { %551 = vmatpush1.bf16.msra.mxu0 %v1878_v7  ;;  %582 = vmatprep.mubr.bf16.mxu0 %v2382_v0 }
  0x39   :  { %552 = vmatprep.subr.bf16.mxu0 %v1881_v8  ;;  %1501 = vmatpush3.bf16.msra.mxu1 %v1991_v41 }
  0x3a   :  { %1506 = vmatprep.subr.bf16.mxu1 %v2384_v20 }
  0x3c   :  { %553 = vmatpush1.bf16.msra.mxu0 %v1885_v9  ;;  %1503 = vmatmul.mubr.bf16.vlgmr.msra.gmra.mrb[8].mxu1 %v1820_v40 }
  0x3d   :  { %554 = vmatprep.subr.bf16.mxu0 %v1896_v12  ;;  %1507 = vmatpush3.bf16.msra.mxu1 %v1919_v22 }
  0x3e   :  { %1522 = vmatprep.mubr.msk.bf16.mxu1 %vm1819_vm1, %v2384_v20  ;;  %1508 = vmatprep.subr.bf16.mxu1 %v2384_v20 }
  0x40   :  { %555 = vmatpush1.bf16.msra.mxu0 %v1902_v15 }
  0x41   :  { %556 = vmatprep.subr.bf16.mxu0 %v1905_v16  ;;  %1509 = vmatpush3.bf16.msra.mxu1 %v1928_v25 }
  0x42   :  { %1510 = vmatprep.subr.bf16.mxu1 %v2384_v20 }
  0x44   :  { %557 = vmatpush1.bf16.msra.mxu0 %v1914_v19 }
  0x45   :  { %558 = vmatprep.subr.bf16.mxu0 %v1922_v23  ;;  %1511 = vmatpush3.bf16.msra.mxu1 %v1943_v29 }
  0x46   :  { %1512 = vmatprep.subr.bf16.mxu1 %v2384_v20 }
  0x48   :  { %559 = vmatpush1.bf16.msra.mxu0 %v1925_v24 }
  0x49   :  { %560 = vmatprep.subr.bf16.mxu0 %v1940_v28  ;;  %1513 = vmatpush3.bf16.msra.mxu1 %v1956_v33 }
  0x4a   :  { %1514 = vmatprep.subr.bf16.mxu1 %v2384_v20 }
  0x4c   :  { %561 = vmatpush1.bf16.msra.mxu0 %v1948_v31 }
  0x4d   :  { %562 = vmatprep.subr.bf16.mxu0 %v1952_v32  ;;  %1515 = vmatpush3.bf16.msra.mxu1 %v1968_v36 }
  0x4e   :  { %1516 = vmatprep.subr.bf16.mxu1 %v2384_v20 }
  0x50   :  { %563 = vmatpush1.bf16.msra.mxu0 %v1962_v34 }
  0x51   :  { %564 = vmatprep.subr.bf16.mxu0 %v1965_v35  ;;  %1517 = vmatpush3.bf16.msra.mxu1 %v1978_v38 }
  0x52   :  { %1518 = vmatprep.subr.bf16.mxu1 %v2384_v20 }
  0x54   :  { %565 = vmatpush1.bf16.msra.mxu0 %v1973_v37 }
  0x55   :  { %662 = vmatprep.subr.bf16.mxu0 %v1876_v6  ;;  %1519 = vmatpush3.bf16.msra.mxu1 %v1984_v39 }
  0x56   :  { %1520 = vmatprep.subr.bf16.mxu1 %v2384_v20 }
  0x59   :  { %1521 = vmatpush3.bf16.msra.mxu1 %v1991_v41 }
  0x5a   :  { %1526 = vmatprep.subr.bf16.mxu1 %v2384_v20 }
  0xea   :  { %v136_v47 = vpop.f32.mrb[0].mxu0 }
  0xeb   :  { %v138_v49 = vpop.f32.mrb[1].mxu0 }
  0xec   :  { %v140_v51 = vpop.f32.mrb[2].mxu0 }
  0xed   :  { %v2031_v52 = vadd.f32 %v140_v51, %v61_v48  ;;  %v142_v53 = vpop.f32.mrb[3].mxu0 }
  0xee   :  { %v2033_v55 = vadd.f32 %v142_v53, %v65_v50 }
  0xef   :  { %v1480_v62 = vpop.f32.mrb[0].mxu1 }
  0xf0   :  { %v2044_v2 = vadd.f32 %v1480_v62, %v2035_v56  ;;  %v209_v3 = vpop.f32.mrb[1].mxu1 }
  0xf1   :  { %v1481_v5 = vpop.f32.mrb[2].mxu1 }
  0xf2   :  { %v146_v57 = vpop.f32.mrb[4].mxu0  ;;  %v2049_v10 = vadd.f32 %v1481_v5, %v2035_v56  ;;  %v212_v11 = vpop.f32.mrb[3].mxu1 }
  0xf3   :  { %v2037_v58 = vadd.f32 %v146_v57, %v61_v48  ;;  %v148_v59 = vpop.f32.mrb[5].mxu0  ;;  %v2052_v13 = vadd.f32 %v212_v11, %v2035_v56 }
  0xf4   :  { %v2039_v60 = vadd.f32 %v148_v59, %v65_v50  ;;  %v150_v61 = vpop.f32.mrb[6].mxu0 }
  0xf5   :  { %v2041_v63 = vadd.f32 %v150_v61, %v61_v48  ;;  %v152_v1 = vpop.f32.mrb[7].mxu0 }
  0xf6   :  { %v2046_v4 = vadd.f32 %v152_v1, %v65_v50 }
  0xf7   :  { %v1484_v27 = vpop.f32.mrb[4].mxu1 }
  0xf8   :  { %v2061_v42 = vadd.f32 %v1484_v27, %v2035_v56  ;;  %v225_v43 = vpop.f32.mrb[5].mxu1 }
  0xf9   :  { %v2066_v45 = vadd.f32 %v225_v43, %v2035_v56  ;;  %v1485_v46 = vpop.f32.mrb[6].mxu1 }
  0xfa   :  { %v156_v14 = vpop.f32.mrb[8].mxu0  ;;  %2386 = vst [vmem:[#allocation7_spill] sm:$0xff] %v2061_v42  ;;  %v2069_v51 = vadd.f32 %v1485_v46, %v2035_v56  ;;  %v228_v53 = vpop.f32.mrb[7].mxu1 }
  0xfb   :  { %v2054_v17 = vadd.f32 %v156_v14, %v61_v48  ;;  %v158_v18 = vpop.f32.mrb[9].mxu0  ;;  %v2072_v54 = vadd.f32 %v228_v53, %v2035_v56 }
  0xfc   :  { %v2056_v21 = vadd.f32 %v158_v18, %v65_v50  ;;  %v160_v26 = vpop.f32.mrb[10].mxu0  ;;  %2387 = vst [vmem:[#allocation8_spill] sm:$0xff] %v2069_v51  ;;  %v137_v18 = vadd.f32 %v136_v47, %v61_v48  ;;  %v2085_v47 = vld [vmem:[%s2380_s4] ss:$0 sm:$0xff] }
  0xfd   :  { %v2058_v30 = vadd.f32 %v160_v26, %v61_v48  ;;  %v162_v40 = vpop.f32.mrb[11].mxu0  ;;  %v139_v26 = vadd.f32 %v138_v49, %v65_v50 }
  0xfe   :  { %v2063_v44 = vadd.f32 %v162_v40, %v65_v50 }
 0x102   :  { %v166_v57 = vpop.f32.mrb[12].mxu0 }
 0x103   :  { %v2074_v59 = vadd.f32 %v166_v57, %v61_v48  ;;  %v168_v61 = vpop.f32.mrb[13].mxu0 }
 0x104   :  { %v2076_v62 = vadd.f32 %v168_v61, %v65_v50  ;;  %v170_v1 = vpop.f32.mrb[14].mxu0 }
 0x105   :  { %v2078_v5 = vadd.f32 %v170_v1, %v61_v48  ;;  %v172_v11 = vpop.f32.mrb[15].mxu0 }
 0x106   :  { %2388 = vst [vmem:[#allocation9_spill] sm:$0xff] %v2076_v62  ;;  %v2080_v14 = vadd.f32 %v172_v11, %v65_v50 }
 0x107   :  { %2389 = vst [vmem:[#allocation10_spill] sm:$0xff] %v2078_v5 }
 0x10a   :  { %v473_v27 = vpop.f32.mrb[16].mxu0 }
 0x10b   :  { %v520_v40 = vadd.f32 %v473_v27, %v137_v18  ;;  %v475_v43 = vpop.f32.mrb[17].mxu0 }
 0x10c   :  { %v521_v46 = vadd.f32 %v475_v43, %v139_v26  ;;  %v477_v53 = vpop.f32.mrb[18].mxu0 }
 0x10d   :  { %v1376_v0 = vmul.f32 -1.442695, %v520_v40  ;;  %v478_v20 = vpop.f32.mrb[19].mxu0 }
 0x10e   :  { %v1377_v57 = vmul.f32 -1.442695, %v521_v46 }
 0x10f   :  { %1689 = vpow2.f32 %v1376_v0  ;;  %v514_v51 = vpop.f32.mrb[8].mxu1  ;;  %v210_v0 = vadd.f32 %v209_v3, %v2035_v56  ;;  %v2390_v56 = vmov 0.0   ;;  %v2391_v3 = vmov 0  }
 0x110   :  { %v1504_v61 = vpop.f32.mrb[9].mxu1  ;;  %1691 = vpow2.f32 %v1377_v57  ;;  %v534_v49 = vadd.f32 %v2085_v47, %v514_v51 }
 0x111   :  { %v517_v42 = vpop.f32.mrb[10].mxu1 }
 0x112   :  { %v1505_v1 = vpop.f32.mrb[11].mxu1 }
 0x119   :  { %v1690_v5 = vpop.eup %1689 }
 0x11a   :  { %v525_v62 = vadd.f32 1.0, %v1690_v5  ;;  %v1692_v11 = vpop.eup %1691 }
 0x11b   :  { %v531_v48 = vadd.f32 1.0, %v1692_v11 }
 0x11c   :  { %1693 = vrcp.f32 %v525_v62 }
 0x11d   :  { %1695 = vrcp.f32 %v531_v48 }
 0x126   :  { %v1694_v20 = vpop.eup %1693 }
 0x127   :  { %v535_v50 = vmul.f32 %v1694_v20, %v534_v49  ;;  %v1696_v42 = vpop.eup %1695 }
 0x128   :  { %v538_v26 = vsub.f32 1.0, %v1696_v42  ;;  %v540_v27 = vmul.f32 0.0, %v1696_v42 }
 0x129   :  { %v536_v18 = vadd.f32 %v535_v50, %v210_v0 }
 0x12b   :  { %1697 = vtanh.f32 %v536_v18 }
 0x135   :  { %v1698_v5 = vpop.eup %1697 }
 0x136   :  { %v539_v62 = vmul.f32 %v1698_v5, %v538_v26 }
 0x138   :  { %v2089_v40 = vadd.f32 %v540_v27, %v539_v62 }
 0x13a   :  { %542 = vst [vmem:[%s2381_s5] sm:$0xff] %v2089_v40  ;;  %v549_v51 = vpack.c.bf16 %v2089_v40, %v2089_v40 }
 0x13c   :  { %583 = vmatmul.mubr.bf16.vlgmr.msra.gmra.mrb[20].mxu0 %v549_v51  ;;  %1523 = vmatmul.mubr.bf16.vlgmr.msra.gmra.mrb[12].mxu1 %v549_v51 }
 0x13d   :  { %663 = vmatpush1.bf16.msra.mxu0 %v1878_v7  ;;  %1527 = vmatpush3.bf16.msra.mxu1 %v1919_v22 }
 0x13e   :  { %664 = vmatprep.subr.bf16.mxu0 %v1881_v8  ;;  %1528 = vmatprep.subr.bf16.mxu1 %v2390_v56 }
 0x13f   :  { %694 = vmatprep.mubr.bf16.mxu0 %v2391_v3  ;;  %1542 = vmatprep.mubr.msk.bf16.mxu1 %vm1819_vm1, %v2390_v56 }
 0x141   :  { %665 = vmatpush1.bf16.msra.mxu0 %v1885_v9  ;;  %1529 = vmatpush3.bf16.msra.mxu1 %v1928_v25 }
 0x142   :  { %666 = vmatprep.subr.bf16.mxu0 %v1896_v12  ;;  %1530 = vmatprep.subr.bf16.mxu1 %v2390_v56 }
 0x145   :  { %667 = vmatpush1.bf16.msra.mxu0 %v1902_v15  ;;  %1531 = vmatpush3.bf16.msra.mxu1 %v1943_v29 }
 0x146   :  { %668 = vmatprep.subr.bf16.mxu0 %v1905_v16  ;;  %1532 = vmatprep.subr.bf16.mxu1 %v2390_v56 }
 0x149   :  { %669 = vmatpush1.bf16.msra.mxu0 %v1914_v19  ;;  %1533 = vmatpush3.bf16.msra.mxu1 %v1956_v33 }
 0x14a   :  { %670 = vmatprep.subr.bf16.mxu0 %v1922_v23  ;;  %1534 = vmatprep.subr.bf16.mxu1 %v2390_v56 }
 0x14d   :  { %671 = vmatpush1.bf16.msra.mxu0 %v1925_v24  ;;  %1535 = vmatpush3.bf16.msra.mxu1 %v1968_v36 }
 0x14e   :  { %672 = vmatprep.subr.bf16.mxu0 %v1940_v28  ;;  %1536 = vmatprep.subr.bf16.mxu1 %v2390_v56 }
 0x151   :  { %673 = vmatpush1.bf16.msra.mxu0 %v1948_v31  ;;  %1537 = vmatpush3.bf16.msra.mxu1 %v1978_v38 }
 0x152   :  { %674 = vmatprep.subr.bf16.mxu0 %v1952_v32  ;;  %1538 = vmatprep.subr.bf16.mxu1 %v2390_v56 }
 0x155   :  { %675 = vmatpush1.bf16.msra.mxu0 %v1962_v34  ;;  %1539 = vmatpush3.bf16.msra.mxu1 %v1984_v39 }
 0x156   :  { %676 = vmatprep.subr.bf16.mxu0 %v1965_v35  ;;  %1540 = vmatprep.subr.bf16.mxu1 %v2390_v56 }
 0x159   :  { %677 = vmatpush1.bf16.msra.mxu0 %v1973_v37  ;;  %1541 = vmatpush3.bf16.msra.mxu1 %v1991_v41 }
 0x15a   :  { %774 = vmatprep.subr.bf16.mxu0 %v1876_v6  ;;  %1546 = vmatprep.subr.bf16.mxu1 %v2390_v56 }
 0x20f   :  { %v584_v43 = vpop.f32.mrb[20].mxu0  ;;  %v625_v46 = vpop.f32.mrb[12].mxu1 }
 0x210   :  { %v631_v53 = vadd.f32 %v584_v43, %v2031_v52  ;;  %v586_v57 = vpop.f32.mrb[21].mxu0  ;;  %v1524_v61 = vpop.f32.mrb[13].mxu1  ;;  %v645_v62 = vadd.f32 %v2085_v47, %v625_v46 }
 0x211   :  { %v632_v1 = vadd.f32 %v586_v57, %v2033_v55  ;;  %v588_v11 = vpop.f32.mrb[22].mxu0  ;;  %v628_v48 = vpop.f32.mrb[14].mxu1 }
 0x212   :  { %v1378_v49 = vmul.f32 -1.442695, %v631_v53  ;;  %v589_v20 = vpop.f32.mrb[23].mxu0  ;;  %v1525_v0 = vpop.f32.mrb[15].mxu1 }
 0x213   :  { %v1379_v50 = vmul.f32 -1.442695, %v632_v1 }
 0x214   :  { %1699 = vpow2.f32 %v1378_v49 }
 0x215   :  { %1701 = vpow2.f32 %v1379_v50 }
 0x21e   :  { %v1700_v18 = vpop.eup %1699 }
 0x21f   :  { %v636_v42 = vadd.f32 1.0, %v1700_v18  ;;  %v1702_v26 = vpop.eup %1701 }
 0x220   :  { %v642_v5 = vadd.f32 1.0, %v1702_v26 }
 0x221   :  { %1703 = vrcp.f32 %v636_v42 }
 0x222   :  { %1705 = vrcp.f32 %v642_v5 }
 0x22b   :  { %v1704_v52 = vpop.eup %1703 }
 0x22c   :  { %v646_v27 = vmul.f32 %v1704_v52, %v645_v62  ;;  %v1706_v51 = vpop.eup %1705 }
 0x22d   :  { %v649_v43 = vsub.f32 1.0, %v1706_v51  ;;  %v651_v61 = vmul.f32 %v1706_v51, %v2089_v40 }
 0x22e   :  { %v647_v55 = vadd.f32 %v646_v27, %v2052_v13 }
 0x230   :  { %1707 = vtanh.f32 %v647_v55 }
 0x23a   :  { %v1708_v53 = vpop.eup %1707 }
 0x23b   :  { %v650_v57 = vmul.f32 %v1708_v53, %v649_v43 }
 0x23d   :  { %v2137_v1 = vadd.f32 %v651_v61, %v650_v57 }
 0x23f   :  { %1380 = vst [vmem:[%s2381_s5 + $0x8] sm:$0xff] %v2137_v1  ;;  %v661_v46 = vpack.c.bf16 %v2137_v1, %v2137_v1 }
 0x241   :  { %695 = vmatmul.mubr.bf16.vlgmr.msra.gmra.mrb[24].mxu0 %v661_v46  ;;  %1543 = vmatmul.mubr.bf16.vlgmr.msra.gmra.mrb[16].mxu1 %v661_v46 }
 0x242   :  { %775 = vmatpush1.bf16.msra.mxu0 %v1878_v7  ;;  %1547 = vmatpush3.bf16.msra.mxu1 %v1919_v22 }
 0x243   :  { %776 = vmatprep.subr.bf16.mxu0 %v1881_v8  ;;  %1548 = vmatprep.subr.bf16.mxu1 %v2390_v56 }
 0x244   :  { %806 = vmatprep.mubr.bf16.mxu0 %v2391_v3  ;;  %1562 = vmatprep.mubr.msk.bf16.mxu1 %vm1819_vm1, %v2390_v56 }
 0x246   :  { %777 = vmatpush1.bf16.msra.mxu0 %v1885_v9  ;;  %1549 = vmatpush3.bf16.msra.mxu1 %v1928_v25 }
 0x247   :  { %778 = vmatprep.subr.bf16.mxu0 %v1896_v12  ;;  %1550 = vmatprep.subr.bf16.mxu1 %v2390_v56 }
 0x24a   :  { %779 = vmatpush1.bf16.msra.mxu0 %v1902_v15  ;;  %1551 = vmatpush3.bf16.msra.mxu1 %v1943_v29 }
 0x24b   :  { %780 = vmatprep.subr.bf16.mxu0 %v1905_v16  ;;  %1552 = vmatprep.subr.bf16.mxu1 %v2390_v56 }
 0x24e   :  { %781 = vmatpush1.bf16.msra.mxu0 %v1914_v19  ;;  %1553 = vmatpush3.bf16.msra.mxu1 %v1956_v33 }
 0x24f   :  { %782 = vmatprep.subr.bf16.mxu0 %v1922_v23  ;;  %1554 = vmatprep.subr.bf16.mxu1 %v2390_v56 }
 0x252   :  { %783 = vmatpush1.bf16.msra.mxu0 %v1925_v24  ;;  %1555 = vmatpush3.bf16.msra.mxu1 %v1968_v36 }
 0x253   :  { %784 = vmatprep.subr.bf16.mxu0 %v1940_v28  ;;  %1556 = vmatprep.subr.bf16.mxu1 %v2390_v56 }
 0x256   :  { %785 = vmatpush1.bf16.msra.mxu0 %v1948_v31  ;;  %1557 = vmatpush3.bf16.msra.mxu1 %v1978_v38 }
 0x257   :  { %786 = vmatprep.subr.bf16.mxu0 %v1952_v32  ;;  %1558 = vmatprep.subr.bf16.mxu1 %v2390_v56 }
 0x25a   :  { %787 = vmatpush1.bf16.msra.mxu0 %v1962_v34  ;;  %1559 = vmatpush3.bf16.msra.mxu1 %v1984_v39 }
 0x25b   :  { %788 = vmatprep.subr.bf16.mxu0 %v1965_v35  ;;  %1560 = vmatprep.subr.bf16.mxu1 %v2390_v56 }
 0x25e   :  { %789 = vmatpush1.bf16.msra.mxu0 %v1973_v37  ;;  %1561 = vmatpush3.bf16.msra.mxu1 %v1991_v41 }
 0x25f   :  { %886 = vmatprep.subr.bf16.mxu0 %v1876_v6  ;;  %1566 = vmatprep.subr.bf16.mxu1 %v2390_v56 }
 0x314   :  { %v696_v13 = vpop.f32.mrb[24].mxu0  ;;  %v737_v40 = vpop.f32.mrb[16].mxu1 }
 0x315   :  { %v743_v11 = vadd.f32 %v696_v13, %v2037_v58  ;;  %v698_v48 = vpop.f32.mrb[25].mxu0  ;;  %v1544_v49 = vpop.f32.mrb[17].mxu1  ;;  %v757_v51 = vadd.f32 %v2085_v47, %v737_v40 }
 0x316   :  { %v744_v20 = vadd.f32 %v698_v48, %v2039_v60  ;;  %v700_v0 = vpop.f32.mrb[26].mxu0  ;;  %v740_v50 = vpop.f32.mrb[18].mxu1 }
 0x317   :  { %v1381_v18 = vmul.f32 -1.442695, %v743_v11  ;;  %v701_v42 = vpop.f32.mrb[27].mxu0  ;;  %v1545_v26 = vpop.f32.mrb[19].mxu1 }
 0x318   :  { %v1382_v5 = vmul.f32 -1.442695, %v744_v20 }
 0x319   :  { %1709 = vpow2.f32 %v1381_v18 }
 0x31a   :  { %1711 = vpow2.f32 %v1382_v5 }
 0x323   :  { %v1710_v62 = vpop.eup %1709 }
 0x324   :  { %v748_v52 = vadd.f32 1.0, %v1710_v62  ;;  %v1712_v27 = vpop.eup %1711 }
 0x325   :  { %v754_v55 = vadd.f32 1.0, %v1712_v27 }
 0x326   :  { %1713 = vrcp.f32 %v748_v52 }
 0x327   :  { %1715 = vrcp.f32 %v754_v55 }
 0x330   :  { %v1714_v58 = vpop.eup %1713 }
 0x331   :  { %v758_v43 = vmul.f32 %v1714_v58, %v757_v51  ;;  %v1716_v53 = vpop.eup %1715 }
 0x332   :  { %v761_v57 = vsub.f32 1.0, %v1716_v53  ;;  %v763_v13 = vmul.f32 %v1716_v53, %v2137_v1 }
 0x333   :  { %v759_v60 = vadd.f32 %v758_v43, %v2044_v2 }
 0x335   :  { %1717 = vtanh.f32 %v759_v60 }
 0x33f   :  { %v1718_v61 = vpop.eup %1717 }
 0x340   :  { %v762_v46 = vmul.f32 %v1718_v61, %v761_v57 }
 0x342   :  { %v2185_v11 = vadd.f32 %v763_v13, %v762_v46 }
 0x344   :  { %1383 = vst [vmem:[%s2381_s5 + $0x10] sm:$0xff] %v2185_v11  ;;  %v773_v40 = vpack.c.bf16 %v2185_v11, %v2185_v11 }
 0x346   :  { %807 = vmatmul.mubr.bf16.vlgmr.msra.gmra.mrb[28].mxu0 %v773_v40  ;;  %1563 = vmatmul.mubr.bf16.vlgmr.msra.gmra.mrb[20].mxu1 %v773_v40 }
 0x347   :  { %887 = vmatpush1.bf16.msra.mxu0 %v1878_v7  ;;  %1567 = vmatpush3.bf16.msra.mxu1 %v1919_v22 }
 0x348   :  { %888 = vmatprep.subr.bf16.mxu0 %v1881_v8  ;;  %1568 = vmatprep.subr.bf16.mxu1 %v2390_v56 }
 0x349   :  { %918 = vmatprep.mubr.bf16.mxu0 %v2391_v3  ;;  %1582 = vmatprep.mubr.msk.bf16.mxu1 %vm1819_vm1, %v2390_v56 }
 0x34b   :  { %889 = vmatpush1.bf16.msra.mxu0 %v1885_v9  ;;  %1569 = vmatpush3.bf16.msra.mxu1 %v1928_v25 }
 0x34c   :  { %890 = vmatprep.subr.bf16.mxu0 %v1896_v12  ;;  %1570 = vmatprep.subr.bf16.mxu1 %v2390_v56 }
 0x34f   :  { %891 = vmatpush1.bf16.msra.mxu0 %v1902_v15  ;;  %1571 = vmatpush3.bf16.msra.mxu1 %v1943_v29 }
 0x350   :  { %892 = vmatprep.subr.bf16.mxu0 %v1905_v16  ;;  %1572 = vmatprep.subr.bf16.mxu1 %v2390_v56 }
 0x353   :  { %893 = vmatpush1.bf16.msra.mxu0 %v1914_v19  ;;  %1573 = vmatpush3.bf16.msra.mxu1 %v1956_v33 }
 0x354   :  { %894 = vmatprep.subr.bf16.mxu0 %v1922_v23  ;;  %1574 = vmatprep.subr.bf16.mxu1 %v2390_v56 }
 0x357   :  { %895 = vmatpush1.bf16.msra.mxu0 %v1925_v24  ;;  %1575 = vmatpush3.bf16.msra.mxu1 %v1968_v36 }
 0x358   :  { %896 = vmatprep.subr.bf16.mxu0 %v1940_v28  ;;  %1576 = vmatprep.subr.bf16.mxu1 %v2390_v56 }
 0x35b   :  { %897 = vmatpush1.bf16.msra.mxu0 %v1948_v31  ;;  %1577 = vmatpush3.bf16.msra.mxu1 %v1978_v38 }
 0x35c   :  { %898 = vmatprep.subr.bf16.mxu0 %v1952_v32  ;;  %1578 = vmatprep.subr.bf16.mxu1 %v2390_v56 }
 0x35f   :  { %899 = vmatpush1.bf16.msra.mxu0 %v1962_v34  ;;  %1579 = vmatpush3.bf16.msra.mxu1 %v1984_v39 }
 0x360   :  { %900 = vmatprep.subr.bf16.mxu0 %v1965_v35  ;;  %1580 = vmatprep.subr.bf16.mxu1 %v2390_v56 }
 0x363   :  { %901 = vmatpush1.bf16.msra.mxu0 %v1973_v37  ;;  %1581 = vmatpush3.bf16.msra.mxu1 %v1991_v41 }
 0x364   :  { %998 = vmatprep.subr.bf16.mxu0 %v1876_v6  ;;  %1586 = vmatprep.subr.bf16.mxu1 %v2390_v56 }
 0x419   :  { %v808_v2 = vpop.f32.mrb[28].mxu0  ;;  %v849_v1 = vpop.f32.mrb[20].mxu1 }
 0x41a   :  { %v855_v48 = vadd.f32 %v808_v2, %v2041_v63  ;;  %v810_v49 = vpop.f32.mrb[29].mxu0  ;;  %v1564_v20 = vpop.f32.mrb[21].mxu1  ;;  %v869_v58 = vadd.f32 %v2085_v47, %v849_v1 }
 0x41b   :  { %v856_v0 = vadd.f32 %v810_v49, %v2046_v4  ;;  %v812_v50 = vpop.f32.mrb[30].mxu0  ;;  %v852_v18 = vpop.f32.mrb[22].mxu1 }
 0x41c   :  { %v1384_v42 = vmul.f32 -1.442695, %v855_v48  ;;  %v813_v26 = vpop.f32.mrb[31].mxu0  ;;  %v1565_v5 = vpop.f32.mrb[23].mxu1 }
 0x41d   :  { %v1385_v62 = vmul.f32 -1.442695, %v856_v0 }
 0x41e   :  { %1719 = vpow2.f32 %v1384_v42 }
 0x41f   :  { %1721 = vpow2.f32 %v1385_v62 }
 0x428   :  { %v1720_v52 = vpop.eup %1719 }
 0x429   :  { %v860_v27 = vadd.f32 1.0, %v1720_v52  ;;  %v1722_v55 = vpop.eup %1721 }
 0x42a   :  { %v866_v51 = vadd.f32 1.0, %v1722_v55 }
 0x42b   :  { %1723 = vrcp.f32 %v860_v27 }
 0x42c   :  { %1725 = vrcp.f32 %v866_v51 }
 0x435   :  { %v1724_v63 = vpop.eup %1723 }
 0x436   :  { %v870_v43 = vmul.f32 %v1724_v63, %v869_v58  ;;  %v1726_v60 = vpop.eup %1725 }
 0x437   :  { %v873_v53 = vsub.f32 1.0, %v1726_v60  ;;  %v875_v46 = vmul.f32 %v1726_v60, %v2185_v11  ;;  %v2304_v60 = vld [vmem:[#allocation4 + $0x34] ss:$12 sps:$4 sm:$0xff]  }
 0x438   :  { %v871_v4 = vadd.f32 %v870_v43, %v2049_v10  ;;  %v2293_v43 = vld [vmem:[#allocation4 + $0x1c] ss:$12 sps:$4 sm:$0xff]  }
 0x43a   :  { %1727 = vtanh.f32 %v871_v4  ;;  %v2300_v4 = vld [vmem:[#allocation4 + $0x18] ss:$12 sps:$4 sm:$0xff]  }
 0x444   :  { %v1728_v57 = vpop.eup %1727 }
 0x445   :  { %v874_v61 = vmul.f32 %v1728_v57, %v873_v53 }
 0x447   :  { %v2233_v13 = vadd.f32 %v875_v46, %v874_v61 }
 0x449   :  { %1386 = vst [vmem:[%s2381_s5 + $0x18] sm:$0xff] %v2233_v13  ;;  %v885_v40 = vpack.c.bf16 %v2233_v13, %v2233_v13 }
 0x44b   :  { %919 = vmatmul.mubr.bf16.vlgmr.msra.gmra.mrb[32].mxu0 %v885_v40  ;;  %1583 = vmatmul.mubr.bf16.vlgmr.msra.gmra.mrb[24].mxu1 %v885_v40 }
 0x44c   :  { %999 = vmatpush1.bf16.msra.mxu0 %v1878_v7  ;;  %1587 = vmatpush3.bf16.msra.mxu1 %v1919_v22 }
 0x44d   :  { %1000 = vmatprep.subr.bf16.mxu0 %v1881_v8  ;;  %1588 = vmatprep.subr.bf16.mxu1 %v2390_v56 }
 0x44e   :  { %1030 = vmatprep.mubr.bf16.mxu0 %v2391_v3  ;;  %1602 = vmatprep.mubr.msk.bf16.mxu1 %vm1819_vm1, %v2390_v56 }
 0x450   :  { %1001 = vmatpush1.bf16.msra.mxu0 %v1885_v9  ;;  %1589 = vmatpush3.bf16.msra.mxu1 %v1928_v25 }
 0x451   :  { %1002 = vmatprep.subr.bf16.mxu0 %v1896_v12  ;;  %1590 = vmatprep.subr.bf16.mxu1 %v2390_v56 }
 0x454   :  { %1003 = vmatpush1.bf16.msra.mxu0 %v1902_v15  ;;  %1591 = vmatpush3.bf16.msra.mxu1 %v1943_v29 }
 0x455   :  { %1004 = vmatprep.subr.bf16.mxu0 %v1905_v16  ;;  %1592 = vmatprep.subr.bf16.mxu1 %v2390_v56 }
 0x458   :  { %1005 = vmatpush1.bf16.msra.mxu0 %v1914_v19  ;;  %1593 = vmatpush3.bf16.msra.mxu1 %v1956_v33 }
 0x459   :  { %1006 = vmatprep.subr.bf16.mxu0 %v1922_v23  ;;  %1594 = vmatprep.subr.bf16.mxu1 %v2390_v56 }
 0x45c   :  { %1007 = vmatpush1.bf16.msra.mxu0 %v1925_v24  ;;  %1595 = vmatpush3.bf16.msra.mxu1 %v1968_v36 }
 0x45d   :  { %1008 = vmatprep.subr.bf16.mxu0 %v1940_v28  ;;  %1596 = vmatprep.subr.bf16.mxu1 %v2390_v56 }
 0x460   :  { %1009 = vmatpush1.bf16.msra.mxu0 %v1948_v31  ;;  %1597 = vmatpush3.bf16.msra.mxu1 %v1978_v38 }
 0x461   :  { %1010 = vmatprep.subr.bf16.mxu0 %v1952_v32  ;;  %1598 = vmatprep.subr.bf16.mxu1 %v2390_v56 }
 0x464   :  { %1011 = vmatpush1.bf16.msra.mxu0 %v1962_v34  ;;  %1599 = vmatpush3.bf16.msra.mxu1 %v1984_v39 }
 0x465   :  { %1012 = vmatprep.subr.bf16.mxu0 %v1965_v35  ;;  %1600 = vmatprep.subr.bf16.mxu1 %v2390_v56 }
 0x468   :  { %1013 = vmatpush1.bf16.msra.mxu0 %v1973_v37  ;;  %1601 = vmatpush3.bf16.msra.mxu1 %v1991_v41 }
 0x469   :  { %1110 = vmatprep.subr.bf16.mxu0 %v1876_v6  ;;  %1606 = vmatprep.subr.bf16.mxu1 %v2390_v56 }
 0x51e   :  { %v920_v7 = vpop.f32.mrb[32].mxu0  ;;  %v961_v8 = vpop.f32.mrb[24].mxu1 }
 0x51f   :  { %v967_v9 = vadd.f32 %v920_v7, %v2054_v17  ;;  %v922_v12 = vpop.f32.mrb[33].mxu0  ;;  %v1584_v10 = vpop.f32.mrb[25].mxu1  ;;  %v981_v26 = vadd.f32 %v2085_v47, %v961_v8 }
 0x520   :  { %v968_v11 = vadd.f32 %v922_v12, %v2056_v21  ;;  %v924_v2 = vpop.f32.mrb[34].mxu0  ;;  %v964_v1 = vpop.f32.mrb[26].mxu1  ;;  %v1775_v10 = vld [vmem:[#allocation4 + $0x20] ss:$12 sps:$4 sm:$0xff]  }
 0x521   :  { %v1387_v48 = vmul.f32 -1.442695, %v967_v9  ;;  %v925_v49 = vpop.f32.mrb[35].mxu0  ;;  %v1585_v20 = vpop.f32.mrb[27].mxu1  ;;  %v1777_v2 = vld [vmem:[#allocation4 + $0x38] ss:$12 sps:$4 sm:$0xff]  }
 0x522   :  { %v1388_v0 = vmul.f32 -1.442695, %v968_v11  ;;  %v1776_v11 = vld [vmem:[#allocation4 + $0x30] ss:$12 sps:$4 sm:$0xff]   ;;  %v1778_v1 = vld [vmem:[#allocation4 + $0x4c] ss:$12 sps:$4 sm:$0xff]  }
 0x523   :  { %1729 = vpow2.f32 %v1387_v48  ;;  %v1780_v48 = vld [vmem:[#allocation4 + $0x50] ss:$12 sps:$4 sm:$0xff]   ;;  %v1782_v20 = vld [vmem:[#allocation4 + $0x60] ss:$12 sps:$4 sm:$0xff]  }
 0x524   :  { %1731 = vpow2.f32 %v1388_v0  ;;  %v1781_v49 = vld [vmem:[#allocation4 + $0x64] ss:$12 sps:$4 sm:$0xff]   ;;  %v1783_v0 = vld [vmem:[#allocation4 + $0x68] ss:$12 sps:$4 sm:$0xff]  }
 0x52d   :  { %v1730_v50 = vpop.eup %1729 }
 0x52e   :  { %v972_v6 = vadd.f32 1.0, %v1730_v50  ;;  %v1732_v18 = vpop.eup %1731  ;;  %v1784_v50 = vld [vmem:[#allocation4 + $0x7c] ss:$12 sps:$4 sm:$0xff]  }
 0x52f   :  { %v978_v42 = vadd.f32 1.0, %v1732_v18  ;;  %v1786_v18 = vld [vmem:[#allocation4 + $0x94] ss:$12 sps:$4 sm:$0xff]  }
 0x530   :  { %1733 = vrcp.f32 %v972_v6  ;;  %v1785_v6 = vld [vmem:[#allocation4 + $0x78] ss:$12 sps:$4 sm:$0xff]  }
 0x531   :  { %1735 = vrcp.f32 %v978_v42  ;;  %v1787_v42 = vld [vmem:[#allocation4 + $0x90] ss:$12 sps:$4 sm:$0xff]  }
 0x53a   :  { %v1734_v17 = vpop.eup %1733 }
 0x53b   :  { %v982_v5 = vmul.f32 %v1734_v17, %v981_v26  ;;  %v1736_v62 = vpop.eup %1735  ;;  %v1788_v26 = vld [vmem:[#allocation4 + $0xac] ss:$12 sps:$4 sm:$0xff]   ;;  %v1789_v17 = vld [vmem:[#allocation4 + $0xa8] ss:$12 sps:$4 sm:$0xff]  }
 0x53c   :  { %v985_v52 = vsub.f32 1.0, %v1736_v62  ;;  %v987_v51 = vmul.f32 %v1736_v62, %v2233_v13 }
 0x53d   :  { %v983_v21 = vadd.f32 %v982_v5, %v2066_v45  ;;  %v2289_v45 = vld [vmem:[#allocation4] ss:$12 sps:$4 sm:$0xff]  }
 0x53f   :  { %1737 = vtanh.f32 %v983_v21 }
 0x549   :  { %v1738_v27 = vpop.eup %1737 }
 0x54a   :  { %v986_v55 = vmul.f32 %v1738_v27, %v985_v52  ;;  %v2392_v27 = vld [vmem:[#allocation9_spill] sm:$0xff] }
 0x54c   :  { %v2281_v58 = vadd.f32 %v987_v51, %v986_v55 }
 0x54e   :  { %1389 = vst [vmem:[%s2381_s5 + $0x20] sm:$0xff] %v2281_v58  ;;  %v997_v63 = vpack.c.bf16 %v2281_v58, %v2281_v58 }
 0x550   :  { %1031 = vmatmul.mubr.bf16.vlgmr.msra.gmra.mrb[36].mxu0 %v997_v63  ;;  %1603 = vmatmul.mubr.bf16.vlgmr.msra.gmra.mrb[28].mxu1 %v997_v63 }
 0x551   :  { %1111 = vmatpush1.bf16.msra.mxu0 %v2289_v45  ;;  %1607 = vmatpush3.bf16.msra.mxu1 %v1919_v22 }
 0x552   :  { %1112 = vmatprep.subr.bf16.mxu0 %v2293_v43  ;;  %1608 = vmatprep.subr.bf16.mxu1 %v2390_v56 }
 0x553   :  { %1142 = vmatprep.mubr.bf16.mxu0 %v2391_v3  ;;  %1622 = vmatprep.mubr.msk.bf16.mxu1 %vm1819_vm1, %v2390_v56 }
 0x555   :  { %1113 = vmatpush1.bf16.msra.mxu0 %v2300_v4  ;;  %1609 = vmatpush3.bf16.msra.mxu1 %v1928_v25 }
 0x556   :  { %1114 = vmatprep.subr.bf16.mxu0 %v2304_v60  ;;  %1610 = vmatprep.subr.bf16.mxu1 %v2390_v56 }
 0x559   :  { %1115 = vmatpush1.bf16.msra.mxu0 %v1902_v15  ;;  %1611 = vmatpush3.bf16.msra.mxu1 %v1943_v29  ;;  %v1773_v15 = vld [vmem:[#allocation4 + $0x4] ss:$12 sps:$4 sm:$0xff]  }
 0x55a   :  { %1116 = vmatprep.subr.bf16.mxu0 %v1905_v16  ;;  %1612 = vmatprep.subr.bf16.mxu1 %v2390_v56 }
 0x55d   :  { %1117 = vmatpush1.bf16.msra.mxu0 %v1914_v19  ;;  %1613 = vmatpush3.bf16.msra.mxu1 %v1956_v33 }
 0x55e   :  { %1118 = vmatprep.subr.bf16.mxu0 %v1922_v23  ;;  %1614 = vmatprep.subr.bf16.mxu1 %v2390_v56 }
 0x561   :  { %1119 = vmatpush1.bf16.msra.mxu0 %v1925_v24  ;;  %1615 = vmatpush3.bf16.msra.mxu1 %v1968_v36 }
 0x562   :  { %1120 = vmatprep.subr.bf16.mxu0 %v1940_v28  ;;  %1616 = vmatprep.subr.bf16.mxu1 %v2390_v56 }
 0x565   :  { %1121 = vmatpush1.bf16.msra.mxu0 %v1948_v31  ;;  %1617 = vmatpush3.bf16.msra.mxu1 %v1978_v38 }
 0x566   :  { %1122 = vmatprep.subr.bf16.mxu0 %v1952_v32  ;;  %1618 = vmatprep.subr.bf16.mxu1 %v2390_v56 }
 0x569   :  { %1123 = vmatpush1.bf16.msra.mxu0 %v1962_v34  ;;  %1619 = vmatpush3.bf16.msra.mxu1 %v1984_v39 }
 0x56a   :  { %1124 = vmatprep.subr.bf16.mxu0 %v1965_v35  ;;  %1620 = vmatprep.subr.bf16.mxu1 %v2390_v56 }
 0x56d   :  { %1125 = vmatpush1.bf16.msra.mxu0 %v1973_v37  ;;  %1621 = vmatpush3.bf16.msra.mxu1 %v1991_v41 }
 0x56e   :  { %1222 = vmatprep.subr.bf16.mxu0 %v1773_v15  ;;  %1626 = vmatprep.subr.bf16.mxu1 %v2390_v56 }
 0x623   :  { %v1032_v16 = vpop.f32.mrb[36].mxu0  ;;  %v1073_v19 = vpop.f32.mrb[28].mxu1 }
 0x624   :  { %v1079_v22 = vadd.f32 %v1032_v16, %v2058_v30  ;;  %v1034_v23 = vpop.f32.mrb[37].mxu0  ;;  %v1604_v24 = vpop.f32.mrb[29].mxu1  ;;  %v1093_v57 = vadd.f32 %v2085_v47, %v1073_v19  ;;  %v2393_v19 = vld [vmem:[#allocation7_spill] sm:$0xff] }
 0x625   :  { %v1080_v25 = vadd.f32 %v1034_v23, %v2063_v44  ;;  %v1036_v28 = vpop.f32.mrb[38].mxu0  ;;  %v1076_v29 = vpop.f32.mrb[30].mxu1 }
 0x626   :  { %v1390_v31 = vmul.f32 -1.442695, %v1079_v22  ;;  %v1037_v32 = vpop.f32.mrb[39].mxu0  ;;  %v1605_v33 = vpop.f32.mrb[31].mxu1 }
 0x627   :  { %v1391_v34 = vmul.f32 -1.442695, %v1080_v25 }
 0x628   :  { %1739 = vpow2.f32 %v1390_v31 }
 0x629   :  { %1741 = vpow2.f32 %v1391_v34 }
 0x632   :  { %v1740_v35 = vpop.eup %1739 }
 0x633   :  { %v1084_v36 = vadd.f32 1.0, %v1740_v35  ;;  %v1742_v37 = vpop.eup %1741  ;;  %v2394_v35 = vld [vmem:[#allocation10_spill] sm:$0xff] }
 0x634   :  { %v1090_v53 = vadd.f32 1.0, %v1742_v37 }
 0x635   :  { %1743 = vrcp.f32 %v1084_v36 }
 0x636   :  { %1745 = vrcp.f32 %v1090_v53 }
 0x63f   :  { %v1744_v30 = vpop.eup %1743 }
 0x640   :  { %v1094_v61 = vmul.f32 %v1744_v30, %v1093_v57  ;;  %v1746_v46 = vpop.eup %1745 }
 0x641   :  { %v1097_v13 = vsub.f32 1.0, %v1746_v46  ;;  %v1099_v8 = vmul.f32 %v1746_v46, %v2281_v58 }
 0x642   :  { %v1095_v44 = vadd.f32 %v1094_v61, %v2072_v54  ;;  %v1774_v54 = vld [vmem:[#allocation4 + $0x8] ss:$12 sps:$4 sm:$0xff]  }
 0x644   :  { %1747 = vtanh.f32 %v1095_v44 }
 0x64e   :  { %v1748_v40 = vpop.eup %1747 }
 0x64f   :  { %v1098_v7 = vmul.f32 %v1748_v40, %v1097_v13 }
 0x651   :  { %v2336_v9 = vadd.f32 %v1099_v8, %v1098_v7 }
 0x653   :  { %1392 = vst [vmem:[%s2381_s5 + $0x28] sm:$0xff] %v2336_v9  ;;  %v1109_v12 = vpack.c.bf16 %v2336_v9, %v2336_v9 }
 0x655   :  { %1143 = vmatmul.mubr.bf16.vlgmr.msra.gmra.mrb[40].mxu0 %v1109_v12  ;;  %1623 = vmatmul.mubr.bf16.vlgmr.msra.gmra.mrb[32].mxu1 %v1109_v12 }
 0x656   :  { %1223 = vmatpush1.bf16.msra.mxu0 %v2289_v45  ;;  %1627 = vmatpush3.bf16.msra.mxu1 %v1774_v54 }
 0x657   :  { %1224 = vmatprep.subr.bf16.mxu0 %v2293_v43  ;;  %1628 = vmatprep.subr.bf16.mxu1 %v2390_v56 }
 0x658   :  { %1254 = vmatprep.mubr.bf16.mxu0 %v2391_v3  ;;  %1642 = vmatprep.mubr.msk.bf16.mxu1 %vm1819_vm1, %v2390_v56  ;;  %v1779_v3 = vld [vmem:[#allocation4 + $0x48] ss:$12 sps:$4 sm:$0xff]  }
 0x65a   :  { %1225 = vmatpush1.bf16.msra.mxu0 %v2300_v4  ;;  %1629 = vmatpush3.bf16.msra.mxu1 %v1775_v10 }
 0x65b   :  { %1226 = vmatprep.subr.bf16.mxu0 %v2304_v60  ;;  %1630 = vmatprep.subr.bf16.mxu1 %v2390_v56 }
 0x65e   :  { %1227 = vmatpush1.bf16.msra.mxu0 %v1776_v11  ;;  %1631 = vmatpush3.bf16.msra.mxu1 %v1777_v2  ;;  %v2395_v2 = vld [vmem:[#allocation8_spill] sm:$0xff] }
 0x65f   :  { %1228 = vmatprep.subr.bf16.mxu0 %v1778_v1  ;;  %1632 = vmatprep.subr.bf16.mxu1 %v2390_v56 }
 0x662   :  { %1229 = vmatpush1.bf16.msra.mxu0 %v1779_v3  ;;  %1633 = vmatpush3.bf16.msra.mxu1 %v1780_v48 }
 0x663   :  { %1230 = vmatprep.subr.bf16.mxu0 %v1781_v49  ;;  %1634 = vmatprep.subr.bf16.mxu1 %v2390_v56 }
 0x666   :  { %1231 = vmatpush1.bf16.msra.mxu0 %v1782_v20  ;;  %1635 = vmatpush3.bf16.msra.mxu1 %v1783_v0 }
 0x667   :  { %1232 = vmatprep.subr.bf16.mxu0 %v1784_v50  ;;  %1636 = vmatprep.subr.bf16.mxu1 %v2390_v56 }
 0x66a   :  { %1233 = vmatpush1.bf16.msra.mxu0 %v1785_v6  ;;  %1637 = vmatpush3.bf16.msra.mxu1 %v1978_v38 }
 0x66b   :  { %1234 = vmatprep.subr.bf16.mxu0 %v1786_v18  ;;  %1638 = vmatprep.subr.bf16.mxu1 %v2390_v56 }
 0x66e   :  { %1235 = vmatpush1.bf16.msra.mxu0 %v1787_v42  ;;  %1639 = vmatpush3.bf16.msra.mxu1 %v1984_v39 }
 0x66f   :  { %1236 = vmatprep.subr.bf16.mxu0 %v1788_v26  ;;  %1640 = vmatprep.subr.bf16.mxu1 %v2390_v56 }
 0x672   :  { %1237 = vmatpush1.bf16.msra.mxu0 %v1789_v17  ;;  %1641 = vmatpush3.bf16.msra.mxu1 %v1991_v41 }
 0x728   :  { %v1144_v5 = vpop.f32.mrb[40].mxu0  ;;  %v1185_v21 = vpop.f32.mrb[32].mxu1 }
 0x729   :  { %v1191_v38 = vadd.f32 %v1144_v5, %v2074_v59  ;;  %v1146_v62 = vpop.f32.mrb[41].mxu0  ;;  %v1624_v52 = vpop.f32.mrb[33].mxu1  ;;  %v1205_v15 = vadd.f32 %v2085_v47, %v1185_v21 }
 0x72a   :  { %v1192_v55 = vadd.f32 %v1146_v62, %v2392_v27  ;;  %v1148_v51 = vpop.f32.mrb[42].mxu0  ;;  %v1188_v58 = vpop.f32.mrb[34].mxu1 }
 0x72b   :  { %v1393_v63 = vmul.f32 -1.442695, %v1191_v38  ;;  %v1149_v39 = vpop.f32.mrb[43].mxu0  ;;  %v1625_v45 = vpop.f32.mrb[35].mxu1 }
 0x72c   :  { %v1394_v43 = vmul.f32 -1.442695, %v1192_v55 }
 0x72d   :  { %1749 = vpow2.f32 %v1393_v63 }
 0x72e   :  { %1751 = vpow2.f32 %v1394_v43 }
 0x737   :  { %v1750_v56 = vpop.eup %1749 }
 0x738   :  { %v1196_v4 = vadd.f32 1.0, %v1750_v56  ;;  %v1752_v41 = vpop.eup %1751 }
 0x739   :  { %v1202_v60 = vadd.f32 1.0, %v1752_v41 }
 0x73a   :  { %1753 = vrcp.f32 %v1196_v4 }
 0x73b   :  { %1755 = vrcp.f32 %v1202_v60 }
 0x744   :  { %v1754_v59 = vpop.eup %1753 }
 0x745   :  { %v1206_v16 = vmul.f32 %v1754_v59, %v1205_v15  ;;  %v1756_v23 = vpop.eup %1755 }
 0x746   :  { %v1209_v24 = vsub.f32 1.0, %v1756_v23  ;;  %v1211_v29 = vmul.f32 %v1756_v23, %v2336_v9 }
 0x747   :  { %v1207_v22 = vadd.f32 %v1206_v16, %v2393_v19 }
 0x749   :  { %1757 = vtanh.f32 %v1207_v22 }
 0x753   :  { %v1758_v25 = vpop.eup %1757 }
 0x754   :  { %v1210_v28 = vmul.f32 %v1758_v25, %v1209_v24 }
 0x756   :  { %v1212_v31 = vadd.f32 %v1211_v29, %v1210_v28 }
 0x758   :  { %1395 = vst [vmem:[%s2381_s5 + $0x30] sm:$0xff] %v1212_v31  ;;  %v1221_v32 = vpack.c.bf16 %v1212_v31, %v1212_v31 }
 0x75a   :  { %1255 = vmatmul.mubr.bf16.vlgmr.msra.gmra.mrb[44].mxu0 %v1221_v32  ;;  %1643 = vmatmul.mubr.bf16.vlgmr.msra.gmra.mrb[36].mxu1 %v1221_v32 }
 0x82d   :  { %v1256_v33 = vpop.f32.mrb[44].mxu0  ;;  %v1297_v34 = vpop.f32.mrb[36].mxu1 }
 0x82e   :  { %v1303_v36 = vadd.f32 %v1256_v33, %v2394_v35  ;;  %v1258_v37 = vpop.f32.mrb[45].mxu0  ;;  %v1644_v53 = vpop.f32.mrb[37].mxu1  ;;  %v1317_v54 = vadd.f32 %v2085_v47, %v1297_v34 }
 0x82f   :  { %v1304_v57 = vadd.f32 %v1258_v37, %v2080_v14  ;;  %v1260_v30 = vpop.f32.mrb[46].mxu0  ;;  %v1300_v61 = vpop.f32.mrb[38].mxu1 }
 0x830   :  { %v1396_v44 = vmul.f32 -1.442695, %v1303_v36  ;;  %v1261_v46 = vpop.f32.mrb[47].mxu0  ;;  %v1645_v13 = vpop.f32.mrb[39].mxu1 }
 0x831   :  { %v1397_v40 = vmul.f32 -1.442695, %v1304_v57 }
 0x832   :  { %1759 = vpow2.f32 %v1396_v44 }
 0x833   :  { %1761 = vpow2.f32 %v1397_v40 }
 0x83c   :  { %v1760_v7 = vpop.eup %1759 }
 0x83d   :  { %v1308_v8 = vadd.f32 1.0, %v1760_v7  ;;  %v1762_v9 = vpop.eup %1761 }
 0x83e   :  { %v1314_v12 = vadd.f32 1.0, %v1762_v9 }
 0x83f   :  { %1763 = vrcp.f32 %v1308_v8 }
 0x840   :  { %1765 = vrcp.f32 %v1314_v12 }
 0x849   :  { %v1764_v10 = vpop.eup %1763 }
 0x84a   :  { %v1318_v11 = vmul.f32 %v1764_v10, %v1317_v54  ;;  %v1766_v1 = vpop.eup %1765 }
 0x84b   :  { %v1321_v3 = vsub.f32 1.0, %v1766_v1  ;;  %v1323_v20 = vmul.f32 %v1766_v1, %v1212_v31 }
 0x84c   :  { %v1319_v14 = vadd.f32 %v1318_v11, %v2395_v2 }
 0x84e   :  { %1767 = vtanh.f32 %v1319_v14 }
 0x858   :  { %v1768_v48 = vpop.eup %1767 }
 0x859   :  { %v1322_v49 = vmul.f32 %v1768_v48, %v1321_v3 }
 0x85b   :  { %v1324_v0 = vadd.f32 %v1323_v20, %v1322_v49 }
 0x85d   :  { %1398 = vst [vmem:[%s2381_s5 + $0x38] sm:$0xff] %v1324_v0 }
 0x85e   :  { %1332 = vsyncpa [#allocation5], 1 }

</bundles_post_ra>
